<compile_context>
chip_gen: v7x
topology: tpu7x:2x2x1
jax: 0.10.0
libtpu: 0.0.40
codegen_flags: <defaults>
</compile_context>

<pallas_src>
import functools
from math import exp

import numpy as np
import jax
import jax.numpy as jnp
from jax.experimental import pallas as pl


# ----------------------------- host-side constants ---------------------------
def _gaussian_1d(window_size, sigma):
    g = np.array(
        [exp(-(x - window_size // 2) ** 2 / float(2 * sigma ** 2))
         for x in range(window_size)],
        dtype=np.float64,
    )
    return (g / g.sum()).astype(np.float32)


def _level_matrices(h, w):
    """conv2d(zero_pad(img), outer(g,g)) == A @ img @ B (cross-correlation)."""
    ws = min(h, w, 11)
    sigma = 1.5 * ws / 11.0
    p = ws // 2
    ho = h + 2 * p - ws + 1
    wo = w + 2 * p - ws + 1
    g = _gaussian_1d(ws, sigma)
    A = np.zeros((ho, h), np.float32)
    for u in range(ho):
        for a in range(ws):
            i = u + a - p
            if 0 <= i < h:
                A[u, i] += g[a]
    B = np.zeros((w, wo), np.float32)
    for v in range(wo):
        for b in range(ws):
            j = v + b - p
            if 0 <= j < w:
                B[j, v] += g[b]
    return A, B, ho, wo


def _pool_matrices(h, w):
    """avg_pool2d(kernel=2, stride=2) == PH @ img @ PW."""
    h2, w2 = h // 2, w // 2
    PH = np.zeros((h2, h), np.float32)
    for i in range(h2):
        PH[i, 2 * i] = 0.5
        PH[i, 2 * i + 1] = 0.5
    PW = np.zeros((w, w2), np.float32)
    for j in range(w2):
        PW[2 * j, j] = 0.5
        PW[2 * j + 1, j] = 0.5
    return PH, PW


# ----------------------------- cached, jitted MS-SSIM ------------------------
@functools.lru_cache(maxsize=None)
def _make_msssim_fn(n, h, w, levels, max_val):
    # ---- build every per-level matrix once and pack into a single slab -----
    mats = []
    level_meta = []

    def add(m):
        mats.append(np.asarray(m, np.float32))
        return len(mats) - 1

    hh, ww = h, w
    for l in range(levels):
        A, B, ho, wo = _level_matrices(hh, ww)
        info = dict(w=ww, ho=ho, wo=wo, A=add(A), B=add(B))
        if l < levels - 1:
            PH, PW = _pool_matrices(hh, ww)
            info["PH"] = add(PH)
            info["PW"] = add(PW)
            hh, ww = hh // 2, ww // 2
        level_meta.append(info)

    maxcols = max(m.shape[1] for m in mats)
    offs, row = [], 0
    for m in mats:
        offs.append(row)
        row += ((m.shape[0] + 7) // 8) * 8          # 8-sublane aligned regions
    packed_np = np.zeros((max(row, 8), maxcols), np.float32)
    for m, off in zip(mats, offs):
        packed_np[off:off + m.shape[0], :m.shape[1]] = m
    specs = [(offs[i], mats[i].shape[0], mats[i].shape[1]) for i in range(len(mats))]

    c1 = (0.01 * max_val) ** 2
    c2 = (0.03 * max_val) ** 2
    weight_np = np.array([0.0448, 0.2856, 0.3001, 0.2363, 0.1333], np.float32)

    # ----------------------------- the fused kernel -------------------------
    def kernel(tri_ref, const_ref, out_ref):
        hi = jax.lax.Precision.HIGHEST
        const = const_ref[...]                     # packed constant slab

        def mat(idx):
            off, r, c = specs[idx]
            return const[off:off + r, :c]

        tri = tri_ref[...]                         # (H, 2*N*W) slab [x | y]
        ssim_vals, mcs_vals = [], []

        for l in range(levels):
            info = level_meta[l]
            ww_, ho, wo = info["w"], info["ho"], info["wo"]
            A = mat(info["A"])                     # (Ho, H_l)
            B = mat(info["B"])                     # (W_l, Wo)
            nw = n * ww_
            xs = tri[:, :nw]
            ys = tri[:, nw:2 * nw]

            # Row blur of the whole batch: 3 lane-dense MXU matmuls per level.
            # f32/HIGHEST protects the E[x^2]-mu^2 cancellation.
            t_mu = jnp.dot(A, tri, precision=hi,
                           preferred_element_type=jnp.float32)        # (Ho, 2nw)
            t_sq = jnp.dot(A, tri * tri, precision=hi,
                           preferred_element_type=jnp.float32)        # (Ho, 2nw)
            t_xy = jnp.dot(A, xs * ys, precision=hi,
                           preferred_element_type=jnp.float32)        # (Ho, nw)

            ssim_sum = jnp.zeros((1, 1), jnp.float32)
            mcs_sum = jnp.zeros((1, 1), jnp.float32)
            # Column blur per image panel (no kron block-diagonal matrices).
            for i in range(n):
                sx = slice(i * ww_, (i + 1) * ww_)
                sy = slice(nw + i * ww_, nw + (i + 1) * ww_)
                mu1 = jnp.dot(t_mu[:, sx], B, precision=hi,
                              preferred_element_type=jnp.float32)
                mu2 = jnp.dot(t_mu[:, sy], B, precision=hi,
                              preferred_element_type=jnp.float32)
                e_x2 = jnp.dot(t_sq[:, sx], B, precision=hi,
                               preferred_element_type=jnp.float32)
                e_y2 = jnp.dot(t_sq[:, sy], B, precision=hi,
                               preferred_element_type=jnp.float32)
                e_xy = jnp.dot(t_xy[:, sx], B, precision=hi,
                               preferred_element_type=jnp.float32)

                mu1_sq = mu1 * mu1
                mu2_sq = mu2 * mu2
                mu1_mu2 = mu1 * mu2
                v1 = 2.0 * (e_xy - mu1_mu2) + c2
                v2 = (e_x2 - mu1_sq) + (e_y2 - mu2_sq) + c2
                # Divisions -> EUP reciprocals; mcs_map reused for ssim_map.
                mcs_map = v1 * pl.reciprocal(v2, approx=True)
                ssim_map = mcs_map * (2.0 * mu1_mu2 + c1) * pl.reciprocal(
                    mu1_sq + mu2_sq + c1, approx=True)
                ssim_sum = ssim_sum + jnp.sum(ssim_map, keepdims=True)
                mcs_sum = mcs_sum + jnp.sum(mcs_map, keepdims=True)

            inv_cnt = 1.0 / float(n * ho * wo)
            ssim_vals.append(ssim_sum * inv_cnt)
            mcs_vals.append(mcs_sum * inv_cnt)

            if l < levels - 1:
                # avg_pool2d(2,2): row pool on the full slab, column pool per
                # image panel (pooling is linear, [x|y] layout preserved).
                PH = mat(info["PH"])               # (H_l/2, H_l)
                PW = mat(info["PW"])               # (W_l, W_l/2)
                tp = jnp.dot(PH, tri, precision=hi,
                             preferred_element_type=jnp.float32)      # (H/2, 2nw)
                panels = [
                    jnp.dot(tp[:, p * ww_:(p + 1) * ww_], PW, precision=hi,
                            preferred_element_type=jnp.float32)
                    for p in range(2 * n)
                ]
                tri = jnp.concatenate(panels, axis=1)   # (H/2, 2*n*W/2)

        # Single merged output: [ssim_0..ssim_{L-1}, mcs_0..mcs_{L-1}].
        col = jax.lax.broadcasted_iota(jnp.int32, (1, 2 * levels), 1)
        acc = jnp.zeros((1, 2 * levels), jnp.float32)
        for idx, v in enumerate(ssim_vals + mcs_vals):
            acc = jnp.where(col == idx, jnp.broadcast_to(v, acc.shape), acc)
        out_ref[...] = acc

    # ----------------------------- jitted wrapper ---------------------------
    @jax.jit
    def fn(img1, img2):
        # Lane-major slab [x | y]: (H, 2*N*W), built once under jit.
        x = jnp.transpose(img1[:, 0].astype(jnp.float32), (1, 0, 2)).reshape(h, n * w)
        y = jnp.transpose(img2[:, 0].astype(jnp.float32), (1, 0, 2)).reshape(h, n * w)
        tri0 = jnp.concatenate([x, y], axis=1)
        const = jnp.asarray(packed_np)             # baked as an XLA constant

        out = pl.pallas_call(
            kernel,
            out_shape=jax.ShapeDtypeStruct((1, 2 * levels), jnp.float32),
        )(tri0, const)

        msssim = out[0, :levels]
        mcs = out[0, levels:]
        weight = jnp.asarray(weight_np)
        return (jnp.prod(mcs[:levels - 1] ** weight[:levels - 1])
                * msssim[levels - 1] ** weight[levels - 1])

    return fn


def ms_ssim(img1, img2, levels=4, max_val=1.0):
    n, c, h, w = img1.shape
    assert c == 1, "MS_SSIM module semantics require single-channel input"
    return _make_msssim_fn(int(n), int(h), int(w), int(levels), float(max_val))(
        img1, img2)


# ----------------------------- pure-JAX reference ----------------------------
def _ssim_ref(img1, img2, max_val=1.0):
    _, c, h, w = img1.shape
    ws = min(h, w, 11)
    sigma = 1.5 * ws / 11
    g = _gaussian_1d(ws, sigma)
    win = jnp.asarray(np.outer(g, g)[None, None, :, :])
    p = ws // 2

    def conv(z):
        return jax.lax.conv_general_dilated(
            z.astype(jnp.float32), win, (1, 1), [(p, p), (p, p)],
            dimension_numbers=("NCHW", "OIHW", "NCHW"),
            precision=jax.lax.Precision.HIGHEST)

    c1 = (0.01 * max_val) ** 2
    c2 = (0.03 * max_val) ** 2
    mu1, mu2 = conv(img1), conv(img2)
    mu1_sq, mu2_sq, mu1_mu2 = mu1 * mu1, mu2 * mu2, mu1 * mu2
    s1 = conv(img1 * img1) - mu1_sq
    s2 = conv(img2 * img2) - mu2_sq
    s12 = conv(img1 * img2) - mu1_mu2
    v1 = 2.0 * s12 + c2
    v2 = s1 + s2 + c2
    ssim_map = (2.0 * mu1_mu2 + c1) * v1 / ((mu1_sq + mu2_sq + c1) * v2)
    mcs_map = v1 / v2
    return jnp.mean(ssim_map), jnp.mean(mcs_map)


def ms_ssim_ref(img1, img2, levels=4, max_val=1.0):
    weight = jnp.array([0.0448, 0.2856, 0.3001, 0.2363, 0.1333], jnp.float32)
    msssim, mcs = [], []
    for _ in range(levels):
        s, m = _ssim_ref(img1, img2, max_val=max_val)
        msssim.append(s)
        mcs.append(m)
        n, c, h, w = img1.shape
        h2, w2 = h // 2, w // 2
        img1 = img1[:, :, :h2 * 2, :w2 * 2].reshape(n, c, h2, 2, w2, 2).mean(axis=(3, 5))
        img2 = img2[:, :, :h2 * 2, :w2 * 2].reshape(n, c, h2, 2, w2, 2).mean(axis=(3, 5))
    msssim = jnp.stack(msssim)
    mcs = jnp.stack(mcs)
    return (jnp.prod(mcs[: levels - 1] ** weight[: levels - 1])
            * msssim[levels - 1] ** weight[levels - 1])


# ----------------------------- main -------------------------------------------
if __name__ == "__main__":
    key = jax.random.PRNGKey(0)
    k1, k2 = jax.random.split(key)
    # (N, C=1, H, W); 16x16 so 4 MS-SSIM levels (16, 8, 4, 2) all work.
    img1 = jax.random.uniform(k1, (2, 1, 16, 16), dtype=jnp.float32)
    noise = 0.05 * jax.random.normal(k2, (2, 1, 16, 16), dtype=jnp.float32)
    img2 = jnp.clip(img1 + noise, 0.0, 1.0)

    val = jax.block_until_ready(ms_ssim(img1, img2, levels=4))
    ref = jax.block_until_ready(ms_ssim_ref(img1, img2, levels=4))
    np.testing.assert_allclose(np.asarray(val), np.asarray(ref),
                               rtol=5e-3, atol=5e-3)
    print("KERNEL_OK")
</pallas_src>

<mosaic_0001>
module attributes {stable_mosaic.version = 11 : i64} {
  func.func @kernel(%arg0: memref<16x64xf32, #tpu.memory_space<vmem>>, %arg1: memref<144x16xf32, #tpu.memory_space<vmem>>, %arg2: memref<1x8xf32, #tpu.memory_space<vmem>>) attributes {dimension_semantics = [], scalar_prefetch = 0 : i64, scratch_operands = 0 : i64, tpu.core_type = #tpu.core_type<tc>} {
    %c0 = arith.constant 0 : index
    %c0_0 = arith.constant 0 : index
    %0 = vector.load %arg1[%c0, %c0_0] : memref<144x16xf32, #tpu.memory_space<vmem>>, vector<144x16xf32>
    %c0_1 = arith.constant 0 : index
    %c0_2 = arith.constant 0 : index
    %1 = vector.load %arg0[%c0_1, %c0_2] : memref<16x64xf32, #tpu.memory_space<vmem>>, vector<16x64xf32>
    %2 = vector.extract_strided_slice %0 {offsets = [0, 0], sizes = [16, 16], strides = [1, 1]} : vector<144x16xf32> to vector<16x16xf32>
    %3 = vector.extract_strided_slice %0 {offsets = [16, 0], sizes = [16, 16], strides = [1, 1]} : vector<144x16xf32> to vector<16x16xf32>
    %4 = vector.extract_strided_slice %1 {offsets = [0, 0], sizes = [16, 32], strides = [1, 1]} : vector<16x64xf32> to vector<16x32xf32>
    %5 = vector.extract_strided_slice %1 {offsets = [0, 32], sizes = [16, 32], strides = [1, 1]} : vector<16x64xf32> to vector<16x32xf32>
    %cst = arith.constant dense<0.000000e+00> : vector<16x64xf32>
    %6 = tpu.matmul %2, %1, %cst {dimension_numbers = #tpu.dot_dimension_numbers<[1], [0], [0], [1], [0, 0, 1, 1], [], []>, precision = #tpu.contract_precision<fp32>} : vector<16x16xf32>, vector<16x64xf32>, vector<16x64xf32> -> vector<16x64xf32>
    %7 = arith.mulf %1, %1 : vector<16x64xf32>
    %cst_3 = arith.constant dense<0.000000e+00> : vector<16x64xf32>
    %8 = tpu.matmul %2, %7, %cst_3 {dimension_numbers = #tpu.dot_dimension_numbers<[1], [0], [0], [1], [0, 0, 1, 1], [], []>, precision = #tpu.contract_precision<fp32>} : vector<16x16xf32>, vector<16x64xf32>, vector<16x64xf32> -> vector<16x64xf32>
    %9 = arith.mulf %4, %5 : vector<16x32xf32>
    %cst_4 = arith.constant dense<0.000000e+00> : vector<16x32xf32>
    %10 = tpu.matmul %2, %9, %cst_4 {dimension_numbers = #tpu.dot_dimension_numbers<[1], [0], [0], [1], [0, 0, 1, 1], [], []>, precision = #tpu.contract_precision<fp32>} : vector<16x16xf32>, vector<16x32xf32>, vector<16x32xf32> -> vector<16x32xf32>
    %cst_5 = arith.constant 0.000000e+00 : f32
    %11 = vector.broadcast %cst_5 : f32 to vector<1x1xf32>
    %cst_6 = arith.constant 0.000000e+00 : f32
    %12 = vector.broadcast %cst_6 : f32 to vector<1x1xf32>
    %13 = vector.extract_strided_slice %6 {offsets = [0, 0], sizes = [16, 16], strides = [1, 1]} : vector<16x64xf32> to vector<16x16xf32>
    %cst_7 = arith.constant dense<0.000000e+00> : vector<16x16xf32>
    %14 = tpu.matmul %13, %3, %cst_7 {dimension_numbers = #tpu.dot_dimension_numbers<[1], [0], [0], [1], [0, 0, 1, 1], [], []>, precision = #tpu.contract_precision<fp32>} : vector<16x16xf32>, vector<16x16xf32>, vector<16x16xf32> -> vector<16x16xf32>
    %15 = vector.extract_strided_slice %6 {offsets = [0, 32], sizes = [16, 16], strides = [1, 1]} : vector<16x64xf32> to vector<16x16xf32>
    %cst_8 = arith.constant dense<0.000000e+00> : vector<16x16xf32>
    %16 = tpu.matmul %15, %3, %cst_8 {dimension_numbers = #tpu.dot_dimension_numbers<[1], [0], [0], [1], [0, 0, 1, 1], [], []>, precision = #tpu.contract_precision<fp32>} : vector<16x16xf32>, vector<16x16xf32>, vector<16x16xf32> -> vector<16x16xf32>
    %17 = vector.extract_strided_slice %8 {offsets = [0, 0], sizes = [16, 16], strides = [1, 1]} : vector<16x64xf32> to vector<16x16xf32>
    %cst_9 = arith.constant dense<0.000000e+00> : vector<16x16xf32>
    %18 = tpu.matmul %17, %3, %cst_9 {dimension_numbers = #tpu.dot_dimension_numbers<[1], [0], [0], [1], [0, 0, 1, 1], [], []>, precision = #tpu.contract_precision<fp32>} : vector<16x16xf32>, vector<16x16xf32>, vector<16x16xf32> -> vector<16x16xf32>
    %19 = vector.extract_strided_slice %8 {offsets = [0, 32], sizes = [16, 16], strides = [1, 1]} : vector<16x64xf32> to vector<16x16xf32>
    %cst_10 = arith.constant dense<0.000000e+00> : vector<16x16xf32>
    %20 = tpu.matmul %19, %3, %cst_10 {dimension_numbers = #tpu.dot_dimension_numbers<[1], [0], [0], [1], [0, 0, 1, 1], [], []>, precision = #tpu.contract_precision<fp32>} : vector<16x16xf32>, vector<16x16xf32>, vector<16x16xf32> -> vector<16x16xf32>
    %21 = vector.extract_strided_slice %10 {offsets = [0, 0], sizes = [16, 16], strides = [1, 1]} : vector<16x32xf32> to vector<16x16xf32>
    %cst_11 = arith.constant dense<0.000000e+00> : vector<16x16xf32>
    %22 = tpu.matmul %21, %3, %cst_11 {dimension_numbers = #tpu.dot_dimension_numbers<[1], [0], [0], [1], [0, 0, 1, 1], [], []>, precision = #tpu.contract_precision<fp32>} : vector<16x16xf32>, vector<16x16xf32>, vector<16x16xf32> -> vector<16x16xf32>
    %23 = arith.mulf %14, %14 : vector<16x16xf32>
    %24 = arith.mulf %16, %16 : vector<16x16xf32>
    %25 = arith.mulf %14, %16 : vector<16x16xf32>
    %26 = arith.subf %22, %25 : vector<16x16xf32>
    %cst_12 = arith.constant 2.000000e+00 : f32
    %27 = vector.broadcast %cst_12 : f32 to vector<16x16xf32>
    %28 = arith.mulf %27, %26 : vector<16x16xf32>
    %cst_13 = arith.constant 8.99999984E-4 : f32
    %29 = vector.broadcast %cst_13 : f32 to vector<16x16xf32>
    %30 = arith.addf %28, %29 : vector<16x16xf32>
    %31 = arith.subf %18, %23 : vector<16x16xf32>
    %32 = arith.subf %20, %24 : vector<16x16xf32>
    %33 = arith.addf %31, %32 : vector<16x16xf32>
    %cst_14 = arith.constant 8.99999984E-4 : f32
    %34 = vector.broadcast %cst_14 : f32 to vector<16x16xf32>
    %35 = arith.addf %33, %34 : vector<16x16xf32>
    %36 = tpu.reciprocal %35 {approx = true} : vector<16x16xf32> -> vector<16x16xf32>
    %37 = arith.mulf %30, %36 : vector<16x16xf32>
    %cst_15 = arith.constant 2.000000e+00 : f32
    %38 = vector.broadcast %cst_15 : f32 to vector<16x16xf32>
    %39 = arith.mulf %38, %25 : vector<16x16xf32>
    %cst_16 = arith.constant 9.99999974E-5 : f32
    %40 = vector.broadcast %cst_16 : f32 to vector<16x16xf32>
    %41 = arith.addf %39, %40 : vector<16x16xf32>
    %42 = arith.mulf %37, %41 : vector<16x16xf32>
    %43 = arith.addf %23, %24 : vector<16x16xf32>
    %cst_17 = arith.constant 9.99999974E-5 : f32
    %44 = vector.broadcast %cst_17 : f32 to vector<16x16xf32>
    %45 = arith.addf %43, %44 : vector<16x16xf32>
    %46 = tpu.reciprocal %45 {approx = true} : vector<16x16xf32> -> vector<16x16xf32>
    %47 = arith.mulf %42, %46 : vector<16x16xf32>
    %48 = vector.shape_cast %47 : vector<16x16xf32> to vector<1x16x16xf32>
    %cst_18 = arith.constant dense<0.000000e+00> : vector<1xf32>
    %49 = vector.multi_reduction <add>, %48, %cst_18 [1, 2] : vector<1x16x16xf32> to vector<1xf32>
    %50 = vector.shape_cast %49 : vector<1xf32> to vector<1x1x1xf32>
    %51 = vector.extract %50[0, 0, 0] : f32 from vector<1x1x1xf32>
    %52 = vector.broadcast %51 : f32 to vector<1x1xf32>
    %53 = arith.addf %11, %52 : vector<1x1xf32>
    %54 = vector.shape_cast %37 : vector<16x16xf32> to vector<1x16x16xf32>
    %cst_19 = arith.constant dense<0.000000e+00> : vector<1xf32>
    %55 = vector.multi_reduction <add>, %54, %cst_19 [1, 2] : vector<1x16x16xf32> to vector<1xf32>
    %56 = vector.shape_cast %55 : vector<1xf32> to vector<1x1x1xf32>
    %57 = vector.extract %56[0, 0, 0] : f32 from vector<1x1x1xf32>
    %58 = vector.broadcast %57 : f32 to vector<1x1xf32>
    %59 = arith.addf %12, %58 : vector<1x1xf32>
    %60 = vector.extract_strided_slice %6 {offsets = [0, 16], sizes = [16, 16], strides = [1, 1]} : vector<16x64xf32> to vector<16x16xf32>
    %cst_20 = arith.constant dense<0.000000e+00> : vector<16x16xf32>
    %61 = tpu.matmul %60, %3, %cst_20 {dimension_numbers = #tpu.dot_dimension_numbers<[1], [0], [0], [1], [0, 0, 1, 1], [], []>, precision = #tpu.contract_precision<fp32>} : vector<16x16xf32>, vector<16x16xf32>, vector<16x16xf32> -> vector<16x16xf32>
    %62 = vector.extract_strided_slice %6 {offsets = [0, 48], sizes = [16, 16], strides = [1, 1]} : vector<16x64xf32> to vector<16x16xf32>
    %cst_21 = arith.constant dense<0.000000e+00> : vector<16x16xf32>
    %63 = tpu.matmul %62, %3, %cst_21 {dimension_numbers = #tpu.dot_dimension_numbers<[1], [0], [0], [1], [0, 0, 1, 1], [], []>, precision = #tpu.contract_precision<fp32>} : vector<16x16xf32>, vector<16x16xf32>, vector<16x16xf32> -> vector<16x16xf32>
    %64 = vector.extract_strided_slice %8 {offsets = [0, 16], sizes = [16, 16], strides = [1, 1]} : vector<16x64xf32> to vector<16x16xf32>
    %cst_22 = arith.constant dense<0.000000e+00> : vector<16x16xf32>
    %65 = tpu.matmul %64, %3, %cst_22 {dimension_numbers = #tpu.dot_dimension_numbers<[1], [0], [0], [1], [0, 0, 1, 1], [], []>, precision = #tpu.contract_precision<fp32>} : vector<16x16xf32>, vector<16x16xf32>, vector<16x16xf32> -> vector<16x16xf32>
    %66 = vector.extract_strided_slice %8 {offsets = [0, 48], sizes = [16, 16], strides = [1, 1]} : vector<16x64xf32> to vector<16x16xf32>
    %cst_23 = arith.constant dense<0.000000e+00> : vector<16x16xf32>
    %67 = tpu.matmul %66, %3, %cst_23 {dimension_numbers = #tpu.dot_dimension_numbers<[1], [0], [0], [1], [0, 0, 1, 1], [], []>, precision = #tpu.contract_precision<fp32>} : vector<16x16xf32>, vector<16x16xf32>, vector<16x16xf32> -> vector<16x16xf32>
    %68 = vector.extract_strided_slice %10 {offsets = [0, 16], sizes = [16, 16], strides = [1, 1]} : vector<16x32xf32> to vector<16x16xf32>
    %cst_24 = arith.constant dense<0.000000e+00> : vector<16x16xf32>
    %69 = tpu.matmul %68, %3, %cst_24 {dimension_numbers = #tpu.dot_dimension_numbers<[1], [0], [0], [1], [0, 0, 1, 1], [], []>, precision = #tpu.contract_precision<fp32>} : vector<16x16xf32>, vector<16x16xf32>, vector<16x16xf32> -> vector<16x16xf32>
    %70 = arith.mulf %61, %61 : vector<16x16xf32>
    %71 = arith.mulf %63, %63 : vector<16x16xf32>
    %72 = arith.mulf %61, %63 : vector<16x16xf32>
    %73 = arith.subf %69, %72 : vector<16x16xf32>
    %cst_25 = arith.constant 2.000000e+00 : f32
    %74 = vector.broadcast %cst_25 : f32 to vector<16x16xf32>
    %75 = arith.mulf %74, %73 : vector<16x16xf32>
    %cst_26 = arith.constant 8.99999984E-4 : f32
    %76 = vector.broadcast %cst_26 : f32 to vector<16x16xf32>
    %77 = arith.addf %75, %76 : vector<16x16xf32>
    %78 = arith.subf %65, %70 : vector<16x16xf32>
    %79 = arith.subf %67, %71 : vector<16x16xf32>
    %80 = arith.addf %78, %79 : vector<16x16xf32>
    %cst_27 = arith.constant 8.99999984E-4 : f32
    %81 = vector.broadcast %cst_27 : f32 to vector<16x16xf32>
    %82 = arith.addf %80, %81 : vector<16x16xf32>
    %83 = tpu.reciprocal %82 {approx = true} : vector<16x16xf32> -> vector<16x16xf32>
    %84 = arith.mulf %77, %83 : vector<16x16xf32>
    %cst_28 = arith.constant 2.000000e+00 : f32
    %85 = vector.broadcast %cst_28 : f32 to vector<16x16xf32>
    %86 = arith.mulf %85, %72 : vector<16x16xf32>
    %cst_29 = arith.constant 9.99999974E-5 : f32
    %87 = vector.broadcast %cst_29 : f32 to vector<16x16xf32>
    %88 = arith.addf %86, %87 : vector<16x16xf32>
    %89 = arith.mulf %84, %88 : vector<16x16xf32>
    %90 = arith.addf %70, %71 : vector<16x16xf32>
    %cst_30 = arith.constant 9.99999974E-5 : f32
    %91 = vector.broadcast %cst_30 : f32 to vector<16x16xf32>
    %92 = arith.addf %90, %91 : vector<16x16xf32>
    %93 = tpu.reciprocal %92 {approx = true} : vector<16x16xf32> -> vector<16x16xf32>
    %94 = arith.mulf %89, %93 : vector<16x16xf32>
    %95 = vector.shape_cast %94 : vector<16x16xf32> to vector<1x16x16xf32>
    %cst_31 = arith.constant dense<0.000000e+00> : vector<1xf32>
    %96 = vector.multi_reduction <add>, %95, %cst_31 [1, 2] : vector<1x16x16xf32> to vector<1xf32>
    %97 = vector.shape_cast %96 : vector<1xf32> to vector<1x1x1xf32>
    %98 = vector.extract %97[0, 0, 0] : f32 from vector<1x1x1xf32>
    %99 = vector.broadcast %98 : f32 to vector<1x1xf32>
    %100 = arith.addf %53, %99 : vector<1x1xf32>
    %101 = vector.shape_cast %84 : vector<16x16xf32> to vector<1x16x16xf32>
    %cst_32 = arith.constant dense<0.000000e+00> : vector<1xf32>
    %102 = vector.multi_reduction <add>, %101, %cst_32 [1, 2] : vector<1x16x16xf32> to vector<1xf32>
    %103 = vector.shape_cast %102 : vector<1xf32> to vector<1x1x1xf32>
    %104 = vector.extract %103[0, 0, 0] : f32 from vector<1x1x1xf32>
    %105 = vector.broadcast %104 : f32 to vector<1x1xf32>
    %106 = arith.addf %59, %105 : vector<1x1xf32>
    %cst_33 = arith.constant 0.001953125 : f32
    %107 = vector.broadcast %cst_33 : f32 to vector<1x1xf32>
    %108 = arith.mulf %100, %107 : vector<1x1xf32>
    %cst_34 = arith.constant 0.001953125 : f32
    %109 = vector.broadcast %cst_34 : f32 to vector<1x1xf32>
    %110 = arith.mulf %106, %109 : vector<1x1xf32>
    %111 = vector.extract_strided_slice %0 {offsets = [32, 0], sizes = [8, 16], strides = [1, 1]} : vector<144x16xf32> to vector<8x16xf32>
    %112 = vector.extract_strided_slice %0 {offsets = [40, 0], sizes = [16, 8], strides = [1, 1]} : vector<144x16xf32> to vector<16x8xf32>
    %cst_35 = arith.constant dense<0.000000e+00> : vector<8x64xf32>
    %113 = tpu.matmul %111, %1, %cst_35 {dimension_numbers = #tpu.dot_dimension_numbers<[1], [0], [0], [1], [0, 0, 1, 1], [], []>, precision = #tpu.contract_precision<fp32>} : vector<8x16xf32>, vector<16x64xf32>, vector<8x64xf32> -> vector<8x64xf32>
    %114 = vector.extract_strided_slice %113 {offsets = [0, 0], sizes = [8, 16], strides = [1, 1]} : vector<8x64xf32> to vector<8x16xf32>
    %cst_36 = arith.constant dense<0.000000e+00> : vector<8x8xf32>
    %115 = tpu.matmul %114, %112, %cst_36 {dimension_numbers = #tpu.dot_dimension_numbers<[1], [0], [0], [1], [0, 0, 1, 1], [], []>, precision = #tpu.contract_precision<fp32>} : vector<8x16xf32>, vector<16x8xf32>, vector<8x8xf32> -> vector<8x8xf32>
    %116 = vector.extract_strided_slice %113 {offsets = [0, 16], sizes = [8, 16], strides = [1, 1]} : vector<8x64xf32> to vector<8x16xf32>
    %cst_37 = arith.constant dense<0.000000e+00> : vector<8x8xf32>
    %117 = tpu.matmul %116, %112, %cst_37 {dimension_numbers = #tpu.dot_dimension_numbers<[1], [0], [0], [1], [0, 0, 1, 1], [], []>, precision = #tpu.contract_precision<fp32>} : vector<8x16xf32>, vector<16x8xf32>, vector<8x8xf32> -> vector<8x8xf32>
    %118 = vector.extract_strided_slice %113 {offsets = [0, 32], sizes = [8, 16], strides = [1, 1]} : vector<8x64xf32> to vector<8x16xf32>
    %cst_38 = arith.constant dense<0.000000e+00> : vector<8x8xf32>
    %119 = tpu.matmul %118, %112, %cst_38 {dimension_numbers = #tpu.dot_dimension_numbers<[1], [0], [0], [1], [0, 0, 1, 1], [], []>, precision = #tpu.contract_precision<fp32>} : vector<8x16xf32>, vector<16x8xf32>, vector<8x8xf32> -> vector<8x8xf32>
    %120 = vector.extract_strided_slice %113 {offsets = [0, 48], sizes = [8, 16], strides = [1, 1]} : vector<8x64xf32> to vector<8x16xf32>
    %cst_39 = arith.constant dense<0.000000e+00> : vector<8x8xf32>
    %121 = tpu.matmul %120, %112, %cst_39 {dimension_numbers = #tpu.dot_dimension_numbers<[1], [0], [0], [1], [0, 0, 1, 1], [], []>, precision = #tpu.contract_precision<fp32>} : vector<8x16xf32>, vector<16x8xf32>, vector<8x8xf32> -> vector<8x8xf32>
    %122 = tpu.concatenate %115, %117, %119, %121 in 1 : vector<8x8xf32>, vector<8x8xf32>, vector<8x8xf32>, vector<8x8xf32> -> vector<8x32xf32>
    %123 = vector.extract_strided_slice %0 {offsets = [56, 0], sizes = [9, 8], strides = [1, 1]} : vector<144x16xf32> to vector<9x8xf32>
    %124 = vector.extract_strided_slice %0 {offsets = [72, 0], sizes = [8, 9], strides = [1, 1]} : vector<144x16xf32> to vector<8x9xf32>
    %125 = vector.extract_strided_slice %122 {offsets = [0, 0], sizes = [8, 16], strides = [1, 1]} : vector<8x32xf32> to vector<8x16xf32>
    %126 = vector.extract_strided_slice %122 {offsets = [0, 16], sizes = [8, 16], strides = [1, 1]} : vector<8x32xf32> to vector<8x16xf32>
    %cst_40 = arith.constant dense<0.000000e+00> : vector<9x32xf32>
    %127 = tpu.matmul %123, %122, %cst_40 {dimension_numbers = #tpu.dot_dimension_numbers<[1], [0], [0], [1], [0, 0, 1, 1], [], []>, precision = #tpu.contract_precision<fp32>} : vector<9x8xf32>, vector<8x32xf32>, vector<9x32xf32> -> vector<9x32xf32>
    %128 = arith.mulf %122, %122 : vector<8x32xf32>
    %cst_41 = arith.constant dense<0.000000e+00> : vector<9x32xf32>
    %129 = tpu.matmul %123, %128, %cst_41 {dimension_numbers = #tpu.dot_dimension_numbers<[1], [0], [0], [1], [0, 0, 1, 1], [], []>, precision = #tpu.contract_precision<fp32>} : vector<9x8xf32>, vector<8x32xf32>, vector<9x32xf32> -> vector<9x32xf32>
    %130 = arith.mulf %125, %126 : vector<8x16xf32>
    %cst_42 = arith.constant dense<0.000000e+00> : vector<9x16xf32>
    %131 = tpu.matmul %123, %130, %cst_42 {dimension_numbers = #tpu.dot_dimension_numbers<[1], [0], [0], [1], [0, 0, 1, 1], [], []>, precision = #tpu.contract_precision<fp32>} : vector<9x8xf32>, vector<8x16xf32>, vector<9x16xf32> -> vector<9x16xf32>
    %cst_43 = arith.constant 0.000000e+00 : f32
    %132 = vector.broadcast %cst_43 : f32 to vector<1x1xf32>
    %cst_44 = arith.constant 0.000000e+00 : f32
    %133 = vector.broadcast %cst_44 : f32 to vector<1x1xf32>
    %134 = vector.extract_strided_slice %127 {offsets = [0, 0], sizes = [9, 8], strides = [1, 1]} : vector<9x32xf32> to vector<9x8xf32>
    %cst_45 = arith.constant dense<0.000000e+00> : vector<9x9xf32>
    %135 = tpu.matmul %134, %124, %cst_45 {dimension_numbers = #tpu.dot_dimension_numbers<[1], [0], [0], [1], [0, 0, 1, 1], [], []>, precision = #tpu.contract_precision<fp32>} : vector<9x8xf32>, vector<8x9xf32>, vector<9x9xf32> -> vector<9x9xf32>
    %136 = vector.extract_strided_slice %127 {offsets = [0, 16], sizes = [9, 8], strides = [1, 1]} : vector<9x32xf32> to vector<9x8xf32>
    %cst_46 = arith.constant dense<0.000000e+00> : vector<9x9xf32>
    %137 = tpu.matmul %136, %124, %cst_46 {dimension_numbers = #tpu.dot_dimension_numbers<[1], [0], [0], [1], [0, 0, 1, 1], [], []>, precision = #tpu.contract_precision<fp32>} : vector<9x8xf32>, vector<8x9xf32>, vector<9x9xf32> -> vector<9x9xf32>
    %138 = vector.extract_strided_slice %129 {offsets = [0, 0], sizes = [9, 8], strides = [1, 1]} : vector<9x32xf32> to vector<9x8xf32>
    %cst_47 = arith.constant dense<0.000000e+00> : vector<9x9xf32>
    %139 = tpu.matmul %138, %124, %cst_47 {dimension_numbers = #tpu.dot_dimension_numbers<[1], [0], [0], [1], [0, 0, 1, 1], [], []>, precision = #tpu.contract_precision<fp32>} : vector<9x8xf32>, vector<8x9xf32>, vector<9x9xf32> -> vector<9x9xf32>
    %140 = vector.extract_strided_slice %129 {offsets = [0, 16], sizes = [9, 8], strides = [1, 1]} : vector<9x32xf32> to vector<9x8xf32>
    %cst_48 = arith.constant dense<0.000000e+00> : vector<9x9xf32>
    %141 = tpu.matmul %140, %124, %cst_48 {dimension_numbers = #tpu.dot_dimension_numbers<[1], [0], [0], [1], [0, 0, 1, 1], [], []>, precision = #tpu.contract_precision<fp32>} : vector<9x8xf32>, vector<8x9xf32>, vector<9x9xf32> -> vector<9x9xf32>
    %142 = vector.extract_strided_slice %131 {offsets = [0, 0], sizes = [9, 8], strides = [1, 1]} : vector<9x16xf32> to vector<9x8xf32>
    %cst_49 = arith.constant dense<0.000000e+00> : vector<9x9xf32>
    %143 = tpu.matmul %142, %124, %cst_49 {dimension_numbers = #tpu.dot_dimension_numbers<[1], [0], [0], [1], [0, 0, 1, 1], [], []>, precision = #tpu.contract_precision<fp32>} : vector<9x8xf32>, vector<8x9xf32>, vector<9x9xf32> -> vector<9x9xf32>
    %144 = arith.mulf %135, %135 : vector<9x9xf32>
    %145 = arith.mulf %137, %137 : vector<9x9xf32>
    %146 = arith.mulf %135, %137 : vector<9x9xf32>
    %147 = arith.subf %143, %146 : vector<9x9xf32>
    %cst_50 = arith.constant 2.000000e+00 : f32
    %148 = vector.broadcast %cst_50 : f32 to vector<9x9xf32>
    %149 = arith.mulf %148, %147 : vector<9x9xf32>
    %cst_51 = arith.constant 8.99999984E-4 : f32
    %150 = vector.broadcast %cst_51 : f32 to vector<9x9xf32>
    %151 = arith.addf %149, %150 : vector<9x9xf32>
    %152 = arith.subf %139, %144 : vector<9x9xf32>
    %153 = arith.subf %141, %145 : vector<9x9xf32>
    %154 = arith.addf %152, %153 : vector<9x9xf32>
    %cst_52 = arith.constant 8.99999984E-4 : f32
    %155 = vector.broadcast %cst_52 : f32 to vector<9x9xf32>
    %156 = arith.addf %154, %155 : vector<9x9xf32>
    %157 = tpu.reciprocal %156 {approx = true} : vector<9x9xf32> -> vector<9x9xf32>
    %158 = arith.mulf %151, %157 : vector<9x9xf32>
    %cst_53 = arith.constant 2.000000e+00 : f32
    %159 = vector.broadcast %cst_53 : f32 to vector<9x9xf32>
    %160 = arith.mulf %159, %146 : vector<9x9xf32>
    %cst_54 = arith.constant 9.99999974E-5 : f32
    %161 = vector.broadcast %cst_54 : f32 to vector<9x9xf32>
    %162 = arith.addf %160, %161 : vector<9x9xf32>
    %163 = arith.mulf %158, %162 : vector<9x9xf32>
    %164 = arith.addf %144, %145 : vector<9x9xf32>
    %cst_55 = arith.constant 9.99999974E-5 : f32
    %165 = vector.broadcast %cst_55 : f32 to vector<9x9xf32>
    %166 = arith.addf %164, %165 : vector<9x9xf32>
    %167 = tpu.reciprocal %166 {approx = true} : vector<9x9xf32> -> vector<9x9xf32>
    %168 = arith.mulf %163, %167 : vector<9x9xf32>
    %169 = vector.shape_cast %168 : vector<9x9xf32> to vector<1x9x9xf32>
    %cst_56 = arith.constant dense<0.000000e+00> : vector<1xf32>
    %170 = vector.multi_reduction <add>, %169, %cst_56 [1, 2] : vector<1x9x9xf32> to vector<1xf32>
    %171 = vector.shape_cast %170 : vector<1xf32> to vector<1x1x1xf32>
    %172 = vector.extract %171[0, 0, 0] : f32 from vector<1x1x1xf32>
    %173 = vector.broadcast %172 : f32 to vector<1x1xf32>
    %174 = arith.addf %132, %173 : vector<1x1xf32>
    %175 = vector.shape_cast %158 : vector<9x9xf32> to vector<1x9x9xf32>
    %cst_57 = arith.constant dense<0.000000e+00> : vector<1xf32>
    %176 = vector.multi_reduction <add>, %175, %cst_57 [1, 2] : vector<1x9x9xf32> to vector<1xf32>
    %177 = vector.shape_cast %176 : vector<1xf32> to vector<1x1x1xf32>
    %178 = vector.extract %177[0, 0, 0] : f32 from vector<1x1x1xf32>
    %179 = vector.broadcast %178 : f32 to vector<1x1xf32>
    %180 = arith.addf %133, %179 : vector<1x1xf32>
    %181 = vector.extract_strided_slice %127 {offsets = [0, 8], sizes = [9, 8], strides = [1, 1]} : vector<9x32xf32> to vector<9x8xf32>
    %cst_58 = arith.constant dense<0.000000e+00> : vector<9x9xf32>
    %182 = tpu.matmul %181, %124, %cst_58 {dimension_numbers = #tpu.dot_dimension_numbers<[1], [0], [0], [1], [0, 0, 1, 1], [], []>, precision = #tpu.contract_precision<fp32>} : vector<9x8xf32>, vector<8x9xf32>, vector<9x9xf32> -> vector<9x9xf32>
    %183 = vector.extract_strided_slice %127 {offsets = [0, 24], sizes = [9, 8], strides = [1, 1]} : vector<9x32xf32> to vector<9x8xf32>
    %cst_59 = arith.constant dense<0.000000e+00> : vector<9x9xf32>
    %184 = tpu.matmul %183, %124, %cst_59 {dimension_numbers = #tpu.dot_dimension_numbers<[1], [0], [0], [1], [0, 0, 1, 1], [], []>, precision = #tpu.contract_precision<fp32>} : vector<9x8xf32>, vector<8x9xf32>, vector<9x9xf32> -> vector<9x9xf32>
    %185 = vector.extract_strided_slice %129 {offsets = [0, 8], sizes = [9, 8], strides = [1, 1]} : vector<9x32xf32> to vector<9x8xf32>
    %cst_60 = arith.constant dense<0.000000e+00> : vector<9x9xf32>
    %186 = tpu.matmul %185, %124, %cst_60 {dimension_numbers = #tpu.dot_dimension_numbers<[1], [0], [0], [1], [0, 0, 1, 1], [], []>, precision = #tpu.contract_precision<fp32>} : vector<9x8xf32>, vector<8x9xf32>, vector<9x9xf32> -> vector<9x9xf32>
    %187 = vector.extract_strided_slice %129 {offsets = [0, 24], sizes = [9, 8], strides = [1, 1]} : vector<9x32xf32> to vector<9x8xf32>
    %cst_61 = arith.constant dense<0.000000e+00> : vector<9x9xf32>
    %188 = tpu.matmul %187, %124, %cst_61 {dimension_numbers = #tpu.dot_dimension_numbers<[1], [0], [0], [1], [0, 0, 1, 1], [], []>, precision = #tpu.contract_precision<fp32>} : vector<9x8xf32>, vector<8x9xf32>, vector<9x9xf32> -> vector<9x9xf32>
    %189 = vector.extract_strided_slice %131 {offsets = [0, 8], sizes = [9, 8], strides = [1, 1]} : vector<9x16xf32> to vector<9x8xf32>
    %cst_62 = arith.constant dense<0.000000e+00> : vector<9x9xf32>
    %190 = tpu.matmul %189, %124, %cst_62 {dimension_numbers = #tpu.dot_dimension_numbers<[1], [0], [0], [1], [0, 0, 1, 1], [], []>, precision = #tpu.contract_precision<fp32>} : vector<9x8xf32>, vector<8x9xf32>, vector<9x9xf32> -> vector<9x9xf32>
    %191 = arith.mulf %182, %182 : vector<9x9xf32>
    %192 = arith.mulf %184, %184 : vector<9x9xf32>
    %193 = arith.mulf %182, %184 : vector<9x9xf32>
    %194 = arith.subf %190, %193 : vector<9x9xf32>
    %cst_63 = arith.constant 2.000000e+00 : f32
    %195 = vector.broadcast %cst_63 : f32 to vector<9x9xf32>
    %196 = arith.mulf %195, %194 : vector<9x9xf32>
    %cst_64 = arith.constant 8.99999984E-4 : f32
    %197 = vector.broadcast %cst_64 : f32 to vector<9x9xf32>
    %198 = arith.addf %196, %197 : vector<9x9xf32>
    %199 = arith.subf %186, %191 : vector<9x9xf32>
    %200 = arith.subf %188, %192 : vector<9x9xf32>
    %201 = arith.addf %199, %200 : vector<9x9xf32>
    %cst_65 = arith.constant 8.99999984E-4 : f32
    %202 = vector.broadcast %cst_65 : f32 to vector<9x9xf32>
    %203 = arith.addf %201, %202 : vector<9x9xf32>
    %204 = tpu.reciprocal %203 {approx = true} : vector<9x9xf32> -> vector<9x9xf32>
    %205 = arith.mulf %198, %204 : vector<9x9xf32>
    %cst_66 = arith.constant 2.000000e+00 : f32
    %206 = vector.broadcast %cst_66 : f32 to vector<9x9xf32>
    %207 = arith.mulf %206, %193 : vector<9x9xf32>
    %cst_67 = arith.constant 9.99999974E-5 : f32
    %208 = vector.broadcast %cst_67 : f32 to vector<9x9xf32>
    %209 = arith.addf %207, %208 : vector<9x9xf32>
    %210 = arith.mulf %205, %209 : vector<9x9xf32>
    %211 = arith.addf %191, %192 : vector<9x9xf32>
    %cst_68 = arith.constant 9.99999974E-5 : f32
    %212 = vector.broadcast %cst_68 : f32 to vector<9x9xf32>
    %213 = arith.addf %211, %212 : vector<9x9xf32>
    %214 = tpu.reciprocal %213 {approx = true} : vector<9x9xf32> -> vector<9x9xf32>
    %215 = arith.mulf %210, %214 : vector<9x9xf32>
    %216 = vector.shape_cast %215 : vector<9x9xf32> to vector<1x9x9xf32>
    %cst_69 = arith.constant dense<0.000000e+00> : vector<1xf32>
    %217 = vector.multi_reduction <add>, %216, %cst_69 [1, 2] : vector<1x9x9xf32> to vector<1xf32>
    %218 = vector.shape_cast %217 : vector<1xf32> to vector<1x1x1xf32>
    %219 = vector.extract %218[0, 0, 0] : f32 from vector<1x1x1xf32>
    %220 = vector.broadcast %219 : f32 to vector<1x1xf32>
    %221 = arith.addf %174, %220 : vector<1x1xf32>
    %222 = vector.shape_cast %205 : vector<9x9xf32> to vector<1x9x9xf32>
    %cst_70 = arith.constant dense<0.000000e+00> : vector<1xf32>
    %223 = vector.multi_reduction <add>, %222, %cst_70 [1, 2] : vector<1x9x9xf32> to vector<1xf32>
    %224 = vector.shape_cast %223 : vector<1xf32> to vector<1x1x1xf32>
    %225 = vector.extract %224[0, 0, 0] : f32 from vector<1x1x1xf32>
    %226 = vector.broadcast %225 : f32 to vector<1x1xf32>
    %227 = arith.addf %180, %226 : vector<1x1xf32>
    %cst_71 = arith.constant 0.00617283955 : f32
    %228 = vector.broadcast %cst_71 : f32 to vector<1x1xf32>
    %229 = arith.mulf %221, %228 : vector<1x1xf32>
    %cst_72 = arith.constant 0.00617283955 : f32
    %230 = vector.broadcast %cst_72 : f32 to vector<1x1xf32>
    %231 = arith.mulf %227, %230 : vector<1x1xf32>
    %232 = vector.extract_strided_slice %0 {offsets = [80, 0], sizes = [4, 8], strides = [1, 1]} : vector<144x16xf32> to vector<4x8xf32>
    %233 = vector.extract_strided_slice %0 {offsets = [88, 0], sizes = [8, 4], strides = [1, 1]} : vector<144x16xf32> to vector<8x4xf32>
    %cst_73 = arith.constant dense<0.000000e+00> : vector<4x32xf32>
    %234 = tpu.matmul %232, %122, %cst_73 {dimension_numbers = #tpu.dot_dimension_numbers<[1], [0], [0], [1], [0, 0, 1, 1], [], []>, precision = #tpu.contract_precision<fp32>} : vector<4x8xf32>, vector<8x32xf32>, vector<4x32xf32> -> vector<4x32xf32>
    %235 = vector.extract_strided_slice %234 {offsets = [0, 0], sizes = [4, 8], strides = [1, 1]} : vector<4x32xf32> to vector<4x8xf32>
    %cst_74 = arith.constant dense<0.000000e+00> : vector<4x4xf32>
    %236 = tpu.matmul %235, %233, %cst_74 {dimension_numbers = #tpu.dot_dimension_numbers<[1], [0], [0], [1], [0, 0, 1, 1], [], []>, precision = #tpu.contract_precision<fp32>} : vector<4x8xf32>, vector<8x4xf32>, vector<4x4xf32> -> vector<4x4xf32>
    %237 = vector.extract_strided_slice %234 {offsets = [0, 8], sizes = [4, 8], strides = [1, 1]} : vector<4x32xf32> to vector<4x8xf32>
    %cst_75 = arith.constant dense<0.000000e+00> : vector<4x4xf32>
    %238 = tpu.matmul %237, %233, %cst_75 {dimension_numbers = #tpu.dot_dimension_numbers<[1], [0], [0], [1], [0, 0, 1, 1], [], []>, precision = #tpu.contract_precision<fp32>} : vector<4x8xf32>, vector<8x4xf32>, vector<4x4xf32> -> vector<4x4xf32>
    %239 = vector.extract_strided_slice %234 {offsets = [0, 16], sizes = [4, 8], strides = [1, 1]} : vector<4x32xf32> to vector<4x8xf32>
    %cst_76 = arith.constant dense<0.000000e+00> : vector<4x4xf32>
    %240 = tpu.matmul %239, %233, %cst_76 {dimension_numbers = #tpu.dot_dimension_numbers<[1], [0], [0], [1], [0, 0, 1, 1], [], []>, precision = #tpu.contract_precision<fp32>} : vector<4x8xf32>, vector<8x4xf32>, vector<4x4xf32> -> vector<4x4xf32>
    %241 = vector.extract_strided_slice %234 {offsets = [0, 24], sizes = [4, 8], strides = [1, 1]} : vector<4x32xf32> to vector<4x8xf32>
    %cst_77 = arith.constant dense<0.000000e+00> : vector<4x4xf32>
    %242 = tpu.matmul %241, %233, %cst_77 {dimension_numbers = #tpu.dot_dimension_numbers<[1], [0], [0], [1], [0, 0, 1, 1], [], []>, precision = #tpu.contract_precision<fp32>} : vector<4x8xf32>, vector<8x4xf32>, vector<4x4xf32> -> vector<4x4xf32>
    %243 = tpu.concatenate %236, %238, %240, %242 in 1 : vector<4x4xf32>, vector<4x4xf32>, vector<4x4xf32>, vector<4x4xf32> -> vector<4x16xf32>
    %244 = vector.extract_strided_slice %0 {offsets = [96, 0], sizes = [5, 4], strides = [1, 1]} : vector<144x16xf32> to vector<5x4xf32>
    %245 = vector.extract_strided_slice %0 {offsets = [104, 0], sizes = [4, 5], strides = [1, 1]} : vector<144x16xf32> to vector<4x5xf32>
    %246 = vector.extract_strided_slice %243 {offsets = [0, 0], sizes = [4, 8], strides = [1, 1]} : vector<4x16xf32> to vector<4x8xf32>
    %247 = vector.extract_strided_slice %243 {offsets = [0, 8], sizes = [4, 8], strides = [1, 1]} : vector<4x16xf32> to vector<4x8xf32>
    %cst_78 = arith.constant dense<0.000000e+00> : vector<5x16xf32>
    %248 = tpu.matmul %244, %243, %cst_78 {dimension_numbers = #tpu.dot_dimension_numbers<[1], [0], [0], [1], [0, 0, 1, 1], [], []>, precision = #tpu.contract_precision<fp32>} : vector<5x4xf32>, vector<4x16xf32>, vector<5x16xf32> -> vector<5x16xf32>
    %249 = arith.mulf %243, %243 : vector<4x16xf32>
    %cst_79 = arith.constant dense<0.000000e+00> : vector<5x16xf32>
    %250 = tpu.matmul %244, %249, %cst_79 {dimension_numbers = #tpu.dot_dimension_numbers<[1], [0], [0], [1], [0, 0, 1, 1], [], []>, precision = #tpu.contract_precision<fp32>} : vector<5x4xf32>, vector<4x16xf32>, vector<5x16xf32> -> vector<5x16xf32>
    %251 = arith.mulf %246, %247 : vector<4x8xf32>
    %cst_80 = arith.constant dense<0.000000e+00> : vector<5x8xf32>
    %252 = tpu.matmul %244, %251, %cst_80 {dimension_numbers = #tpu.dot_dimension_numbers<[1], [0], [0], [1], [0, 0, 1, 1], [], []>, precision = #tpu.contract_precision<fp32>} : vector<5x4xf32>, vector<4x8xf32>, vector<5x8xf32> -> vector<5x8xf32>
    %cst_81 = arith.constant 0.000000e+00 : f32
    %253 = vector.broadcast %cst_81 : f32 to vector<1x1xf32>
    %cst_82 = arith.constant 0.000000e+00 : f32
    %254 = vector.broadcast %cst_82 : f32 to vector<1x1xf32>
    %255 = vector.extract_strided_slice %248 {offsets = [0, 0], sizes = [5, 4], strides = [1, 1]} : vector<5x16xf32> to vector<5x4xf32>
    %cst_83 = arith.constant dense<0.000000e+00> : vector<5x5xf32>
    %256 = tpu.matmul %255, %245, %cst_83 {dimension_numbers = #tpu.dot_dimension_numbers<[1], [0], [0], [1], [0, 0, 1, 1], [], []>, precision = #tpu.contract_precision<fp32>} : vector<5x4xf32>, vector<4x5xf32>, vector<5x5xf32> -> vector<5x5xf32>
    %257 = vector.extract_strided_slice %248 {offsets = [0, 8], sizes = [5, 4], strides = [1, 1]} : vector<5x16xf32> to vector<5x4xf32>
    %cst_84 = arith.constant dense<0.000000e+00> : vector<5x5xf32>
    %258 = tpu.matmul %257, %245, %cst_84 {dimension_numbers = #tpu.dot_dimension_numbers<[1], [0], [0], [1], [0, 0, 1, 1], [], []>, precision = #tpu.contract_precision<fp32>} : vector<5x4xf32>, vector<4x5xf32>, vector<5x5xf32> -> vector<5x5xf32>
    %259 = vector.extract_strided_slice %250 {offsets = [0, 0], sizes = [5, 4], strides = [1, 1]} : vector<5x16xf32> to vector<5x4xf32>
    %cst_85 = arith.constant dense<0.000000e+00> : vector<5x5xf32>
    %260 = tpu.matmul %259, %245, %cst_85 {dimension_numbers = #tpu.dot_dimension_numbers<[1], [0], [0], [1], [0, 0, 1, 1], [], []>, precision = #tpu.contract_precision<fp32>} : vector<5x4xf32>, vector<4x5xf32>, vector<5x5xf32> -> vector<5x5xf32>
    %261 = vector.extract_strided_slice %250 {offsets = [0, 8], sizes = [5, 4], strides = [1, 1]} : vector<5x16xf32> to vector<5x4xf32>
    %cst_86 = arith.constant dense<0.000000e+00> : vector<5x5xf32>
    %262 = tpu.matmul %261, %245, %cst_86 {dimension_numbers = #tpu.dot_dimension_numbers<[1], [0], [0], [1], [0, 0, 1, 1], [], []>, precision = #tpu.contract_precision<fp32>} : vector<5x4xf32>, vector<4x5xf32>, vector<5x5xf32> -> vector<5x5xf32>
    %263 = vector.extract_strided_slice %252 {offsets = [0, 0], sizes = [5, 4], strides = [1, 1]} : vector<5x8xf32> to vector<5x4xf32>
    %cst_87 = arith.constant dense<0.000000e+00> : vector<5x5xf32>
    %264 = tpu.matmul %263, %245, %cst_87 {dimension_numbers = #tpu.dot_dimension_numbers<[1], [0], [0], [1], [0, 0, 1, 1], [], []>, precision = #tpu.contract_precision<fp32>} : vector<5x4xf32>, vector<4x5xf32>, vector<5x5xf32> -> vector<5x5xf32>
    %265 = arith.mulf %256, %256 : vector<5x5xf32>
    %266 = arith.mulf %258, %258 : vector<5x5xf32>
    %267 = arith.mulf %256, %258 : vector<5x5xf32>
    %268 = arith.subf %264, %267 : vector<5x5xf32>
    %cst_88 = arith.constant 2.000000e+00 : f32
    %269 = vector.broadcast %cst_88 : f32 to vector<5x5xf32>
    %270 = arith.mulf %269, %268 : vector<5x5xf32>
    %cst_89 = arith.constant 8.99999984E-4 : f32
    %271 = vector.broadcast %cst_89 : f32 to vector<5x5xf32>
    %272 = arith.addf %270, %271 : vector<5x5xf32>
    %273 = arith.subf %260, %265 : vector<5x5xf32>
    %274 = arith.subf %262, %266 : vector<5x5xf32>
    %275 = arith.addf %273, %274 : vector<5x5xf32>
    %cst_90 = arith.constant 8.99999984E-4 : f32
    %276 = vector.broadcast %cst_90 : f32 to vector<5x5xf32>
    %277 = arith.addf %275, %276 : vector<5x5xf32>
    %278 = tpu.reciprocal %277 {approx = true} : vector<5x5xf32> -> vector<5x5xf32>
    %279 = arith.mulf %272, %278 : vector<5x5xf32>
    %cst_91 = arith.constant 2.000000e+00 : f32
    %280 = vector.broadcast %cst_91 : f32 to vector<5x5xf32>
    %281 = arith.mulf %280, %267 : vector<5x5xf32>
    %cst_92 = arith.constant 9.99999974E-5 : f32
    %282 = vector.broadcast %cst_92 : f32 to vector<5x5xf32>
    %283 = arith.addf %281, %282 : vector<5x5xf32>
    %284 = arith.mulf %279, %283 : vector<5x5xf32>
    %285 = arith.addf %265, %266 : vector<5x5xf32>
    %cst_93 = arith.constant 9.99999974E-5 : f32
    %286 = vector.broadcast %cst_93 : f32 to vector<5x5xf32>
    %287 = arith.addf %285, %286 : vector<5x5xf32>
    %288 = tpu.reciprocal %287 {approx = true} : vector<5x5xf32> -> vector<5x5xf32>
    %289 = arith.mulf %284, %288 : vector<5x5xf32>
    %290 = vector.shape_cast %289 : vector<5x5xf32> to vector<1x5x5xf32>
    %cst_94 = arith.constant dense<0.000000e+00> : vector<1xf32>
    %291 = vector.multi_reduction <add>, %290, %cst_94 [1, 2] : vector<1x5x5xf32> to vector<1xf32>
    %292 = vector.shape_cast %291 : vector<1xf32> to vector<1x1x1xf32>
    %293 = vector.extract %292[0, 0, 0] : f32 from vector<1x1x1xf32>
    %294 = vector.broadcast %293 : f32 to vector<1x1xf32>
    %295 = arith.addf %253, %294 : vector<1x1xf32>
    %296 = vector.shape_cast %279 : vector<5x5xf32> to vector<1x5x5xf32>
    %cst_95 = arith.constant dense<0.000000e+00> : vector<1xf32>
    %297 = vector.multi_reduction <add>, %296, %cst_95 [1, 2] : vector<1x5x5xf32> to vector<1xf32>
    %298 = vector.shape_cast %297 : vector<1xf32> to vector<1x1x1xf32>
    %299 = vector.extract %298[0, 0, 0] : f32 from vector<1x1x1xf32>
    %300 = vector.broadcast %299 : f32 to vector<1x1xf32>
    %301 = arith.addf %254, %300 : vector<1x1xf32>
    %302 = vector.extract_strided_slice %248 {offsets = [0, 4], sizes = [5, 4], strides = [1, 1]} : vector<5x16xf32> to vector<5x4xf32>
    %cst_96 = arith.constant dense<0.000000e+00> : vector<5x5xf32>
    %303 = tpu.matmul %302, %245, %cst_96 {dimension_numbers = #tpu.dot_dimension_numbers<[1], [0], [0], [1], [0, 0, 1, 1], [], []>, precision = #tpu.contract_precision<fp32>} : vector<5x4xf32>, vector<4x5xf32>, vector<5x5xf32> -> vector<5x5xf32>
    %304 = vector.extract_strided_slice %248 {offsets = [0, 12], sizes = [5, 4], strides = [1, 1]} : vector<5x16xf32> to vector<5x4xf32>
    %cst_97 = arith.constant dense<0.000000e+00> : vector<5x5xf32>
    %305 = tpu.matmul %304, %245, %cst_97 {dimension_numbers = #tpu.dot_dimension_numbers<[1], [0], [0], [1], [0, 0, 1, 1], [], []>, precision = #tpu.contract_precision<fp32>} : vector<5x4xf32>, vector<4x5xf32>, vector<5x5xf32> -> vector<5x5xf32>
    %306 = vector.extract_strided_slice %250 {offsets = [0, 4], sizes = [5, 4], strides = [1, 1]} : vector<5x16xf32> to vector<5x4xf32>
    %cst_98 = arith.constant dense<0.000000e+00> : vector<5x5xf32>
    %307 = tpu.matmul %306, %245, %cst_98 {dimension_numbers = #tpu.dot_dimension_numbers<[1], [0], [0], [1], [0, 0, 1, 1], [], []>, precision = #tpu.contract_precision<fp32>} : vector<5x4xf32>, vector<4x5xf32>, vector<5x5xf32> -> vector<5x5xf32>
    %308 = vector.extract_strided_slice %250 {offsets = [0, 12], sizes = [5, 4], strides = [1, 1]} : vector<5x16xf32> to vector<5x4xf32>
    %cst_99 = arith.constant dense<0.000000e+00> : vector<5x5xf32>
    %309 = tpu.matmul %308, %245, %cst_99 {dimension_numbers = #tpu.dot_dimension_numbers<[1], [0], [0], [1], [0, 0, 1, 1], [], []>, precision = #tpu.contract_precision<fp32>} : vector<5x4xf32>, vector<4x5xf32>, vector<5x5xf32> -> vector<5x5xf32>
    %310 = vector.extract_strided_slice %252 {offsets = [0, 4], sizes = [5, 4], strides = [1, 1]} : vector<5x8xf32> to vector<5x4xf32>
    %cst_100 = arith.constant dense<0.000000e+00> : vector<5x5xf32>
    %311 = tpu.matmul %310, %245, %cst_100 {dimension_numbers = #tpu.dot_dimension_numbers<[1], [0], [0], [1], [0, 0, 1, 1], [], []>, precision = #tpu.contract_precision<fp32>} : vector<5x4xf32>, vector<4x5xf32>, vector<5x5xf32> -> vector<5x5xf32>
    %312 = arith.mulf %303, %303 : vector<5x5xf32>
    %313 = arith.mulf %305, %305 : vector<5x5xf32>
    %314 = arith.mulf %303, %305 : vector<5x5xf32>
    %315 = arith.subf %311, %314 : vector<5x5xf32>
    %cst_101 = arith.constant 2.000000e+00 : f32
    %316 = vector.broadcast %cst_101 : f32 to vector<5x5xf32>
    %317 = arith.mulf %316, %315 : vector<5x5xf32>
    %cst_102 = arith.constant 8.99999984E-4 : f32
    %318 = vector.broadcast %cst_102 : f32 to vector<5x5xf32>
    %319 = arith.addf %317, %318 : vector<5x5xf32>
    %320 = arith.subf %307, %312 : vector<5x5xf32>
    %321 = arith.subf %309, %313 : vector<5x5xf32>
    %322 = arith.addf %320, %321 : vector<5x5xf32>
    %cst_103 = arith.constant 8.99999984E-4 : f32
    %323 = vector.broadcast %cst_103 : f32 to vector<5x5xf32>
    %324 = arith.addf %322, %323 : vector<5x5xf32>
    %325 = tpu.reciprocal %324 {approx = true} : vector<5x5xf32> -> vector<5x5xf32>
    %326 = arith.mulf %319, %325 : vector<5x5xf32>
    %cst_104 = arith.constant 2.000000e+00 : f32
    %327 = vector.broadcast %cst_104 : f32 to vector<5x5xf32>
    %328 = arith.mulf %327, %314 : vector<5x5xf32>
    %cst_105 = arith.constant 9.99999974E-5 : f32
    %329 = vector.broadcast %cst_105 : f32 to vector<5x5xf32>
    %330 = arith.addf %328, %329 : vector<5x5xf32>
    %331 = arith.mulf %326, %330 : vector<5x5xf32>
    %332 = arith.addf %312, %313 : vector<5x5xf32>
    %cst_106 = arith.constant 9.99999974E-5 : f32
    %333 = vector.broadcast %cst_106 : f32 to vector<5x5xf32>
    %334 = arith.addf %332, %333 : vector<5x5xf32>
    %335 = tpu.reciprocal %334 {approx = true} : vector<5x5xf32> -> vector<5x5xf32>
    %336 = arith.mulf %331, %335 : vector<5x5xf32>
    %337 = vector.shape_cast %336 : vector<5x5xf32> to vector<1x5x5xf32>
    %cst_107 = arith.constant dense<0.000000e+00> : vector<1xf32>
    %338 = vector.multi_reduction <add>, %337, %cst_107 [1, 2] : vector<1x5x5xf32> to vector<1xf32>
    %339 = vector.shape_cast %338 : vector<1xf32> to vector<1x1x1xf32>
    %340 = vector.extract %339[0, 0, 0] : f32 from vector<1x1x1xf32>
    %341 = vector.broadcast %340 : f32 to vector<1x1xf32>
    %342 = arith.addf %295, %341 : vector<1x1xf32>
    %343 = vector.shape_cast %326 : vector<5x5xf32> to vector<1x5x5xf32>
    %cst_108 = arith.constant dense<0.000000e+00> : vector<1xf32>
    %344 = vector.multi_reduction <add>, %343, %cst_108 [1, 2] : vector<1x5x5xf32> to vector<1xf32>
    %345 = vector.shape_cast %344 : vector<1xf32> to vector<1x1x1xf32>
    %346 = vector.extract %345[0, 0, 0] : f32 from vector<1x1x1xf32>
    %347 = vector.broadcast %346 : f32 to vector<1x1xf32>
    %348 = arith.addf %301, %347 : vector<1x1xf32>
    %cst_109 = arith.constant 2.000000e-02 : f32
    %349 = vector.broadcast %cst_109 : f32 to vector<1x1xf32>
    %350 = arith.mulf %342, %349 : vector<1x1xf32>
    %cst_110 = arith.constant 2.000000e-02 : f32
    %351 = vector.broadcast %cst_110 : f32 to vector<1x1xf32>
    %352 = arith.mulf %348, %351 : vector<1x1xf32>
    %353 = vector.extract_strided_slice %0 {offsets = [112, 0], sizes = [2, 4], strides = [1, 1]} : vector<144x16xf32> to vector<2x4xf32>
    %354 = vector.extract_strided_slice %0 {offsets = [120, 0], sizes = [4, 2], strides = [1, 1]} : vector<144x16xf32> to vector<4x2xf32>
    %cst_111 = arith.constant dense<0.000000e+00> : vector<2x16xf32>
    %355 = tpu.matmul %353, %243, %cst_111 {dimension_numbers = #tpu.dot_dimension_numbers<[1], [0], [0], [1], [0, 0, 1, 1], [], []>, precision = #tpu.contract_precision<fp32>} : vector<2x4xf32>, vector<4x16xf32>, vector<2x16xf32> -> vector<2x16xf32>
    %356 = vector.extract_strided_slice %355 {offsets = [0, 0], sizes = [2, 4], strides = [1, 1]} : vector<2x16xf32> to vector<2x4xf32>
    %cst_112 = arith.constant dense<0.000000e+00> : vector<2x2xf32>
    %357 = tpu.matmul %356, %354, %cst_112 {dimension_numbers = #tpu.dot_dimension_numbers<[1], [0], [0], [1], [0, 0, 1, 1], [], []>, precision = #tpu.contract_precision<fp32>} : vector<2x4xf32>, vector<4x2xf32>, vector<2x2xf32> -> vector<2x2xf32>
    %358 = vector.extract_strided_slice %355 {offsets = [0, 4], sizes = [2, 4], strides = [1, 1]} : vector<2x16xf32> to vector<2x4xf32>
    %cst_113 = arith.constant dense<0.000000e+00> : vector<2x2xf32>
    %359 = tpu.matmul %358, %354, %cst_113 {dimension_numbers = #tpu.dot_dimension_numbers<[1], [0], [0], [1], [0, 0, 1, 1], [], []>, precision = #tpu.contract_precision<fp32>} : vector<2x4xf32>, vector<4x2xf32>, vector<2x2xf32> -> vector<2x2xf32>
    %360 = vector.extract_strided_slice %355 {offsets = [0, 8], sizes = [2, 4], strides = [1, 1]} : vector<2x16xf32> to vector<2x4xf32>
    %cst_114 = arith.constant dense<0.000000e+00> : vector<2x2xf32>
    %361 = tpu.matmul %360, %354, %cst_114 {dimension_numbers = #tpu.dot_dimension_numbers<[1], [0], [0], [1], [0, 0, 1, 1], [], []>, precision = #tpu.contract_precision<fp32>} : vector<2x4xf32>, vector<4x2xf32>, vector<2x2xf32> -> vector<2x2xf32>
    %362 = vector.extract_strided_slice %355 {offsets = [0, 12], sizes = [2, 4], strides = [1, 1]} : vector<2x16xf32> to vector<2x4xf32>
    %cst_115 = arith.constant dense<0.000000e+00> : vector<2x2xf32>
    %363 = tpu.matmul %362, %354, %cst_115 {dimension_numbers = #tpu.dot_dimension_numbers<[1], [0], [0], [1], [0, 0, 1, 1], [], []>, precision = #tpu.contract_precision<fp32>} : vector<2x4xf32>, vector<4x2xf32>, vector<2x2xf32> -> vector<2x2xf32>
    %364 = tpu.concatenate %357, %359, %361, %363 in 1 : vector<2x2xf32>, vector<2x2xf32>, vector<2x2xf32>, vector<2x2xf32> -> vector<2x8xf32>
    %365 = vector.extract_strided_slice %0 {offsets = [128, 0], sizes = [3, 2], strides = [1, 1]} : vector<144x16xf32> to vector<3x2xf32>
    %366 = vector.extract_strided_slice %0 {offsets = [136, 0], sizes = [2, 3], strides = [1, 1]} : vector<144x16xf32> to vector<2x3xf32>
    %367 = vector.extract_strided_slice %364 {offsets = [0, 0], sizes = [2, 4], strides = [1, 1]} : vector<2x8xf32> to vector<2x4xf32>
    %368 = vector.extract_strided_slice %364 {offsets = [0, 4], sizes = [2, 4], strides = [1, 1]} : vector<2x8xf32> to vector<2x4xf32>
    %cst_116 = arith.constant dense<0.000000e+00> : vector<3x8xf32>
    %369 = tpu.matmul %365, %364, %cst_116 {dimension_numbers = #tpu.dot_dimension_numbers<[1], [0], [0], [1], [0, 0, 1, 1], [], []>, precision = #tpu.contract_precision<fp32>} : vector<3x2xf32>, vector<2x8xf32>, vector<3x8xf32> -> vector<3x8xf32>
    %370 = arith.mulf %364, %364 : vector<2x8xf32>
    %cst_117 = arith.constant dense<0.000000e+00> : vector<3x8xf32>
    %371 = tpu.matmul %365, %370, %cst_117 {dimension_numbers = #tpu.dot_dimension_numbers<[1], [0], [0], [1], [0, 0, 1, 1], [], []>, precision = #tpu.contract_precision<fp32>} : vector<3x2xf32>, vector<2x8xf32>, vector<3x8xf32> -> vector<3x8xf32>
    %372 = arith.mulf %367, %368 : vector<2x4xf32>
    %cst_118 = arith.constant dense<0.000000e+00> : vector<3x4xf32>
    %373 = tpu.matmul %365, %372, %cst_118 {dimension_numbers = #tpu.dot_dimension_numbers<[1], [0], [0], [1], [0, 0, 1, 1], [], []>, precision = #tpu.contract_precision<fp32>} : vector<3x2xf32>, vector<2x4xf32>, vector<3x4xf32> -> vector<3x4xf32>
    %cst_119 = arith.constant 0.000000e+00 : f32
    %374 = vector.broadcast %cst_119 : f32 to vector<1x1xf32>
    %cst_120 = arith.constant 0.000000e+00 : f32
    %375 = vector.broadcast %cst_120 : f32 to vector<1x1xf32>
    %376 = vector.extract_strided_slice %369 {offsets = [0, 0], sizes = [3, 2], strides = [1, 1]} : vector<3x8xf32> to vector<3x2xf32>
    %cst_121 = arith.constant dense<0.000000e+00> : vector<3x3xf32>
    %377 = tpu.matmul %376, %366, %cst_121 {dimension_numbers = #tpu.dot_dimension_numbers<[1], [0], [0], [1], [0, 0, 1, 1], [], []>, precision = #tpu.contract_precision<fp32>} : vector<3x2xf32>, vector<2x3xf32>, vector<3x3xf32> -> vector<3x3xf32>
    %378 = vector.extract_strided_slice %369 {offsets = [0, 4], sizes = [3, 2], strides = [1, 1]} : vector<3x8xf32> to vector<3x2xf32>
    %cst_122 = arith.constant dense<0.000000e+00> : vector<3x3xf32>
    %379 = tpu.matmul %378, %366, %cst_122 {dimension_numbers = #tpu.dot_dimension_numbers<[1], [0], [0], [1], [0, 0, 1, 1], [], []>, precision = #tpu.contract_precision<fp32>} : vector<3x2xf32>, vector<2x3xf32>, vector<3x3xf32> -> vector<3x3xf32>
    %380 = vector.extract_strided_slice %371 {offsets = [0, 0], sizes = [3, 2], strides = [1, 1]} : vector<3x8xf32> to vector<3x2xf32>
    %cst_123 = arith.constant dense<0.000000e+00> : vector<3x3xf32>
    %381 = tpu.matmul %380, %366, %cst_123 {dimension_numbers = #tpu.dot_dimension_numbers<[1], [0], [0], [1], [0, 0, 1, 1], [], []>, precision = #tpu.contract_precision<fp32>} : vector<3x2xf32>, vector<2x3xf32>, vector<3x3xf32> -> vector<3x3xf32>
    %382 = vector.extract_strided_slice %371 {offsets = [0, 4], sizes = [3, 2], strides = [1, 1]} : vector<3x8xf32> to vector<3x2xf32>
    %cst_124 = arith.constant dense<0.000000e+00> : vector<3x3xf32>
    %383 = tpu.matmul %382, %366, %cst_124 {dimension_numbers = #tpu.dot_dimension_numbers<[1], [0], [0], [1], [0, 0, 1, 1], [], []>, precision = #tpu.contract_precision<fp32>} : vector<3x2xf32>, vector<2x3xf32>, vector<3x3xf32> -> vector<3x3xf32>
    %384 = vector.extract_strided_slice %373 {offsets = [0, 0], sizes = [3, 2], strides = [1, 1]} : vector<3x4xf32> to vector<3x2xf32>
    %cst_125 = arith.constant dense<0.000000e+00> : vector<3x3xf32>
    %385 = tpu.matmul %384, %366, %cst_125 {dimension_numbers = #tpu.dot_dimension_numbers<[1], [0], [0], [1], [0, 0, 1, 1], [], []>, precision = #tpu.contract_precision<fp32>} : vector<3x2xf32>, vector<2x3xf32>, vector<3x3xf32> -> vector<3x3xf32>
    %386 = arith.mulf %377, %377 : vector<3x3xf32>
    %387 = arith.mulf %379, %379 : vector<3x3xf32>
    %388 = arith.mulf %377, %379 : vector<3x3xf32>
    %389 = arith.subf %385, %388 : vector<3x3xf32>
    %cst_126 = arith.constant 2.000000e+00 : f32
    %390 = vector.broadcast %cst_126 : f32 to vector<3x3xf32>
    %391 = arith.mulf %390, %389 : vector<3x3xf32>
    %cst_127 = arith.constant 8.99999984E-4 : f32
    %392 = vector.broadcast %cst_127 : f32 to vector<3x3xf32>
    %393 = arith.addf %391, %392 : vector<3x3xf32>
    %394 = arith.subf %381, %386 : vector<3x3xf32>
    %395 = arith.subf %383, %387 : vector<3x3xf32>
    %396 = arith.addf %394, %395 : vector<3x3xf32>
    %cst_128 = arith.constant 8.99999984E-4 : f32
    %397 = vector.broadcast %cst_128 : f32 to vector<3x3xf32>
    %398 = arith.addf %396, %397 : vector<3x3xf32>
    %399 = tpu.reciprocal %398 {approx = true} : vector<3x3xf32> -> vector<3x3xf32>
    %400 = arith.mulf %393, %399 : vector<3x3xf32>
    %cst_129 = arith.constant 2.000000e+00 : f32
    %401 = vector.broadcast %cst_129 : f32 to vector<3x3xf32>
    %402 = arith.mulf %401, %388 : vector<3x3xf32>
    %cst_130 = arith.constant 9.99999974E-5 : f32
    %403 = vector.broadcast %cst_130 : f32 to vector<3x3xf32>
    %404 = arith.addf %402, %403 : vector<3x3xf32>
    %405 = arith.mulf %400, %404 : vector<3x3xf32>
    %406 = arith.addf %386, %387 : vector<3x3xf32>
    %cst_131 = arith.constant 9.99999974E-5 : f32
    %407 = vector.broadcast %cst_131 : f32 to vector<3x3xf32>
    %408 = arith.addf %406, %407 : vector<3x3xf32>
    %409 = tpu.reciprocal %408 {approx = true} : vector<3x3xf32> -> vector<3x3xf32>
    %410 = arith.mulf %405, %409 : vector<3x3xf32>
    %411 = vector.shape_cast %410 : vector<3x3xf32> to vector<1x3x3xf32>
    %cst_132 = arith.constant dense<0.000000e+00> : vector<1xf32>
    %412 = vector.multi_reduction <add>, %411, %cst_132 [1, 2] : vector<1x3x3xf32> to vector<1xf32>
    %413 = vector.shape_cast %412 : vector<1xf32> to vector<1x1x1xf32>
    %414 = vector.extract %413[0, 0, 0] : f32 from vector<1x1x1xf32>
    %415 = vector.broadcast %414 : f32 to vector<1x1xf32>
    %416 = arith.addf %374, %415 : vector<1x1xf32>
    %417 = vector.shape_cast %400 : vector<3x3xf32> to vector<1x3x3xf32>
    %cst_133 = arith.constant dense<0.000000e+00> : vector<1xf32>
    %418 = vector.multi_reduction <add>, %417, %cst_133 [1, 2] : vector<1x3x3xf32> to vector<1xf32>
    %419 = vector.shape_cast %418 : vector<1xf32> to vector<1x1x1xf32>
    %420 = vector.extract %419[0, 0, 0] : f32 from vector<1x1x1xf32>
    %421 = vector.broadcast %420 : f32 to vector<1x1xf32>
    %422 = arith.addf %375, %421 : vector<1x1xf32>
    %423 = vector.extract_strided_slice %369 {offsets = [0, 2], sizes = [3, 2], strides = [1, 1]} : vector<3x8xf32> to vector<3x2xf32>
    %cst_134 = arith.constant dense<0.000000e+00> : vector<3x3xf32>
    %424 = tpu.matmul %423, %366, %cst_134 {dimension_numbers = #tpu.dot_dimension_numbers<[1], [0], [0], [1], [0, 0, 1, 1], [], []>, precision = #tpu.contract_precision<fp32>} : vector<3x2xf32>, vector<2x3xf32>, vector<3x3xf32> -> vector<3x3xf32>
    %425 = vector.extract_strided_slice %369 {offsets = [0, 6], sizes = [3, 2], strides = [1, 1]} : vector<3x8xf32> to vector<3x2xf32>
    %cst_135 = arith.constant dense<0.000000e+00> : vector<3x3xf32>
    %426 = tpu.matmul %425, %366, %cst_135 {dimension_numbers = #tpu.dot_dimension_numbers<[1], [0], [0], [1], [0, 0, 1, 1], [], []>, precision = #tpu.contract_precision<fp32>} : vector<3x2xf32>, vector<2x3xf32>, vector<3x3xf32> -> vector<3x3xf32>
    %427 = vector.extract_strided_slice %371 {offsets = [0, 2], sizes = [3, 2], strides = [1, 1]} : vector<3x8xf32> to vector<3x2xf32>
    %cst_136 = arith.constant dense<0.000000e+00> : vector<3x3xf32>
    %428 = tpu.matmul %427, %366, %cst_136 {dimension_numbers = #tpu.dot_dimension_numbers<[1], [0], [0], [1], [0, 0, 1, 1], [], []>, precision = #tpu.contract_precision<fp32>} : vector<3x2xf32>, vector<2x3xf32>, vector<3x3xf32> -> vector<3x3xf32>
    %429 = vector.extract_strided_slice %371 {offsets = [0, 6], sizes = [3, 2], strides = [1, 1]} : vector<3x8xf32> to vector<3x2xf32>
    %cst_137 = arith.constant dense<0.000000e+00> : vector<3x3xf32>
    %430 = tpu.matmul %429, %366, %cst_137 {dimension_numbers = #tpu.dot_dimension_numbers<[1], [0], [0], [1], [0, 0, 1, 1], [], []>, precision = #tpu.contract_precision<fp32>} : vector<3x2xf32>, vector<2x3xf32>, vector<3x3xf32> -> vector<3x3xf32>
    %431 = vector.extract_strided_slice %373 {offsets = [0, 2], sizes = [3, 2], strides = [1, 1]} : vector<3x4xf32> to vector<3x2xf32>
    %cst_138 = arith.constant dense<0.000000e+00> : vector<3x3xf32>
    %432 = tpu.matmul %431, %366, %cst_138 {dimension_numbers = #tpu.dot_dimension_numbers<[1], [0], [0], [1], [0, 0, 1, 1], [], []>, precision = #tpu.contract_precision<fp32>} : vector<3x2xf32>, vector<2x3xf32>, vector<3x3xf32> -> vector<3x3xf32>
    %433 = arith.mulf %424, %424 : vector<3x3xf32>
    %434 = arith.mulf %426, %426 : vector<3x3xf32>
    %435 = arith.mulf %424, %426 : vector<3x3xf32>
    %436 = arith.subf %432, %435 : vector<3x3xf32>
    %cst_139 = arith.constant 2.000000e+00 : f32
    %437 = vector.broadcast %cst_139 : f32 to vector<3x3xf32>
    %438 = arith.mulf %437, %436 : vector<3x3xf32>
    %cst_140 = arith.constant 8.99999984E-4 : f32
    %439 = vector.broadcast %cst_140 : f32 to vector<3x3xf32>
    %440 = arith.addf %438, %439 : vector<3x3xf32>
    %441 = arith.subf %428, %433 : vector<3x3xf32>
    %442 = arith.subf %430, %434 : vector<3x3xf32>
    %443 = arith.addf %441, %442 : vector<3x3xf32>
    %cst_141 = arith.constant 8.99999984E-4 : f32
    %444 = vector.broadcast %cst_141 : f32 to vector<3x3xf32>
    %445 = arith.addf %443, %444 : vector<3x3xf32>
    %446 = tpu.reciprocal %445 {approx = true} : vector<3x3xf32> -> vector<3x3xf32>
    %447 = arith.mulf %440, %446 : vector<3x3xf32>
    %cst_142 = arith.constant 2.000000e+00 : f32
    %448 = vector.broadcast %cst_142 : f32 to vector<3x3xf32>
    %449 = arith.mulf %448, %435 : vector<3x3xf32>
    %cst_143 = arith.constant 9.99999974E-5 : f32
    %450 = vector.broadcast %cst_143 : f32 to vector<3x3xf32>
    %451 = arith.addf %449, %450 : vector<3x3xf32>
    %452 = arith.mulf %447, %451 : vector<3x3xf32>
    %453 = arith.addf %433, %434 : vector<3x3xf32>
    %cst_144 = arith.constant 9.99999974E-5 : f32
    %454 = vector.broadcast %cst_144 : f32 to vector<3x3xf32>
    %455 = arith.addf %453, %454 : vector<3x3xf32>
    %456 = tpu.reciprocal %455 {approx = true} : vector<3x3xf32> -> vector<3x3xf32>
    %457 = arith.mulf %452, %456 : vector<3x3xf32>
    %458 = vector.shape_cast %457 : vector<3x3xf32> to vector<1x3x3xf32>
    %cst_145 = arith.constant dense<0.000000e+00> : vector<1xf32>
    %459 = vector.multi_reduction <add>, %458, %cst_145 [1, 2] : vector<1x3x3xf32> to vector<1xf32>
    %460 = vector.shape_cast %459 : vector<1xf32> to vector<1x1x1xf32>
    %461 = vector.extract %460[0, 0, 0] : f32 from vector<1x1x1xf32>
    %462 = vector.broadcast %461 : f32 to vector<1x1xf32>
    %463 = arith.addf %416, %462 : vector<1x1xf32>
    %464 = vector.shape_cast %447 : vector<3x3xf32> to vector<1x3x3xf32>
    %cst_146 = arith.constant dense<0.000000e+00> : vector<1xf32>
    %465 = vector.multi_reduction <add>, %464, %cst_146 [1, 2] : vector<1x3x3xf32> to vector<1xf32>
    %466 = vector.shape_cast %465 : vector<1xf32> to vector<1x1x1xf32>
    %467 = vector.extract %466[0, 0, 0] : f32 from vector<1x1x1xf32>
    %468 = vector.broadcast %467 : f32 to vector<1x1xf32>
    %469 = arith.addf %422, %468 : vector<1x1xf32>
    %cst_147 = arith.constant 0.055555556 : f32
    %470 = vector.broadcast %cst_147 : f32 to vector<1x1xf32>
    %471 = arith.mulf %463, %470 : vector<1x1xf32>
    %cst_148 = arith.constant 0.055555556 : f32
    %472 = vector.broadcast %cst_148 : f32 to vector<1x1xf32>
    %473 = arith.mulf %469, %472 : vector<1x1xf32>
    %474 = tpu.iota {dimensions = array<i32: 1>} : vector<1x8xi32>
    %cst_149 = arith.constant 0.000000e+00 : f32
    %475 = vector.broadcast %cst_149 : f32 to vector<1x8xf32>
    %c0_i32 = arith.constant 0 : i32
    %476 = vector.broadcast %c0_i32 : i32 to vector<1x8xi32>
    %477 = arith.cmpi eq, %474, %476 : vector<1x8xi32>
    %478 = vector.shape_cast %108 : vector<1x1xf32> to vector<1x1xf32>
    %479 = vector.broadcast %478 : vector<1x1xf32> to vector<1x8xf32>
    %480 = arith.select %477, %479, %475 : vector<1x8xi1>, vector<1x8xf32>
    %c1_i32 = arith.constant 1 : i32
    %481 = vector.broadcast %c1_i32 : i32 to vector<1x8xi32>
    %482 = arith.cmpi eq, %474, %481 : vector<1x8xi32>
    %483 = vector.shape_cast %229 : vector<1x1xf32> to vector<1x1xf32>
    %484 = vector.broadcast %483 : vector<1x1xf32> to vector<1x8xf32>
    %485 = arith.select %482, %484, %480 : vector<1x8xi1>, vector<1x8xf32>
    %c2_i32 = arith.constant 2 : i32
    %486 = vector.broadcast %c2_i32 : i32 to vector<1x8xi32>
    %487 = arith.cmpi eq, %474, %486 : vector<1x8xi32>
    %488 = vector.shape_cast %350 : vector<1x1xf32> to vector<1x1xf32>
    %489 = vector.broadcast %488 : vector<1x1xf32> to vector<1x8xf32>
    %490 = arith.select %487, %489, %485 : vector<1x8xi1>, vector<1x8xf32>
    %c3_i32 = arith.constant 3 : i32
    %491 = vector.broadcast %c3_i32 : i32 to vector<1x8xi32>
    %492 = arith.cmpi eq, %474, %491 : vector<1x8xi32>
    %493 = vector.shape_cast %471 : vector<1x1xf32> to vector<1x1xf32>
    %494 = vector.broadcast %493 : vector<1x1xf32> to vector<1x8xf32>
    %495 = arith.select %492, %494, %490 : vector<1x8xi1>, vector<1x8xf32>
    %c4_i32 = arith.constant 4 : i32
    %496 = vector.broadcast %c4_i32 : i32 to vector<1x8xi32>
    %497 = arith.cmpi eq, %474, %496 : vector<1x8xi32>
    %498 = vector.shape_cast %110 : vector<1x1xf32> to vector<1x1xf32>
    %499 = vector.broadcast %498 : vector<1x1xf32> to vector<1x8xf32>
    %500 = arith.select %497, %499, %495 : vector<1x8xi1>, vector<1x8xf32>
    %c5_i32 = arith.constant 5 : i32
    %501 = vector.broadcast %c5_i32 : i32 to vector<1x8xi32>
    %502 = arith.cmpi eq, %474, %501 : vector<1x8xi32>
    %503 = vector.shape_cast %231 : vector<1x1xf32> to vector<1x1xf32>
    %504 = vector.broadcast %503 : vector<1x1xf32> to vector<1x8xf32>
    %505 = arith.select %502, %504, %500 : vector<1x8xi1>, vector<1x8xf32>
    %c6_i32 = arith.constant 6 : i32
    %506 = vector.broadcast %c6_i32 : i32 to vector<1x8xi32>
    %507 = arith.cmpi eq, %474, %506 : vector<1x8xi32>
    %508 = vector.shape_cast %352 : vector<1x1xf32> to vector<1x1xf32>
    %509 = vector.broadcast %508 : vector<1x1xf32> to vector<1x8xf32>
    %510 = arith.select %507, %509, %505 : vector<1x8xi1>, vector<1x8xf32>
    %c7_i32 = arith.constant 7 : i32
    %511 = vector.broadcast %c7_i32 : i32 to vector<1x8xi32>
    %512 = arith.cmpi eq, %474, %511 : vector<1x8xi32>
    %513 = vector.shape_cast %473 : vector<1x1xf32> to vector<1x1xf32>
    %514 = vector.broadcast %513 : vector<1x1xf32> to vector<1x8xf32>
    %515 = arith.select %512, %514, %510 : vector<1x8xi1>, vector<1x8xf32>
    %c0_150 = arith.constant 0 : index
    %c0_151 = arith.constant 0 : index
    %516 = vector.load %arg2[%c0_150, %c0_151] : memref<1x8xf32, #tpu.memory_space<vmem>>, vector<1x8xf32>
    tpu.vector_store %arg2[%c0_150, %c0_151], %515 {strides = array<i32>} : memref<1x8xf32, #tpu.memory_space<vmem>>, vector<1x8xf32>,
    return
  }
}

</mosaic_0001>

<bundles_post_ra>
// kernel: fn.1
= control target key start
LH: loop header
LB: loop body
LE: loop exit
PB: predicated region body
PF: predicated region fallthrough
CT: control target
= control target key end

     0   :  { %vm31_vm0 = vcmask 130048   ;;  %s36605_s15 = smov 96   ;;  %s36606_s21 = smov 80   ;;  %vm36609_vm1 = vmmov 0   ;;  %vm9109_vm2 = vcmask 64512   ;;  %vm9112_vm3 = vcmask 195584   ;;  %s38903_s0 = inlined_call_operand.vmem [shape: f32[16,64], index: 0, kind: input, shape index: {}]   ;;  %s38904_s1 = inlined_call_operand.vmem [shape: f32[144,16], index: 1, kind: input, shape index: {}]   ;;  %s38905_s2 = inlined_call_operand.vmem [shape: f32[1,8], index: 2, kind: output, shape index: {}]  }
   0x1   :  { %v36642_v0 = vld [vmem:[%s38903_s0] sm:$0xff]  ;;  %v36647_v1 = vld [vmem:[%s38903_s0 + $0x8] sm:$0xff]  ;;  %v36659_v5 = vld [vmem:[%s38904_s1 + $0x10] sm:$0xff]  ;;  %s36607_s22 = smov 112   ;;  %s36611_s29 = smov 16   ;;  %vm13112_vm4 = vcmask 65536  }
   0x2   :  { %v11_v2 = vld [vmem:[%s38904_s1] sm:$0xff]  ;;  %1046 = vrot.lane.b32.xlu0 %v36642_v0, %s36605_s15  ;;  %v39_v3 = vand.u32 4294901760, %v36642_v0  ;;  %v42_v4 = vand.u32 4294901760, %v36647_v1  ;;  %v36664_v6 = vld [vmem:[%s38904_s1 + $0x18] sm:$0xff]  ;;  %v1563_v8 = vand.u32 4294901760, %v36659_v5  ;;  %v12_v10 = vld [vmem:[%s38904_s1 + $0x8] sm:$0xff]  ;;  %v540_v13 = vmul.f32 %v36642_v0, %v36642_v0 }
   0x3   :  { %v33_v7 = vsel %vm31_vm0, %v11_v2, 0  ;;  %v1566_v9 = vand.u32 4294901760, %v36664_v6  ;;  %v541_v16 = vmul.f32 %v36647_v1, %v36647_v1  ;;  %v36_v18 = vsel %vm31_vm0, %v12_v10, 0  ;;  %s36612_s30 = smov 8   ;;  %s36613_s5 = smov 24  }
   0x4   :  { %v36672_v11 = vpack.c.bf16 %v42_v4, %v39_v3  ;;  %v36674_v12 = vand.u32 4294901760, %v33_v7  ;;  %v36681_v14 = vsub.f32 %v36659_v5, %v1563_v8  ;;  %v127_v19 = vsub.f32 %v36642_v0, %v39_v3  ;;  %s36614_s10 = smov 104   ;;  %s36615_s11 = smov 120  }
   0x5   :  { %v36686_v15 = vsub.f32 %v36664_v6, %v1566_v9  ;;  %v36706_v23 = vand.u32 4294901760, %v36_v18  ;;  %v134_v26 = vsub.f32 %v36647_v1, %v42_v4  ;;  %v543_v32 = vand.u32 4294901760, %v540_v13  ;;  %s36616_s16 = smov 4   ;;  %s36617_s17 = smov 12  }
   0x6   :  { %1048 = vrot.lane.b32.xlu0 %v36647_v1, %s36605_s15  ;;  %35435 = vmatprep.subr.bf16.mxu1 %v36672_v11  ;;  %v36694_v17 = vsub.f32 %v33_v7, %v36674_v12  ;;  %v1652_v20 = vand.u32 4294901760, %v36681_v14  ;;  %v128_v25 = vand.u32 4294901760, %v127_v19  ;;  %v546_v33 = vand.u32 4294901760, %v541_v16  ;;  %s36620_s27 = smov 2   ;;  %s36621_s28 = smov 6  }
   0x7   :  { %35447 = vmatprep.subr.bf16.mxu0 %v36672_v11  ;;  %35437 = vmatpush3.bf16.msra.mxu1 %v36672_v11  ;;  %v1659_v21 = vand.u32 4294901760, %v36686_v15  ;;  %v36704_v22 = vpack.c.bf16 %v36686_v15, %v36681_v14  ;;  %v36720_v28 = vsub.f32 %v36_v18, %v36706_v23  ;;  %v135_v31 = vand.u32 4294901760, %v134_v26 }
   0x8   :  { %35449 = vmatpush3.bf16.msra.mxu0 %v36672_v11  ;;  %v36710_v24 = vand.u32 4294901760, %v36694_v17  ;;  %v129_v30 = vsub.f32 %v127_v19, %v128_v25  ;;  %v631_v42 = vsub.f32 %v540_v13, %v543_v32  ;;  %v638_v43 = vsub.f32 %v541_v16, %v546_v33 }
   0x9   :  { %v36717_v27 = vpack.c.bf16 %v1659_v21, %v1652_v20  ;;  %v36726_v34 = vand.u32 4294901760, %v36720_v28  ;;  %v136_v37 = vsub.f32 %v134_v26, %v135_v31  ;;  %v36728_v38 = vpack.c.bf16 %v135_v31, %v128_v25 }
   0xa   :  { %v108_v29 = vsub.f32 %v36694_v17, %v36710_v24  ;;  %33233 = vmatprep.mubr.f32.mxu0 %v36710_v24  ;;  %v130_v36 = vand.u32 4294901760, %v129_v30  ;;  %v36740_v45 = vpack.c.bf16 %v134_v26, %v127_v19  ;;  %v632_v46 = vand.u32 4294901760, %v631_v42 }
   0xb   :  { %v118_v39 = vsub.f32 %v36720_v28, %v36726_v34  ;;  %33234 = vmatmul.mubr.f32.vlgmr.msra.gmra.mrb[0].mxu0 %v36726_v34  ;;  %v137_v40 = vand.u32 4294901760, %v136_v37  ;;  %35451 = vmatprep.subr.bf16.mxu0 %v36728_v38  ;;  %v639_v47 = vand.u32 4294901760, %v638_v43  ;;  %v35458_v48 = vpack.c.bf16 %v546_v33, %v543_v32 }
   0xc   :  { %v109_v35 = vand.u32 4294901760, %v108_v29  ;;  %35453 = vmatpush3.bf16.msra.mxu0 %v36728_v38  ;;  %33240 = vmatprep.mubr.f32.mxu0 %v36674_v12  ;;  %v633_v49 = vsub.f32 %v631_v42, %v632_v46  ;;  %v35466_v54 = vpack.c.bf16 %v638_v43, %v631_v42  ;;  %v36768_v56 = vpack.c.bf16 %v1566_v9, %v1563_v8 }
   0xd   :  { %v36734_v41 = vand.u32 4294901760, %v118_v39  ;;  %v36738_v44 = vpack.c.bf16 %v137_v40, %v130_v36  ;;  %35455 = vmatprep.subr.bf16.mxu0 %v36672_v11  ;;  %v640_v50 = vsub.f32 %v638_v43, %v639_v47  ;;  %v35474_v55 = vpack.c.bf16 %v639_v47, %v632_v46 }
   0xe   :  { %33212 = vmatprep.mubr.f32.mxu1 %v109_v35  ;;  %v634_v51 = vand.u32 4294901760, %v633_v49  ;;  %v1653_v57 = vsub.f32 %v36681_v14, %v1652_v20  ;;  %v1660_v58 = vsub.f32 %v36686_v15, %v1659_v21  ;;  %vm13110_vm5 = vcmask 72704  }
   0xf   :  { %33213 = vmatmul.mubr.f32.vlgmr.msra.gmra.mrb[0].mxu1 %v36734_v41  ;;  %35439 = vmatprep.subr.bf16.mxu1 %v36738_v44  ;;  %v641_v52 = vand.u32 4294901760, %v640_v50  ;;  %vm17953_vm6 = vcmask 31744   ;;  %vm17956_vm7 = vcmask 97280   ;;  %vm17961_vm8 = vcmask 1043456  }
  0x10   :  { %33219 = vmatprep.mubr.f32.mxu1 %v36674_v12  ;;  %35441 = vmatpush3.bf16.msra.mxu1 %v36738_v44  ;;  %v1654_v59 = vand.u32 4294901760, %v1653_v57  ;;  %v1661_v60 = vand.u32 4294901760, %v1660_v58  ;;  %vm26166_vm9 = vcmask 15360   ;;  %vm26169_vm10 = vcmask 48128  }
  0x11   :  { %35443 = vmatprep.subr.bf16.mxu1 %v36740_v45  ;;  %v35462_v53 = vpack.c.bf16 %v641_v52, %v634_v51  ;;  %vm26174_vm11 = vcmask 1041408   ;;  %vm21583_vm12 = vcmask 36864   ;;  %vm29796_vm13 = vcmask 18432  }
  0x12   :  { %v36779_v61 = vpack.c.bf16 %v1661_v60, %v1654_v59 }
  0x13   :  { %33241 = vmatmul.mubr.f32.vlgmr.msra.gmra.mrb[0].mxu0 %v36706_v23 }
  0x14   :  { %35457 = vmatpush3.bf16.msra.mxu0 %v36672_v11  ;;  %33247 = vmatprep.mubr.f32.mxu0 %v36674_v12 }
  0x17   :  { %33220 = vmatmul.mubr.f32.vlgmr.msra.gmra.mrb[0].mxu1 %v36706_v23 }
  0x18   :  { %35445 = vmatpush3.bf16.msra.mxu1 %v36740_v45  ;;  %33226 = vmatprep.mubr.f32.mxu1 %v36694_v17 }
  0x19   :  { %35459 = vmatprep.subr.bf16.mxu1 %v35458_v48 }
  0x1b   :  { %33248 = vmatmul.mubr.f32.vlgmr.msra.gmra.mrb[0].mxu0 %v36706_v23 }
  0x1c   :  { %33296 = vmatprep.mubr.f32.mxu0 %v109_v35 }
  0x1f   :  { %33227 = vmatmul.mubr.f32.vlgmr.msra.gmra.mrb[0].mxu1 %v36720_v28 }
  0x20   :  { %35461 = vmatpush3.bf16.msra.mxu1 %v35458_v48  ;;  %33254 = vmatprep.mubr.f32.mxu1 %v109_v35 }
  0x21   :  { %35463 = vmatprep.subr.bf16.mxu1 %v35462_v53 }
  0x23   :  { %33255 = vmatmul.mubr.f32.vlgmr.msra.gmra.mrb[2].mxu1 %v36734_v41 }
  0x24   :  { %35465 = vmatpush3.bf16.msra.mxu1 %v35462_v53  ;;  %33261 = vmatprep.mubr.f32.mxu1 %v36674_v12 }
  0x25   :  { %35467 = vmatprep.subr.bf16.mxu1 %v35466_v54 }
  0x2b   :  { %33262 = vmatmul.mubr.f32.vlgmr.msra.gmra.mrb[2].mxu1 %v36706_v23 }
  0x2c   :  { %35469 = vmatpush3.bf16.msra.mxu1 %v35466_v54  ;;  %33268 = vmatprep.mubr.f32.mxu1 %v36694_v17 }
  0x2d   :  { %35471 = vmatprep.subr.bf16.mxu1 %v35458_v48 }
  0x33   :  { %33269 = vmatmul.mubr.f32.vlgmr.msra.gmra.mrb[2].mxu1 %v36720_v28 }
  0x34   :  { %35473 = vmatpush3.bf16.msra.mxu1 %v35458_v48  ;;  %33275 = vmatprep.mubr.f32.mxu1 %v36710_v24 }
  0x35   :  { %35475 = vmatprep.subr.bf16.mxu1 %v35474_v55 }
  0x3b   :  { %33276 = vmatmul.mubr.f32.vlgmr.msra.gmra.mrb[2].mxu1 %v36726_v34 }
  0x3c   :  { %35477 = vmatpush3.bf16.msra.mxu1 %v35474_v55  ;;  %33282 = vmatprep.mubr.f32.mxu1 %v36674_v12 }
  0x3d   :  { %35479 = vmatprep.subr.bf16.mxu1 %v35458_v48 }
  0x43   :  { %33283 = vmatmul.mubr.f32.vlgmr.msra.gmra.mrb[2].mxu1 %v36706_v23 }
  0x44   :  { %35481 = vmatpush3.bf16.msra.mxu1 %v35458_v48  ;;  %33289 = vmatprep.mubr.f32.mxu1 %v36674_v12 }
  0x45   :  { %35507 = vmatprep.subr.bf16.mxu1 %v36768_v56 }
  0x4b   :  { %33290 = vmatmul.mubr.f32.vlgmr.msra.gmra.mrb[2].mxu1 %v36706_v23 }
  0x4c   :  { %35509 = vmatpush3.bf16.msra.mxu1 %v36768_v56 }
  0x4d   :  { %35511 = vmatprep.subr.bf16.mxu1 %v36779_v61 }
  0x74   :  { %v1047_v62 = vpop.permute.xlu0 %1046 }
  0x75   :  { %v1052_v63 = vmul.f32 %v1047_v62, %v36642_v0 }
  0x77   :  { %v1055_v2 = vand.u32 4294901760, %v1052_v63 }
  0x78   :  { %v1049_v3 = vpop.permute.xlu0 %1048 }
  0x79   :  { %v1143_v4 = vsub.f32 %v1052_v63, %v1055_v2  ;;  %v1053_v5 = vmul.f32 %v1049_v3, %v36647_v1 }
  0x7b   :  { %v1144_v6 = vand.u32 4294901760, %v1143_v4  ;;  %v1058_v7 = vand.u32 4294901760, %v1053_v5 }
  0x7d   :  { %v35482_v8 = vpack.c.bf16 %v1058_v7, %v1055_v2  ;;  %v1150_v9 = vsub.f32 %v1053_v5, %v1058_v7  ;;  %v1145_v13 = vsub.f32 %v1143_v4, %v1144_v6 }
  0x7f   :  { %v1151_v10 = vand.u32 4294901760, %v1150_v9  ;;  %35483 = vmatprep.subr.bf16.mxu0 %v35482_v8  ;;  %v1146_v15 = vand.u32 4294901760, %v1145_v13  ;;  %v35490_v18 = vpack.c.bf16 %v1150_v9, %v1143_v4 }
  0x80   :  { %35485 = vmatpush3.bf16.msra.mxu0 %v35482_v8 }
  0x81   :  { %v1152_v14 = vsub.f32 %v1150_v9, %v1151_v10  ;;  %v35498_v1 = vpack.c.bf16 %v1151_v10, %v1144_v6 }
  0x83   :  { %33297 = vmatmul.mubr.f32.vlgmr.msra.gmra.mrb[2].mxu0 %v36734_v41  ;;  %v1153_v16 = vand.u32 4294901760, %v1152_v14 }
  0x84   :  { %33303 = vmatprep.mubr.f32.mxu0 %v36674_v12 }
  0x85   :  { %v35486_v0 = vpack.c.bf16 %v1153_v16, %v1146_v15 }
  0x87   :  { %35487 = vmatprep.subr.bf16.mxu0 %v35486_v0 }
  0x88   :  { %35489 = vmatpush3.bf16.msra.mxu0 %v35486_v0 }
  0x89   :  { %35491 = vmatprep.subr.bf16.mxu0 %v35490_v18 }
  0x8b   :  { %33304 = vmatmul.mubr.f32.vlgmr.msra.gmra.mrb[2].mxu0 %v36706_v23 }
  0x8c   :  { %35493 = vmatpush3.bf16.msra.mxu0 %v35490_v18  ;;  %33310 = vmatprep.mubr.f32.mxu0 %v36694_v17 }
  0x8d   :  { %35495 = vmatprep.subr.bf16.mxu0 %v35482_v8 }
  0x93   :  { %33311 = vmatmul.mubr.f32.vlgmr.msra.gmra.mrb[2].mxu0 %v36720_v28 }
  0x94   :  { %35497 = vmatpush3.bf16.msra.mxu0 %v35482_v8  ;;  %33317 = vmatprep.mubr.f32.mxu0 %v36710_v24 }
  0x95   :  { %35499 = vmatprep.subr.bf16.mxu0 %v35498_v1 }
  0x9b   :  { %33318 = vmatmul.mubr.f32.vlgmr.msra.gmra.mrb[2].mxu0 %v36726_v34 }
  0x9c   :  { %35501 = vmatpush3.bf16.msra.mxu0 %v35498_v1  ;;  %33324 = vmatprep.mubr.f32.mxu0 %v36674_v12 }
  0x9d   :  { %35503 = vmatprep.subr.bf16.mxu0 %v35482_v8 }
  0xa3   :  { %33325 = vmatmul.mubr.f32.vlgmr.msra.gmra.mrb[2].mxu0 %v36706_v23 }
  0xa4   :  { %35505 = vmatpush3.bf16.msra.mxu0 %v35482_v8  ;;  %33331 = vmatprep.mubr.f32.mxu0 %v36674_v12 }
  0xa5   :  { %35531 = vmatprep.subr.bf16.mxu0 %v36768_v56 }
  0xab   :  { %33332 = vmatmul.mubr.f32.vlgmr.msra.gmra.mrb[2].mxu0 %v36706_v23 }
  0xac   :  { %35533 = vmatpush3.bf16.msra.mxu0 %v36768_v56 }
  0xad   :  { %35535 = vmatprep.subr.bf16.mxu0 %v36779_v61 }
  0xee   :  { %v33249_v17 = vpop.f32.mrb[0].mxu0 }
  0xef   :  { %v530_v19 = vpop.f32.mrb[1].mxu0 }
  0xf2   :  { %v33228_v20 = vpop.f32.mrb[0].mxu1 }
  0xf3   :  { %v35836_v21 = vadd.f32 %v33249_v17, %v33228_v20  ;;  %v284_v24 = vpop.f32.mrb[1].mxu1 }
  0xf4   :  { %v35837_v25 = vadd.f32 %v530_v19, %v284_v24 }
  0xf5   :  { %v1560_v26 = vsel %vm31_vm0, %v35836_v21, 0 }
  0xf6   :  { %v1639_v28 = vand.u32 4294901760, %v1560_v26  ;;  %v1557_v29 = vsel %vm31_vm0, %v35837_v25, 0  ;;  %4676 = vrot.lane.b32.xlu1 %v35837_v25, %s36606_s21 }
  0xf7   :  { %v1629_v12 = vand.u32 4294901760, %v1557_v29 }
  0xf8   :  { %v1640_v23 = vsub.f32 %v1560_v26, %v1639_v28 }
  0xf9   :  { %v1630_v30 = vsub.f32 %v1557_v29, %v1629_v12 }
  0xfa   :  { %v1641_v31 = vand.u32 4294901760, %v1640_v23  ;;  %4678 = vrot.lane.b32.xlu1 %v35836_v21, %s36606_s21 }
  0xfb   :  { %v1631_v32 = vand.u32 4294901760, %v1630_v30 }
  0xfc   :  { %v1642_v33 = vsub.f32 %v1640_v23, %v1641_v31 }
  0xfd   :  { %v1632_v34 = vsub.f32 %v1630_v30, %v1631_v32 }
  0xfe   :  { %v1643_v35 = vand.u32 4294901760, %v1642_v33 }
  0xff   :  { %v1633_v36 = vand.u32 4294901760, %v1632_v34 }
 0x101   :  { %33338 = vmatprep.mubr.f32.mxu1 %v1633_v36 }
 0x102   :  { %33339 = vmatmul.mubr.f32.vlgmr.msra.gmra.mrb[4].mxu1 %v1643_v35 }
 0x103   :  { %35513 = vmatpush3.bf16.msra.mxu1 %v36779_v61  ;;  %33345 = vmatprep.mubr.f32.mxu1 %v1629_v12 }
 0x104   :  { %35515 = vmatprep.subr.bf16.mxu1 %v36704_v22 }
 0x10a   :  { %33346 = vmatmul.mubr.f32.vlgmr.msra.gmra.mrb[4].mxu1 %v1639_v28 }
 0x10b   :  { %35517 = vmatpush3.bf16.msra.mxu1 %v36704_v22  ;;  %33352 = vmatprep.mubr.f32.mxu1 %v1630_v30 }
 0x10c   :  { %35519 = vmatprep.subr.bf16.mxu1 %v36768_v56 }
 0x112   :  { %33353 = vmatmul.mubr.f32.vlgmr.msra.gmra.mrb[4].mxu1 %v1640_v23 }
 0x113   :  { %35521 = vmatpush3.bf16.msra.mxu1 %v36768_v56  ;;  %33359 = vmatprep.mubr.f32.mxu1 %v1631_v32 }
 0x114   :  { %35523 = vmatprep.subr.bf16.mxu1 %v36717_v27 }
 0x11a   :  { %33360 = vmatmul.mubr.f32.vlgmr.msra.gmra.mrb[4].mxu1 %v1641_v31 }
 0x11b   :  { %33366 = vmatprep.mubr.f32.mxu1 %v1629_v12  ;;  %35525 = vmatpush3.bf16.msra.mxu1 %v36717_v27 }
 0x11c   :  { %35527 = vmatprep.subr.bf16.mxu1 %v36768_v56 }
 0x11e   :  { %v33291_v37 = vpop.f32.mrb[2].mxu1 }
 0x11f   :  { %v2578_v39 = vsel %vm31_vm0, %v33291_v37, 0  ;;  %v1034_v40 = vpop.f32.mrb[3].mxu1  ;;  %5698 = vrot.lane.b32.xlu1 %v33291_v37, %s36606_s21 }
 0x120   :  { %v2657_v41 = vand.u32 4294901760, %v2578_v39  ;;  %v2575_v42 = vsel %vm31_vm0, %v1034_v40, 0  ;;  %5696 = vrot.lane.b32.xlu0 %v1034_v40, %s36606_s21 }
 0x121   :  { %v2647_v43 = vand.u32 4294901760, %v2575_v42 }
 0x122   :  { %v2658_v46 = vsub.f32 %v2578_v39, %v2657_v41  ;;  %33367 = vmatmul.mubr.f32.vlgmr.msra.gmra.mrb[4].mxu1 %v1639_v28 }
 0x123   :  { %v2648_v47 = vsub.f32 %v2575_v42, %v2647_v43  ;;  %2066 = vrot.lane.b32.xlu1 %v35836_v21, %s36605_s15  ;;  %33373 = vmatprep.mubr.f32.mxu1 %v1629_v12 }
 0x124   :  { %2064 = vrot.lane.b32.xlu0 %v35837_v25, %s36605_s15  ;;  %35529 = vmatpush3.bf16.msra.mxu1 %v36768_v56  ;;  %v2659_v48 = vand.u32 4294901760, %v2658_v46 }
 0x125   :  { %35555 = vmatprep.subr.bf16.mxu1 %v36768_v56  ;;  %v2649_v49 = vand.u32 4294901760, %v2648_v47 }
 0x126   :  { %v2660_v50 = vsub.f32 %v2658_v46, %v2659_v48 }
 0x127   :  { %3084 = vrot.lane.b32.xlu1 %v33291_v37, %s36605_s15  ;;  %v2650_v51 = vsub.f32 %v2648_v47, %v2649_v49 }
 0x128   :  { %3082 = vrot.lane.b32.xlu0 %v1034_v40, %s36605_s15  ;;  %v2661_v53 = vand.u32 4294901760, %v2660_v50 }
 0x129   :  { %v2651_v52 = vand.u32 4294901760, %v2650_v51 }
 0x12a   :  { %33374 = vmatmul.mubr.f32.vlgmr.msra.gmra.mrb[4].mxu1 %v1639_v28 }
 0x12b   :  { %4168 = vrot.lane.b32.xlu1 %v35836_v21, %s36607_s22  ;;  %35557 = vmatpush3.bf16.msra.mxu1 %v36768_v56 }
 0x12c   :  { %4166 = vrot.lane.b32.xlu0 %v35837_v25, %s36607_s22  ;;  %33422 = vmatprep.mubr.f32.mxu1 %v2651_v52 }
 0x12d   :  { %35559 = vmatprep.subr.bf16.mxu1 %v36779_v61 }
 0x12e   :  { %33423 = vmatmul.mubr.f32.vlgmr.msra.gmra.mrb[6].mxu1 %v2661_v53 }
 0x12f   :  { %5188 = vrot.lane.b32.xlu1 %v33291_v37, %s36607_s22  ;;  %33429 = vmatprep.mubr.f32.mxu1 %v2647_v43 }
 0x130   :  { %5186 = vrot.lane.b32.xlu0 %v1034_v40, %s36607_s22  ;;  %35561 = vmatpush3.bf16.msra.mxu1 %v36779_v61 }
 0x131   :  { %35563 = vmatprep.subr.bf16.mxu1 %v36704_v22 }
 0x136   :  { %33430 = vmatmul.mubr.f32.vlgmr.msra.gmra.mrb[6].mxu1 %v2657_v41 }
 0x137   :  { %33436 = vmatprep.mubr.f32.mxu1 %v2648_v47  ;;  %35565 = vmatpush3.bf16.msra.mxu1 %v36704_v22 }
 0x138   :  { %35567 = vmatprep.subr.bf16.mxu1 %v36768_v56 }
 0x13e   :  { %33437 = vmatmul.mubr.f32.vlgmr.msra.gmra.mrb[6].mxu1 %v2658_v46 }
 0x13f   :  { %33443 = vmatprep.mubr.f32.mxu1 %v2649_v49  ;;  %35569 = vmatpush3.bf16.msra.mxu1 %v36768_v56 }
 0x140   :  { %35571 = vmatprep.subr.bf16.mxu1 %v36717_v27 }
 0x146   :  { %33444 = vmatmul.mubr.f32.vlgmr.msra.gmra.mrb[6].mxu1 %v2659_v48 }
 0x147   :  { %33450 = vmatprep.mubr.f32.mxu1 %v2647_v43  ;;  %35573 = vmatpush3.bf16.msra.mxu1 %v36717_v27 }
 0x148   :  { %35575 = vmatprep.subr.bf16.mxu1 %v36768_v56 }
 0x14e   :  { %33451 = vmatmul.mubr.f32.vlgmr.msra.gmra.mrb[6].mxu1 %v2657_v41 }
 0x14f   :  { %33457 = vmatprep.mubr.f32.mxu1 %v2647_v43  ;;  %35577 = vmatpush3.bf16.msra.mxu1 %v36768_v56 }
 0x150   :  { %35603 = vmatprep.subr.bf16.mxu1 %v36768_v56 }
 0x156   :  { %33458 = vmatmul.mubr.f32.vlgmr.msra.gmra.mrb[6].mxu1 %v2657_v41 }
 0x157   :  { %35605 = vmatpush3.bf16.msra.mxu1 %v36768_v56 }
 0x158   :  { %35607 = vmatprep.subr.bf16.mxu1 %v36779_v61 }
 0x168   :  { %v4677_v6 = vpop.permute.xlu1 %4676 }
 0x169   :  { %v4680_v26 = vsel %vm31_vm0, %v4677_v6, 0 }
 0x16a   :  { %v36868_v23 = vand.u32 4294901760, %v4680_v26 }
 0x16c   :  { %v4679_v9 = vpop.permute.xlu1 %4678  ;;  %v4752_v31 = vsub.f32 %v4680_v26, %v36868_v23 }
 0x16d   :  { %v4682_v29 = vsel %vm31_vm0, %v4679_v9, 0 }
 0x16e   :  { %v36870_v30 = vand.u32 4294901760, %v4682_v29  ;;  %v4753_v33 = vand.u32 4294901760, %v4752_v31 }
 0x170   :  { %v36879_v32 = vsub.f32 %v4682_v29, %v36870_v30  ;;  %v4754_v35 = vsub.f32 %v4752_v31, %v4753_v33 }
 0x172   :  { %v4763_v34 = vand.u32 4294901760, %v36879_v32  ;;  %v4755_v37 = vand.u32 4294901760, %v4754_v35 }
 0x174   :  { %v4764_v36 = vsub.f32 %v36879_v32, %v4763_v34 }
 0x176   :  { %v4765_v39 = vand.u32 4294901760, %v4764_v36 }
 0x17e   :  { %v33333_v54 = vpop.f32.mrb[2].mxu0 }
 0x17f   :  { %v3596_v55 = vsel %vm31_vm0, %v33333_v54, 0  ;;  %v1546_v57 = vpop.f32.mrb[3].mxu0  ;;  %6208 = vrot.lane.b32.xlu1 %v33333_v54, %s36607_s22 }
 0x180   :  { %v36842_v58 = vand.u32 4294901760, %v3596_v55  ;;  %v3593_v59 = vsel %vm31_vm0, %v1546_v57, 0  ;;  %6206 = vrot.lane.b32.xlu0 %v1546_v57, %s36607_s22 }
 0x181   :  { %v3665_v60 = vand.u32 4294901760, %v3593_v59 }
 0x182   :  { %v3676_v62 = vsub.f32 %v3596_v55, %v36842_v58 }
 0x183   :  { %v3666_v63 = vsub.f32 %v3593_v59, %v3665_v60 }
 0x184   :  { %v3677_v2 = vand.u32 4294901760, %v3676_v62 }
 0x185   :  { %v3667_v3 = vand.u32 4294901760, %v3666_v63 }
 0x186   :  { %v3678_v4 = vsub.f32 %v3676_v62, %v3677_v2 }
 0x187   :  { %v3668_v5 = vsub.f32 %v3666_v63, %v3667_v3 }
 0x188   :  { %v3679_v8 = vand.u32 4294901760, %v3678_v4 }
 0x189   :  { %v3669_v7 = vand.u32 4294901760, %v3668_v5 }
 0x18b   :  { %33506 = vmatprep.mubr.f32.mxu1 %v3669_v7 }
 0x18c   :  { %33507 = vmatmul.mubr.f32.vlgmr.msra.gmra.mrb[8].mxu1 %v3679_v8 }
 0x18d   :  { %33513 = vmatprep.mubr.f32.mxu1 %v3665_v60  ;;  %35609 = vmatpush3.bf16.msra.mxu1 %v36779_v61 }
 0x18e   :  { %35611 = vmatprep.subr.bf16.mxu1 %v36704_v22 }
 0x191   :  { %v36849_v10 = vpop.permute.xlu1 %5698 }
 0x192   :  { %v36851_v13 = vpop.permute.xlu0 %5696  ;;  %v5702_v57 = vsel %vm31_vm0, %v36849_v10, 0 }
 0x193   :  { %v5700_v55 = vsel %vm31_vm0, %v36851_v13, 0 }
 0x194   :  { %33514 = vmatmul.mubr.f32.vlgmr.msra.gmra.mrb[8].mxu1 %v36842_v58  ;;  %v36929_v59 = vand.u32 4294901760, %v5700_v55 }
 0x195   :  { %33520 = vmatprep.mubr.f32.mxu1 %v3666_v63  ;;  %35613 = vmatpush3.bf16.msra.mxu1 %v36704_v22  ;;  %v2067_v14 = vpop.permute.xlu1 %2066 }
 0x196   :  { %35615 = vmatprep.subr.bf16.mxu1 %v36768_v56  ;;  %v2070_v15 = vsel %vm31_vm0, %v2067_v14, 0  ;;  %v2065_v16 = vpop.permute.xlu0 %2064 }
 0x197   :  { %v36857_v0 = vand.u32 4294901760, %v2070_v15  ;;  %v2068_v18 = vsel %vm31_vm0, %v2065_v16, 0 }
 0x198   :  { %v36860_v1 = vand.u32 4294901760, %v2068_v18 }
 0x199   :  { %v2150_v17 = vsub.f32 %v2070_v15, %v36857_v0  ;;  %v3085_v41 = vpop.permute.xlu1 %3084 }
 0x19a   :  { %v2140_v19 = vsub.f32 %v2068_v18, %v36860_v1  ;;  %v3083_v40 = vpop.permute.xlu0 %3082  ;;  %v3088_v43 = vsel %vm31_vm0, %v3085_v41, 0 }
 0x19b   :  { %v2151_v20 = vand.u32 4294901760, %v2150_v17  ;;  %v3086_v42 = vsel %vm31_vm0, %v3083_v40, 0  ;;  %v36903_v47 = vand.u32 4294901760, %v3088_v43 }
 0x19c   :  { %33521 = vmatmul.mubr.f32.vlgmr.msra.gmra.mrb[8].mxu1 %v3676_v62  ;;  %v2141_v21 = vand.u32 4294901760, %v2140_v19  ;;  %v36899_v46 = vand.u32 4294901760, %v3086_v42  ;;  %v5772_v62 = vsub.f32 %v5700_v55, %v36929_v59 }
 0x19d   :  { %33527 = vmatprep.mubr.f32.mxu1 %v3667_v3  ;;  %35617 = vmatpush3.bf16.msra.mxu1 %v36768_v56  ;;  %v2152_v24 = vsub.f32 %v2150_v17, %v2151_v20  ;;  %v36911_v49 = vsub.f32 %v3088_v43, %v36903_v47  ;;  %v4169_v9 = vpop.permute.xlu1 %4168 }
 0x19e   :  { %35619 = vmatprep.subr.bf16.mxu1 %v36717_v27  ;;  %v2142_v25 = vsub.f32 %v2140_v19, %v2141_v21  ;;  %v3158_v48 = vsub.f32 %v3086_v42, %v36899_v46  ;;  %v4167_v8 = vpop.permute.xlu0 %4166  ;;  %v4172_v13 = vsel %vm31_vm0, %v4169_v9, 0 }
 0x19f   :  { %v2153_v12 = vand.u32 4294901760, %v2152_v24  ;;  %v3169_v51 = vand.u32 4294901760, %v36911_v49  ;;  %v4170_v10 = vsel %vm31_vm0, %v4167_v8, 0  ;;  %v36967_v15 = vand.u32 4294901760, %v4172_v13 }
 0x1a0   :  { %v2143_v28 = vand.u32 4294901760, %v2142_v25  ;;  %v3159_v50 = vand.u32 4294901760, %v3158_v48  ;;  %v36963_v14 = vand.u32 4294901760, %v4170_v10 }
 0x1a1   :  { %v3170_v53 = vsub.f32 %v36911_v49, %v3169_v51  ;;  %v5189_v35 = vpop.permute.xlu1 %5188 }
 0x1a2   :  { %33380 = vmatprep.mubr.f32.mxu0 %v2143_v28  ;;  %v3160_v52 = vsub.f32 %v3158_v48, %v3159_v50  ;;  %v4242_v16 = vsub.f32 %v4170_v10, %v36963_v14 }
 0x1a3   :  { %33381 = vmatmul.mubr.f32.vlgmr.msra.gmra.mrb[4].mxu0 %v2153_v12 }
 0x1a4   :  { %33528 = vmatmul.mubr.f32.vlgmr.msra.gmra.mrb[8].mxu1 %v3677_v2  ;;  %33387 = vmatprep.mubr.f32.mxu0 %v36860_v1  ;;  %v3161_v54 = vand.u32 4294901760, %v3160_v52  ;;  %v5773_v2 = vand.u32 4294901760, %v5772_v62  ;;  %v4243_v18 = vand.u32 4294901760, %v4242_v16 }
 0x1a5   :  { %33534 = vmatprep.mubr.f32.mxu1 %v3665_v60  ;;  %35537 = vmatpush3.bf16.msra.mxu0 %v36779_v61 }
 0x1a6   :  { %35621 = vmatpush3.bf16.msra.mxu1 %v36717_v27  ;;  %35539 = vmatprep.subr.bf16.mxu0 %v36704_v22  ;;  %v5774_v4 = vsub.f32 %v5772_v62, %v5773_v2 }
 0x1a7   :  { %35623 = vmatprep.subr.bf16.mxu1 %v36768_v56 }
 0x1a8   :  { %v5775_v6 = vand.u32 4294901760, %v5774_v4 }
 0x1ab   :  { %33388 = vmatmul.mubr.f32.vlgmr.msra.gmra.mrb[4].mxu0 %v36857_v0 }
 0x1ac   :  { %33535 = vmatmul.mubr.f32.vlgmr.msra.gmra.mrb[8].mxu1 %v36842_v58  ;;  %33394 = vmatprep.mubr.f32.mxu0 %v2140_v19  ;;  %v15_v19 = vld [vmem:[%s38904_s1 + $0x20] sm:$0xff] }
 0x1ad   :  { %33541 = vmatprep.mubr.f32.mxu1 %v3665_v60  ;;  %35541 = vmatpush3.bf16.msra.mxu0 %v36704_v22  ;;  %v36932_v60 = vand.u32 4294901760, %v5702_v57  ;;  %v6785_v24 = vsel %vm31_vm0, %v15_v19, 0 }
 0x1ae   :  { %35625 = vmatpush3.bf16.msra.mxu1 %v36768_v56  ;;  %35543 = vmatprep.subr.bf16.mxu0 %v36768_v56  ;;  %v36993_v26 = vand.u32 4294901760, %v6785_v24 }
 0x1af   :  { %35651 = vmatprep.subr.bf16.mxu1 %v36768_v56  ;;  %v36941_v63 = vsub.f32 %v5702_v57, %v36932_v60 }
 0x1b0   :  { %v6855_v12 = vsub.f32 %v6785_v24, %v36993_v26 }
 0x1b1   :  { %v5783_v3 = vand.u32 4294901760, %v36941_v63 }
 0x1b3   :  { %33395 = vmatmul.mubr.f32.vlgmr.msra.gmra.mrb[4].mxu0 %v2150_v17  ;;  %v5784_v5 = vsub.f32 %v36941_v63, %v5783_v3  ;;  %v4244_v17 = vsub.f32 %v4242_v16, %v4243_v18 }
 0x1b4   :  { %33542 = vmatmul.mubr.f32.vlgmr.msra.gmra.mrb[8].mxu1 %v36842_v58  ;;  %33401 = vmatprep.mubr.f32.mxu0 %v2141_v21  ;;  %v3171_v58 = vand.u32 4294901760, %v3170_v53 }
 0x1b5   :  { %35653 = vmatpush3.bf16.msra.mxu1 %v36768_v56  ;;  %33590 = vmatprep.mubr.f32.mxu1 %v4755_v37  ;;  %v5785_v7 = vand.u32 4294901760, %v5784_v5  ;;  %v4245_v21 = vand.u32 4294901760, %v4244_v17  ;;  %v5192_v37 = vsel %vm31_vm0, %v5189_v35, 0 }
 0x1b6   :  { %35545 = vmatpush3.bf16.msra.mxu0 %v36768_v56  ;;  %35655 = vmatprep.subr.bf16.mxu1 %v36779_v61  ;;  %v37031_v40 = vand.u32 4294901760, %v5192_v37 }
 0x1b7   :  { %35547 = vmatprep.subr.bf16.mxu0 %v36717_v27 }
 0x1b8   :  { %33591 = vmatmul.mubr.f32.vlgmr.msra.gmra.mrb[10].mxu1 %v4765_v39  ;;  %v5272_v41 = vsub.f32 %v5192_v37, %v37031_v40 }
 0x1b9   :  { %33597 = vmatprep.mubr.f32.mxu1 %v36868_v23  ;;  %35657 = vmatpush3.bf16.msra.mxu1 %v36779_v61 }
 0x1ba   :  { %35659 = vmatprep.subr.bf16.mxu1 %v36704_v22  ;;  %v5273_v43 = vand.u32 4294901760, %v5272_v41 }
 0x1bb   :  { %33402 = vmatmul.mubr.f32.vlgmr.msra.gmra.mrb[4].mxu0 %v2151_v20 }
 0x1bc   :  { %33408 = vmatprep.mubr.f32.mxu0 %v36860_v1  ;;  %35549 = vmatpush3.bf16.msra.mxu0 %v36717_v27 }
 0x1bd   :  { %35551 = vmatprep.subr.bf16.mxu0 %v36768_v56 }
 0x1c0   :  { %33598 = vmatmul.mubr.f32.vlgmr.msra.gmra.mrb[10].mxu1 %v36870_v30 }
 0x1c1   :  { %33604 = vmatprep.mubr.f32.mxu1 %v4752_v31  ;;  %35661 = vmatpush3.bf16.msra.mxu1 %v36704_v22 }
 0x1c2   :  { %35663 = vmatprep.subr.bf16.mxu1 %v36768_v56 }
 0x1c3   :  { %33409 = vmatmul.mubr.f32.vlgmr.msra.gmra.mrb[4].mxu0 %v36857_v0 }
 0x1c4   :  { %33415 = vmatprep.mubr.f32.mxu0 %v36860_v1  ;;  %35553 = vmatpush3.bf16.msra.mxu0 %v36768_v56 }
 0x1c5   :  { %35579 = vmatprep.subr.bf16.mxu0 %v36768_v56 }
 0x1c8   :  { %33605 = vmatmul.mubr.f32.vlgmr.msra.gmra.mrb[10].mxu1 %v36879_v32 }
 0x1c9   :  { %33611 = vmatprep.mubr.f32.mxu1 %v4753_v33  ;;  %35665 = vmatpush3.bf16.msra.mxu1 %v36768_v56  ;;  %v5187_v33 = vpop.permute.xlu0 %5186 }
 0x1ca   :  { %35667 = vmatprep.subr.bf16.mxu1 %v36717_v27  ;;  %v5190_v36 = vsel %vm31_vm0, %v5187_v33, 0 }
 0x1cb   :  { %33416 = vmatmul.mubr.f32.vlgmr.msra.gmra.mrb[4].mxu0 %v36857_v0  ;;  %v36975_v0 = vsub.f32 %v4172_v13, %v36967_v15  ;;  %v37027_v39 = vand.u32 4294901760, %v5190_v36 }
 0x1cc   :  { %35581 = vmatpush3.bf16.msra.mxu0 %v36768_v56  ;;  %33464 = vmatprep.mubr.f32.mxu0 %v3161_v54 }
 0x1cd   :  { %35583 = vmatprep.subr.bf16.mxu0 %v36779_v61  ;;  %v4253_v1 = vand.u32 4294901760, %v36975_v0 }
 0x1cf   :  { %33465 = vmatmul.mubr.f32.vlgmr.msra.gmra.mrb[6].mxu0 %v3171_v58  ;;  %v4254_v20 = vsub.f32 %v36975_v0, %v4253_v1 }
 0x1d0   :  { %33612 = vmatmul.mubr.f32.vlgmr.msra.gmra.mrb[10].mxu1 %v4763_v34  ;;  %33471 = vmatprep.mubr.f32.mxu0 %v36899_v46  ;;  %v36610_v34 = vmov 0.0  }
 0x1d1   :  { %33618 = vmatprep.mubr.f32.mxu1 %v36868_v23  ;;  %35585 = vmatpush3.bf16.msra.mxu0 %v36779_v61  ;;  %v4255_v25 = vand.u32 4294901760, %v4254_v20 }
 0x1d2   :  { %35669 = vmatpush3.bf16.msra.mxu1 %v36717_v27  ;;  %35587 = vmatprep.subr.bf16.mxu0 %v36704_v22 }
 0x1d3   :  { %35671 = vmatprep.subr.bf16.mxu1 %v36768_v56 }
 0x1d7   :  { %33472 = vmatmul.mubr.f32.vlgmr.msra.gmra.mrb[6].mxu0 %v36903_v47 }
 0x1d8   :  { %33619 = vmatmul.mubr.f32.vlgmr.msra.gmra.mrb[10].mxu1 %v36870_v30  ;;  %33478 = vmatprep.mubr.f32.mxu0 %v3158_v48 }
 0x1d9   :  { %33625 = vmatprep.mubr.f32.mxu1 %v36868_v23  ;;  %35589 = vmatpush3.bf16.msra.mxu0 %v36704_v22  ;;  %v6856_v23 = vand.u32 4294901760, %v6855_v12 }
 0x1da   :  { %35673 = vmatpush3.bf16.msra.mxu1 %v36768_v56  ;;  %35591 = vmatprep.subr.bf16.mxu0 %v36768_v56 }
 0x1db   :  { %35699 = vmatprep.subr.bf16.mxu1 %v36768_v56  ;;  %v6857_v31 = vsub.f32 %v6855_v12, %v6856_v23 }
 0x1dd   :  { %v6858_v32 = vand.u32 4294901760, %v6857_v31 }
 0x1df   :  { %33479 = vmatmul.mubr.f32.vlgmr.msra.gmra.mrb[6].mxu0 %v36911_v49 }
 0x1e0   :  { %33626 = vmatmul.mubr.f32.vlgmr.msra.gmra.mrb[10].mxu1 %v36870_v30  ;;  %33485 = vmatprep.mubr.f32.mxu0 %v3159_v50  ;;  %v36608_v30 = vmov 0.0|0.0  }
 0x1e1   :  { %35701 = vmatpush3.bf16.msra.mxu1 %v36768_v56  ;;  %33674 = vmatprep.mubr.f32.mxu1 %v5775_v6 }
 0x1e2   :  { %35593 = vmatpush3.bf16.msra.mxu0 %v36768_v56  ;;  %35703 = vmatprep.subr.bf16.mxu1 %v36779_v61 }
 0x1e3   :  { %35595 = vmatprep.subr.bf16.mxu0 %v36717_v27 }
 0x1e4   :  { %33675 = vmatmul.mubr.f32.vlgmr.msra.gmra.mrb[12].mxu1 %v5785_v7  ;;  %v16_v7 = vld [vmem:[%s38904_s1 + $0x28] sm:$0xff] }
 0x1e5   :  { %33681 = vmatprep.mubr.f32.mxu1 %v36929_v59  ;;  %35705 = vmatpush3.bf16.msra.mxu1 %v36779_v61  ;;  %v7250_v8 = vand.u32 4294901760, %v16_v7 }
 0x1e6   :  { %35707 = vmatprep.subr.bf16.mxu1 %v36704_v22 }
 0x1e7   :  { %33486 = vmatmul.mubr.f32.vlgmr.msra.gmra.mrb[6].mxu0 %v3169_v51 }
 0x1e8   :  { %33492 = vmatprep.mubr.f32.mxu0 %v36899_v46  ;;  %35597 = vmatpush3.bf16.msra.mxu0 %v36717_v27 }
 0x1e9   :  { %35599 = vmatprep.subr.bf16.mxu0 %v36768_v56 }
 0x1ec   :  { %33682 = vmatmul.mubr.f32.vlgmr.msra.gmra.mrb[12].mxu1 %v36932_v60 }
 0x1ed   :  { %33688 = vmatprep.mubr.f32.mxu1 %v5772_v62  ;;  %35709 = vmatpush3.bf16.msra.mxu1 %v36704_v22 }
 0x1ee   :  { %35711 = vmatprep.subr.bf16.mxu1 %v36768_v56 }
 0x1ef   :  { %33493 = vmatmul.mubr.f32.vlgmr.msra.gmra.mrb[6].mxu0 %v36903_v47 }
 0x1f0   :  { %33499 = vmatprep.mubr.f32.mxu0 %v36899_v46  ;;  %35601 = vmatpush3.bf16.msra.mxu0 %v36768_v56 }
 0x1f1   :  { %35627 = vmatprep.subr.bf16.mxu0 %v36768_v56 }
 0x1f2   :  { %v6207_v54 = vpop.permute.xlu0 %6206 }
 0x1f3   :  { %v6210_v55 = vsel %vm31_vm0, %v6207_v54, 0 }
 0x1f4   :  { %33689 = vmatmul.mubr.f32.vlgmr.msra.gmra.mrb[12].mxu1 %v36941_v63  ;;  %v6281_v58 = vand.u32 4294901760, %v6210_v55 }
 0x1f5   :  { %33695 = vmatprep.mubr.f32.mxu1 %v5773_v2  ;;  %35713 = vmatpush3.bf16.msra.mxu1 %v36768_v56 }
 0x1f6   :  { %35715 = vmatprep.subr.bf16.mxu1 %v36717_v27 }
 0x1f7   :  { %33500 = vmatmul.mubr.f32.vlgmr.msra.gmra.mrb[6].mxu0 %v36903_v47 }
 0x1f8   :  { %35629 = vmatpush3.bf16.msra.mxu0 %v36768_v56  ;;  %33548 = vmatprep.mubr.f32.mxu0 %v4245_v21 }
 0x1f9   :  { %35631 = vmatprep.subr.bf16.mxu0 %v36779_v61 }
 0x1fb   :  { %33549 = vmatmul.mubr.f32.vlgmr.msra.gmra.mrb[8].mxu0 %v4255_v25 }
 0x1fc   :  { %33696 = vmatmul.mubr.f32.vlgmr.msra.gmra.mrb[12].mxu1 %v5783_v3  ;;  %33555 = vmatprep.mubr.f32.mxu0 %v36963_v14 }
 0x1fd   :  { %33702 = vmatprep.mubr.f32.mxu1 %v36929_v59  ;;  %35633 = vmatpush3.bf16.msra.mxu0 %v36779_v61  ;;  %v36998_v28 = vpop.f32.mrb[4].mxu1 }
 0x1fe   :  { %35717 = vmatpush3.bf16.msra.mxu1 %v36717_v27  ;;  %35635 = vmatprep.subr.bf16.mxu0 %v36704_v22  ;;  %v37002_v29 = vpop.f32.mrb[5].mxu1  ;;  %v37055_v49 = vmul.f32 %v36998_v28, %v36998_v28 }
 0x1ff   :  { %35719 = vmatprep.subr.bf16.mxu1 %v36768_v56  ;;  %v37061_v50 = vmul.f32 %v37002_v29, %v37002_v29 }
 0x203   :  { %33556 = vmatmul.mubr.f32.vlgmr.msra.gmra.mrb[8].mxu0 %v36967_v15 }
 0x204   :  { %33703 = vmatmul.mubr.f32.vlgmr.msra.gmra.mrb[12].mxu1 %v36932_v60  ;;  %33562 = vmatprep.mubr.f32.mxu0 %v4242_v16 }
 0x205   :  { %33709 = vmatprep.mubr.f32.mxu1 %v36929_v59  ;;  %35637 = vmatpush3.bf16.msra.mxu0 %v36704_v22 }
 0x206   :  { %35721 = vmatpush3.bf16.msra.mxu1 %v36768_v56  ;;  %35639 = vmatprep.subr.bf16.mxu0 %v36768_v56 }
 0x207   :  { %35746 = vmatprep.subr.bf16.mxu1 %v36608_v30 }
 0x20b   :  { %33563 = vmatmul.mubr.f32.vlgmr.msra.gmra.mrb[8].mxu0 %v36975_v0 }
 0x20c   :  { %33710 = vmatmul.mubr.f32.vlgmr.msra.gmra.mrb[12].mxu1 %v36932_v60  ;;  %33569 = vmatprep.mubr.f32.mxu0 %v4243_v18  ;;  %v6282_v60 = vsub.f32 %v6210_v55, %v6281_v58 }
 0x20d   :  { %35748 = vmatpush3.bf16.msra.mxu1 %v36672_v11  ;;  %35641 = vmatpush3.bf16.msra.mxu0 %v36768_v56 }
 0x20e   :  { %33758 = vmatprep.mubr.msk.f32.mxu1 %vm36609_vm1, %v36610_v34  ;;  %35749 = vmatprep.subr.bf16.mxu1 %v36608_v30  ;;  %v6283_v63 = vand.u32 4294901760, %v6282_v60 }
 0x20f   :  { %35643 = vmatprep.subr.bf16.mxu0 %v36717_v27 }
 0x210   :  { %33759 = vmatmul.mubr.f32.vlgmr.msra.gmra.mrb[14].mxu1 %v6858_v32  ;;  %v6284_v3 = vsub.f32 %v6282_v60, %v6283_v63 }
 0x211   :  { %35751 = vmatpush3.bf16.msra.mxu1 %v36738_v44  ;;  %33765 = vmatprep.mubr.msk.f32.mxu1 %vm36609_vm1, %v36610_v34  ;;  %v5262_v44 = vsub.f32 %v5190_v36, %v37027_v39 }
 0x212   :  { %35752 = vmatprep.subr.bf16.mxu1 %v36608_v30  ;;  %v6285_v5 = vand.u32 4294901760, %v6284_v3 }
 0x213   :  { %33570 = vmatmul.mubr.f32.vlgmr.msra.gmra.mrb[8].mxu0 %v4253_v1  ;;  %v5263_v42 = vand.u32 4294901760, %v5262_v44 }
 0x214   :  { %33576 = vmatprep.mubr.f32.mxu0 %v36963_v14  ;;  %35645 = vmatpush3.bf16.msra.mxu0 %v36717_v27 }
 0x215   :  { %35647 = vmatprep.subr.bf16.mxu0 %v36768_v56  ;;  %v5264_v46 = vsub.f32 %v5262_v44, %v5263_v42 }
 0x217   :  { %v5265_v47 = vand.u32 4294901760, %v5264_v46 }
 0x218   :  { %33766 = vmatmul.mubr.f32.vlgmr.msra.gmra.mrb[14].mxu1 %v36993_v26 }
 0x219   :  { %35754 = vmatpush3.bf16.msra.mxu1 %v36740_v45  ;;  %33772 = vmatprep.mubr.msk.f32.mxu1 %vm36609_vm1, %v36610_v34  ;;  %v5274_v45 = vsub.f32 %v5272_v41, %v5273_v43 }
 0x21a   :  { %35755 = vmatprep.subr.bf16.mxu1 %v36608_v30 }
 0x21b   :  { %33577 = vmatmul.mubr.f32.vlgmr.msra.gmra.mrb[8].mxu0 %v36967_v15  ;;  %v5275_v48 = vand.u32 4294901760, %v5274_v45 }
 0x21c   :  { %33583 = vmatprep.mubr.f32.mxu0 %v36963_v14  ;;  %35649 = vmatpush3.bf16.msra.mxu0 %v36768_v56 }
 0x21d   :  { %35675 = vmatprep.subr.bf16.mxu0 %v36768_v56 }
 0x220   :  { %33773 = vmatmul.mubr.f32.vlgmr.msra.gmra.mrb[14].mxu1 %v6855_v12 }
 0x221   :  { %35757 = vmatpush3.bf16.msra.mxu1 %v36672_v11  ;;  %33779 = vmatprep.mubr.msk.f32.mxu1 %vm36609_vm1, %v36610_v34 }
 0x222   :  { %35758 = vmatprep.subr.bf16.mxu1 %v36608_v30 }
 0x223   :  { %33584 = vmatmul.mubr.f32.vlgmr.msra.gmra.mrb[8].mxu0 %v36967_v15 }
 0x224   :  { %35677 = vmatpush3.bf16.msra.mxu0 %v36768_v56  ;;  %33632 = vmatprep.mubr.f32.mxu0 %v5265_v47 }
 0x225   :  { %35679 = vmatprep.subr.bf16.mxu0 %v36779_v61 }
 0x227   :  { %33633 = vmatmul.mubr.f32.vlgmr.msra.gmra.mrb[10].mxu0 %v5275_v48 }
 0x228   :  { %33780 = vmatmul.mubr.f32.vlgmr.msra.gmra.mrb[14].mxu1 %v6856_v23  ;;  %33639 = vmatprep.mubr.f32.mxu0 %v37027_v39 }
 0x229   :  { %35760 = vmatpush3.bf16.msra.mxu1 %v36728_v38  ;;  %35681 = vmatpush3.bf16.msra.mxu0 %v36779_v61  ;;  %v37063_v51 = vpop.f32.mrb[6].mxu1 }
 0x22a   :  { %33786 = vmatprep.mubr.msk.f32.mxu1 %vm36609_vm1, %v36610_v34  ;;  %35683 = vmatprep.subr.bf16.mxu0 %v36704_v22  ;;  %v4113_v38 = vsub.f32 %v37063_v51, %v37055_v49  ;;  %v37070_v52 = vpop.f32.mrb[7].mxu1 }
 0x22b   :  { %35761 = vmatprep.subr.bf16.mxu1 %v36608_v30  ;;  %v4112_v53 = vsub.f32 %v37070_v52, %v37061_v50 }
 0x22f   :  { %33640 = vmatmul.mubr.f32.vlgmr.msra.gmra.mrb[10].mxu0 %v37031_v40 }
 0x230   :  { %33787 = vmatmul.mubr.f32.vlgmr.msra.gmra.mrb[14].mxu1 %v36993_v26  ;;  %33646 = vmatprep.mubr.f32.mxu0 %v5262_v44 }
 0x231   :  { %35763 = vmatpush3.bf16.msra.mxu1 %v36672_v11  ;;  %35685 = vmatpush3.bf16.msra.mxu0 %v36704_v22  ;;  %v6209_v11 = vpop.permute.xlu1 %6208 }
 0x232   :  { %33793 = vmatprep.mubr.msk.f32.mxu1 %vm36609_vm1, %v36610_v34  ;;  %35687 = vmatprep.subr.bf16.mxu0 %v36768_v56  ;;  %v6212_v57 = vsel %vm31_vm0, %v6209_v11, 0 }
 0x233   :  { %35782 = vmatprep.subr.bf16.mxu1 %v36608_v30  ;;  %v6291_v59 = vand.u32 4294901760, %v6212_v57 }
 0x235   :  { %v6292_v62 = vsub.f32 %v6212_v57, %v6291_v59 }
 0x237   :  { %33647 = vmatmul.mubr.f32.vlgmr.msra.gmra.mrb[10].mxu0 %v5272_v41  ;;  %v6293_v2 = vand.u32 4294901760, %v6292_v62 }
 0x238   :  { %33794 = vmatmul.mubr.f32.vlgmr.msra.gmra.mrb[14].mxu1 %v36993_v26  ;;  %33653 = vmatprep.mubr.f32.mxu0 %v5263_v42 }
 0x239   :  { %33842 = vmatprep.mubr.msk.f32.mxu1 %vm36609_vm1, %v36610_v34  ;;  %35689 = vmatpush3.bf16.msra.mxu0 %v36768_v56  ;;  %v6294_v4 = vsub.f32 %v6292_v62, %v6293_v2 }
 0x23a   :  { %35691 = vmatprep.subr.bf16.mxu0 %v36717_v27 }
 0x23b   :  { %v6295_v6 = vand.u32 4294901760, %v6294_v4 }
 0x23f   :  { %33654 = vmatmul.mubr.f32.vlgmr.msra.gmra.mrb[10].mxu0 %v5273_v43 }
 0x240   :  { %33660 = vmatprep.mubr.f32.mxu0 %v37027_v39  ;;  %35693 = vmatpush3.bf16.msra.mxu0 %v36717_v27 }
 0x241   :  { %35695 = vmatprep.subr.bf16.mxu0 %v36768_v56 }
 0x247   :  { %33661 = vmatmul.mubr.f32.vlgmr.msra.gmra.mrb[10].mxu0 %v37031_v40 }
 0x248   :  { %33667 = vmatprep.mubr.f32.mxu0 %v37027_v39  ;;  %35697 = vmatpush3.bf16.msra.mxu0 %v36768_v56 }
 0x249   :  { %35723 = vmatprep.subr.bf16.mxu0 %v36768_v56 }
 0x24f   :  { %33668 = vmatmul.mubr.f32.vlgmr.msra.gmra.mrb[10].mxu0 %v37031_v40 }
 0x250   :  { %35725 = vmatpush3.bf16.msra.mxu0 %v36768_v56  ;;  %33716 = vmatprep.mubr.f32.mxu0 %v6285_v5 }
 0x251   :  { %35727 = vmatprep.subr.bf16.mxu0 %v36779_v61 }
 0x253   :  { %33717 = vmatmul.mubr.f32.vlgmr.msra.gmra.mrb[12].mxu0 %v6295_v6 }
 0x254   :  { %33723 = vmatprep.mubr.f32.mxu0 %v6281_v58  ;;  %35729 = vmatpush3.bf16.msra.mxu0 %v36779_v61 }
 0x255   :  { %35731 = vmatprep.subr.bf16.mxu0 %v36704_v22 }
 0x25b   :  { %33724 = vmatmul.mubr.f32.vlgmr.msra.gmra.mrb[12].mxu0 %v6291_v59 }
 0x25c   :  { %33730 = vmatprep.mubr.f32.mxu0 %v6282_v60  ;;  %35733 = vmatpush3.bf16.msra.mxu0 %v36704_v22 }
 0x25d   :  { %35735 = vmatprep.subr.bf16.mxu0 %v36768_v56 }
 0x263   :  { %33731 = vmatmul.mubr.f32.vlgmr.msra.gmra.mrb[12].mxu0 %v6292_v62 }
 0x264   :  { %33737 = vmatprep.mubr.f32.mxu0 %v6283_v63  ;;  %35737 = vmatpush3.bf16.msra.mxu0 %v36768_v56 }
 0x265   :  { %35739 = vmatprep.subr.bf16.mxu0 %v36717_v27 }
 0x26b   :  { %33738 = vmatmul.mubr.f32.vlgmr.msra.gmra.mrb[12].mxu0 %v6293_v2 }
 0x26c   :  { %33744 = vmatprep.mubr.f32.mxu0 %v6281_v58  ;;  %35741 = vmatpush3.bf16.msra.mxu0 %v36717_v27  ;;  %v17_v27 = vld [vmem:[%s38904_s1 + $0x30] sm:$0xff] }
 0x26d   :  { %35743 = vmatprep.subr.bf16.mxu0 %v36768_v56  ;;  %v7253_v9 = vand.u32 4294901760, %v17_v27 }
 0x26f   :  { %v37118_v10 = vpack.c.bf16 %v7253_v9, %v7250_v8  ;;  %v7335_v13 = vsub.f32 %v17_v27, %v7253_v9 }
 0x271   :  { %35784 = vmatpush3.bf16.msra.mxu1 %v37118_v10  ;;  %v7336_v15 = vand.u32 4294901760, %v7335_v13 }
 0x272   :  { %35785 = vmatprep.subr.bf16.mxu1 %v36608_v30 }
 0x273   :  { %33745 = vmatmul.mubr.f32.vlgmr.msra.gmra.mrb[12].mxu0 %v6291_v59  ;;  %v7337_v0 = vsub.f32 %v7335_v13, %v7336_v15 }
 0x274   :  { %33751 = vmatprep.mubr.f32.mxu0 %v6281_v58  ;;  %35745 = vmatpush3.bf16.msra.mxu0 %v36768_v56  ;;  %v7328_v56 = vsub.f32 %v16_v7, %v7250_v8 }
 0x275   :  { %35764 = vmatprep.subr.bf16.mxu0 %v36608_v30  ;;  %v7338_v1 = vand.u32 4294901760, %v7337_v0 }
 0x276   :  { %v7329_v14 = vand.u32 4294901760, %v7328_v56  ;;  %v37130_v33 = vpack.c.bf16 %v7335_v13, %v7328_v56 }
 0x278   :  { %v7330_v16 = vsub.f32 %v7328_v56, %v7329_v14  ;;  %v37132_v35 = vpack.c.bf16 %v7336_v15, %v7329_v14 }
 0x27a   :  { %v7331_v18 = vand.u32 4294901760, %v7330_v16 }
 0x27b   :  { %33752 = vmatmul.mubr.f32.vlgmr.msra.gmra.mrb[12].mxu0 %v6291_v59 }
 0x27c   :  { %33800 = vmatprep.mubr.msk.f32.mxu0 %vm36609_vm1, %v36610_v34  ;;  %35766 = vmatpush3.bf16.msra.mxu0 %v37118_v10  ;;  %v37124_v17 = vpack.c.bf16 %v7338_v1, %v7331_v18 }
 0x27d   :  { %35767 = vmatprep.subr.bf16.mxu0 %v36608_v30 }
 0x287   :  { %v33543_v22 = vpop.f32.mrb[8].mxu1 }
 0x288   :  { %v4090_v61 = vpop.f32.mrb[9].mxu1 }
 0x29e   :  { %v33417_v19 = vpop.f32.mrb[4].mxu0 }
 0x29f   :  { %v4103_v20 = vmul.f32 %v33417_v19, %v33417_v19  ;;  %v4105_v21 = vmul.f32 %v33417_v19, %v36998_v28  ;;  %v2564_v24 = vpop.f32.mrb[5].mxu0 }
 0x2a0   :  { %v4102_v25 = vmul.f32 %v2564_v24, %v2564_v24  ;;  %v4104_v26 = vmul.f32 %v2564_v24, %v37002_v29 }
 0x2a1   :  { %v4107_v12 = vsub.f32 %v33543_v22, %v4105_v21  ;;  %v4131_v23 = vadd.f32 %v4103_v20, %v37055_v49  ;;  %v4125_v54 = vmul.f32 2.0, %v4105_v21 }
 0x2a2   :  { %v4106_v31 = vsub.f32 %v4090_v61, %v4104_v26  ;;  %v4130_v32 = vadd.f32 %v4102_v25, %v37061_v50  ;;  %v4124_v11 = vmul.f32 2.0, %v4104_v26 }
 0x2a3   :  { %v4133_v46 = vadd.f32 0.0001, %v4131_v23  ;;  %v4109_v47 = vmul.f32 2.0, %v4107_v12 }
 0x2a4   :  { %v4132_v45 = vadd.f32 0.0001, %v4130_v32  ;;  %v4108_v48 = vmul.f32 2.0, %v4106_v31  ;;  %v4126_v52 = vadd.f32 0.0001, %v4124_v11 }
 0x2a5   :  { %v4111_v55 = vadd.f32 0.0009, %v4109_v47 }
 0x2a6   :  { %v4110_v49 = vadd.f32 0.0009, %v4108_v48 }
 0x2b3   :  { %v33627_v36 = vpop.f32.mrb[10].mxu1 }
 0x2b4   :  { %v5176_v37 = vpop.f32.mrb[11].mxu1  ;;  %v6719_v58 = vmul.f32 %v33627_v36, %v33627_v36 }
 0x2ca   :  { %v33501_v39 = vpop.f32.mrb[6].mxu0 }
 0x2cb   :  { %v4115_v40 = vsub.f32 %v33501_v39, %v4103_v20  ;;  %v3582_v44 = vpop.f32.mrb[7].mxu0 }
 0x2cc   :  { %v4114_v28 = vsub.f32 %v3582_v44, %v4102_v25 }
 0x2cd   :  { %v4117_v29 = vadd.f32 %v4115_v40, %v4113_v38  ;;  %v4127_v38 = vadd.f32 0.0001, %v4125_v54 }
 0x2ce   :  { %v4116_v41 = vadd.f32 %v4114_v28, %v4112_v53  ;;  %v6718_v53 = vmul.f32 %v5176_v37, %v5176_v37 }
 0x2cf   :  { %v4119_v42 = vadd.f32 0.0009, %v4117_v29 }
 0x2d0   :  { %v4118_v43 = vadd.f32 0.0009, %v4116_v41 }
 0x2d1   :  { %36557 = vrcp.f32 %v4119_v42 }
 0x2d2   :  { %36559 = vrcp.f32 %v4118_v43 }
 0x2d3   :  { %36561 = vrcp.f32 %v4133_v46 }
 0x2d4   :  { %36563 = vrcp.f32 %v4132_v45 }
 0x2db   :  { %v36558_v57 = vpop.eup %36557 }
 0x2dc   :  { %v36560_v51 = vpop.eup %36559  ;;  %v4123_v50 = vmul.f32 %v36558_v57, %v4111_v55 }
 0x2dd   :  { %v4122_v60 = vmul.f32 %v36560_v51, %v4110_v49  ;;  %v36562_v4 = vpop.eup %36561 }
 0x2de   :  { %v4129_v2 = vmul.f32 %v4127_v38, %v4123_v50  ;;  %v4153_v3 = vsel %vm31_vm0, %v4123_v50, 0.0  ;;  %v36564_v61 = vpop.eup %36563 }
 0x2df   :  { %v33711_v59 = vpop.f32.mrb[12].mxu1  ;;  %v4128_v6 = vmul.f32 %v4126_v52, %v4122_v60  ;;  %v4152_v22 = vsel %vm31_vm0, %v4122_v60, 0.0 }
 0x2e0   :  { %v6731_v62 = vsub.f32 %v33711_v59, %v6719_v58  ;;  %v6196_v63 = vpop.f32.mrb[13].mxu1  ;;  %v4137_v7 = vmul.f32 %v36562_v4, %v4129_v2  ;;  %v37142_v27 = vadd.f32 %v4153_v3, %v4152_v22 }
 0x2e1   :  { %v6730_v5 = vsub.f32 %v6196_v63, %v6718_v53  ;;  %v4136_v8 = vmul.f32 %v36564_v61, %v4128_v6 }
 0x2e2   :  { %v4139_v9 = vsel %vm31_vm0, %v4137_v7, 0.0 }
 0x2e3   :  { %v4138_v56 = vsel %vm31_vm0, %v4136_v8, 0.0 }
 0x2e4   :  { %v37146_v13 = vadd.f32 %v4139_v9, %v4138_v56 }
 0x2f6   :  { %v33585_v14 = vpop.f32.mrb[8].mxu0 }
 0x2f7   :  { %v6717_v15 = vmul.f32 %v33585_v14, %v33585_v14  ;;  %v6721_v16 = vmul.f32 %v33627_v36, %v33585_v14  ;;  %v4666_v0 = vpop.f32.mrb[9].mxu0 }
 0x2f8   :  { %v6716_v18 = vmul.f32 %v4666_v0, %v4666_v0  ;;  %v6720_v1 = vmul.f32 %v5176_v37, %v4666_v0 }
 0x2f9   :  { %v6747_v19 = vadd.f32 %v6719_v58, %v6717_v15  ;;  %v6741_v54 = vmul.f32 2.0, %v6721_v16 }
 0x2fa   :  { %v6746_v20 = vadd.f32 %v6718_v53, %v6716_v18  ;;  %v6740_v55 = vmul.f32 2.0, %v6720_v1 }
 0x2fb   :  { %v6749_v42 = vadd.f32 0.0001, %v6747_v19  ;;  %v6743_v50 = vadd.f32 0.0001, %v6741_v54 }
 0x2fc   :  { %v6748_v43 = vadd.f32 0.0001, %v6746_v20  ;;  %v6742_v53 = vadd.f32 0.0001, %v6740_v55 }
 0x30b   :  { %v7242_v21 = vpop.f32.mrb[14].mxu1 }
 0x30c   :  { %v7247_v24 = vsel %vm31_vm0, %v7242_v21, 0  ;;  %8171 = vrot.lane.b32.xlu1 %v7242_v21, %s36605_s15  ;;  %7708 = vrot.lane.b32.xlu0 %v7242_v21, %s36607_s22  ;;  %v33795_v25 = vpop.f32.mrb[15].mxu1 }
 0x30d   :  { %v7316_v26 = vand.u32 4294901760, %v7247_v24 }
 0x30f   :  { %v7317_v12 = vsub.f32 %v7247_v24, %v7316_v26 }
 0x310   :  { %8634 = vrot.lane.b32.xlu0 %v7242_v21, %s36606_s21  ;;  %s36618_s21 = smov 116  }
 0x311   :  { %v7318_v23 = vand.u32 4294901760, %v7317_v12 }
 0x313   :  { %v7319_v31 = vsub.f32 %v7317_v12, %v7318_v23 }
 0x315   :  { %v7320_v32 = vand.u32 4294901760, %v7319_v31 }
 0x317   :  { %33801 = vmatmul.mubr.f32.vlgmr.msra.gmra.mrb[14].mxu0 %v7320_v32 }
 0x318   :  { %35769 = vmatpush3.bf16.msra.mxu0 %v37124_v17  ;;  %33807 = vmatprep.mubr.msk.f32.mxu0 %vm36609_vm1, %v36610_v34 }
 0x319   :  { %35770 = vmatprep.subr.bf16.mxu0 %v36608_v30 }
 0x31f   :  { %33808 = vmatmul.mubr.f32.vlgmr.msra.gmra.mrb[14].mxu0 %v7316_v26 }
 0x320   :  { %35772 = vmatpush3.bf16.msra.mxu0 %v37130_v33  ;;  %33814 = vmatprep.mubr.msk.f32.mxu0 %vm36609_vm1, %v36610_v34 }
 0x321   :  { %35773 = vmatprep.subr.bf16.mxu0 %v36608_v30 }
 0x322   :  { %v33669_v36 = vpop.f32.mrb[10].mxu0 }
 0x323   :  { %v6729_v37 = vsub.f32 %v33669_v36, %v6717_v15  ;;  %v5686_v39 = vpop.f32.mrb[11].mxu0 }
 0x324   :  { %v6728_v40 = vsub.f32 %v5686_v39, %v6716_v18 }
 0x325   :  { %v6733_v44 = vadd.f32 %v6731_v62, %v6729_v37 }
 0x326   :  { %v6732_v28 = vadd.f32 %v6730_v5, %v6728_v40 }
 0x327   :  { %33815 = vmatmul.mubr.f32.vlgmr.msra.gmra.mrb[14].mxu0 %v7317_v12  ;;  %v6735_v29 = vadd.f32 0.0009, %v6733_v44 }
 0x328   :  { %35775 = vmatpush3.bf16.msra.mxu0 %v37118_v10  ;;  %33821 = vmatprep.mubr.msk.f32.mxu0 %vm36609_vm1, %v36610_v34  ;;  %v6734_v41 = vadd.f32 0.0009, %v6732_v28 }
 0x329   :  { %35776 = vmatprep.subr.bf16.mxu0 %v36608_v30  ;;  %36565 = vrcp.f32 %v6735_v29 }
 0x32a   :  { %36567 = vrcp.f32 %v6734_v41 }
 0x32b   :  { %36569 = vrcp.f32 %v6749_v42 }
 0x32c   :  { %36571 = vrcp.f32 %v6748_v43 }
 0x32f   :  { %33822 = vmatmul.mubr.f32.vlgmr.msra.gmra.mrb[14].mxu0 %v7318_v23 }
 0x330   :  { %35778 = vmatpush3.bf16.msra.mxu0 %v37132_v35  ;;  %33828 = vmatprep.mubr.msk.f32.mxu0 %vm36609_vm1, %v36610_v34 }
 0x331   :  { %35779 = vmatprep.subr.bf16.mxu0 %v36608_v30 }
 0x333   :  { %v36566_v51 = vpop.eup %36565 }
 0x334   :  { %v36568_v58 = vpop.eup %36567 }
 0x335   :  { %v36570_v63 = vpop.eup %36569 }
 0x336   :  { %v36572_v4 = vpop.eup %36571 }
 0x337   :  { %33829 = vmatmul.mubr.f32.vlgmr.msra.gmra.mrb[14].mxu0 %v7316_v26 }
 0x338   :  { %35781 = vmatpush3.bf16.msra.mxu0 %v37118_v10  ;;  %33835 = vmatprep.mubr.msk.f32.mxu0 %vm36609_vm1, %v36610_v34 }
 0x339   :  { %35800 = vmatprep.subr.bf16.mxu0 %v36608_v30 }
 0x33f   :  { %33836 = vmatmul.mubr.f32.vlgmr.msra.gmra.mrb[14].mxu0 %v7316_v26 }
 0x340   :  { %35802 = vmatpush3.bf16.msra.mxu0 %v37118_v10  ;;  %33884 = vmatprep.mubr.msk.f32.mxu0 %vm36609_vm1, %v36610_v34 }
 0x341   :  { %35803 = vmatprep.subr.bf16.mxu0 %v36608_v30 }
 0x34e   :  { %v33753_v46 = vpop.f32.mrb[12].mxu0 }
 0x34f   :  { %v6723_v45 = vsub.f32 %v33753_v46, %v6721_v16  ;;  %v6706_v47 = vpop.f32.mrb[13].mxu0 }
 0x350   :  { %v6722_v48 = vsub.f32 %v6706_v47, %v6720_v1 }
 0x351   :  { %v6725_v11 = vmul.f32 2.0, %v6723_v45 }
 0x352   :  { %v6724_v57 = vmul.f32 2.0, %v6722_v48  ;;  %v19_v48 = vld [vmem:[%s38904_s1 + $0x40] sm:$0xff] }
 0x353   :  { %v6727_v49 = vadd.f32 0.0009, %v6725_v11  ;;  %v9118_v54 = vsel %vm9109_vm2, %v19_v48, 0 }
 0x354   :  { %v6726_v38 = vadd.f32 0.0009, %v6724_v57  ;;  %v37272_v11 = vand.u32 4294901760, %v9118_v54 }
 0x355   :  { %v6739_v52 = vmul.f32 %v36566_v51, %v6727_v49 }
 0x356   :  { %v6738_v59 = vmul.f32 %v36568_v58, %v6726_v38  ;;  %v37275_v55 = vsub.f32 %v9118_v54, %v37272_v11 }
 0x357   :  { %v6745_v60 = vmul.f32 %v6743_v50, %v6739_v52  ;;  %v6769_v62 = vsel %vm31_vm0, %v6739_v52, 0.0 }
 0x358   :  { %v6744_v2 = vmul.f32 %v6742_v53, %v6738_v59  ;;  %v6768_v3 = vsel %vm31_vm0, %v6738_v59, 0.0  ;;  %v37278_v49 = vand.u32 4294901760, %v37275_v55 }
 0x359   :  { %v37178_v5 = vadd.f32 %v6769_v62, %v6768_v3  ;;  %v6753_v6 = vmul.f32 %v36570_v63, %v6745_v60 }
 0x35a   :  { %v6752_v22 = vmul.f32 %v36572_v4, %v6744_v2  ;;  %v9199_v58 = vsub.f32 %v37275_v55, %v37278_v49 }
 0x35b   :  { %v6755_v61 = vsel %vm31_vm0, %v6753_v6, 0.0 }
 0x35c   :  { %v6754_v7 = vsel %vm31_vm0, %v6752_v22, 0.0  ;;  %v37293_v62 = vand.u32 4294901760, %v9199_v58 }
 0x35d   :  { %v37182_v8 = vadd.f32 %v6755_v61, %v6754_v7 }
 0x37e   :  { %v8172_v9 = vpop.permute.xlu1 %8171  ;;  %v7709_v56 = vpop.permute.xlu0 %7708 }
 0x37f   :  { %v8173_v14 = vsel %vm31_vm0, %v8172_v9, 0  ;;  %v7710_v15 = vsel %vm31_vm0, %v7709_v56, 0  ;;  %v20_v56 = vld [vmem:[%s38904_s1 + $0x48] sm:$0xff] }
 0x380   :  { %v8242_v16 = vand.u32 4294901760, %v8173_v14  ;;  %v7779_v0 = vand.u32 4294901760, %v7710_v15 }
 0x382   :  { %v8243_v18 = vsub.f32 %v8173_v14, %v8242_v16  ;;  %v7780_v1 = vsub.f32 %v7710_v15, %v7779_v0  ;;  %v8635_v12 = vpop.permute.xlu0 %8634  ;;  %v37337_v14 = vand.u32 4294901760, %v20_v56 }
 0x383   :  { %v8636_v23 = vsel %vm31_vm0, %v8635_v12, 0 }
 0x384   :  { %v8244_v19 = vand.u32 4294901760, %v8243_v18  ;;  %v7781_v20 = vand.u32 4294901760, %v7780_v1  ;;  %v8705_v31 = vand.u32 4294901760, %v8636_v23 }
 0x386   :  { %v8245_v21 = vsub.f32 %v8243_v18, %v8244_v19  ;;  %v7782_v24 = vsub.f32 %v7780_v1, %v7781_v20  ;;  %v8706_v32 = vsub.f32 %v8636_v23, %v8705_v31 }
 0x388   :  { %v8246_v25 = vand.u32 4294901760, %v8245_v21  ;;  %v7783_v26 = vand.u32 4294901760, %v7782_v24  ;;  %v8707_v36 = vand.u32 4294901760, %v8706_v32  ;;  %v37356_v21 = vsub.f32 %v20_v56, %v37337_v14 }
 0x38a   :  { %33843 = vmatmul.mubr.f32.vlgmr.msra.gmra.mrb[16].mxu1 %v7783_v26  ;;  %33885 = vmatmul.mubr.f32.vlgmr.msra.gmra.mrb[16].mxu0 %v8246_v25  ;;  %v8708_v37 = vsub.f32 %v8706_v32, %v8707_v36  ;;  %v37359_v24 = vand.u32 4294901760, %v37356_v21 }
 0x38b   :  { %35787 = vmatpush3.bf16.msra.mxu1 %v37124_v17  ;;  %35805 = vmatpush3.bf16.msra.mxu0 %v37124_v17 }
 0x38c   :  { %33849 = vmatprep.mubr.msk.f32.mxu1 %vm36609_vm1, %v36610_v34  ;;  %33891 = vmatprep.mubr.msk.f32.mxu0 %vm36609_vm1, %v36610_v34  ;;  %v8709_v39 = vand.u32 4294901760, %v8708_v37  ;;  %v10689_v25 = vsub.f32 %v37356_v21, %v37359_v24 }
 0x38d   :  { %35788 = vmatprep.subr.bf16.mxu1 %v36608_v30  ;;  %35806 = vmatprep.subr.bf16.mxu0 %v36608_v30 }
 0x38e   :  { %v37365_v26 = vand.u32 4294901760, %v10689_v25 }
 0x392   :  { %33850 = vmatmul.mubr.f32.vlgmr.msra.gmra.mrb[16].mxu1 %v7779_v0  ;;  %33892 = vmatmul.mubr.f32.vlgmr.msra.gmra.mrb[16].mxu0 %v8242_v16 }
 0x393   :  { %35790 = vmatpush3.bf16.msra.mxu1 %v37130_v33  ;;  %35808 = vmatpush3.bf16.msra.mxu0 %v37130_v33 }
 0x394   :  { %33856 = vmatprep.mubr.msk.f32.mxu1 %vm36609_vm1, %v36610_v34  ;;  %33898 = vmatprep.mubr.msk.f32.mxu0 %vm36609_vm1, %v36610_v34 }
 0x395   :  { %35791 = vmatprep.subr.bf16.mxu1 %v36608_v30  ;;  %35809 = vmatprep.subr.bf16.mxu0 %v36608_v30 }
 0x39a   :  { %33857 = vmatmul.mubr.f32.vlgmr.msra.gmra.mrb[16].mxu1 %v7780_v1  ;;  %33899 = vmatmul.mubr.f32.vlgmr.msra.gmra.mrb[16].mxu0 %v8243_v18 }
 0x39b   :  { %35793 = vmatpush3.bf16.msra.mxu1 %v37118_v10  ;;  %35811 = vmatpush3.bf16.msra.mxu0 %v37118_v10 }
 0x39c   :  { %33863 = vmatprep.mubr.msk.f32.mxu1 %vm36609_vm1, %v36610_v34  ;;  %33905 = vmatprep.mubr.msk.f32.mxu0 %vm36609_vm1, %v36610_v34 }
 0x39d   :  { %35794 = vmatprep.subr.bf16.mxu1 %v36608_v30  ;;  %35812 = vmatprep.subr.bf16.mxu0 %v36608_v30 }
 0x3a2   :  { %33864 = vmatmul.mubr.f32.vlgmr.msra.gmra.mrb[16].mxu1 %v7781_v20  ;;  %33906 = vmatmul.mubr.f32.vlgmr.msra.gmra.mrb[16].mxu0 %v8244_v19 }
 0x3a3   :  { %35796 = vmatpush3.bf16.msra.mxu1 %v37132_v35  ;;  %35814 = vmatpush3.bf16.msra.mxu0 %v37132_v35 }
 0x3a4   :  { %33870 = vmatprep.mubr.msk.f32.mxu1 %vm36609_vm1, %v36610_v34  ;;  %33912 = vmatprep.mubr.msk.f32.mxu0 %vm36609_vm1, %v36610_v34 }
 0x3a5   :  { %35797 = vmatprep.subr.bf16.mxu1 %v36608_v30  ;;  %35815 = vmatprep.subr.bf16.mxu0 %v36608_v30 }
 0x3aa   :  { %33871 = vmatmul.mubr.f32.vlgmr.msra.gmra.mrb[16].mxu1 %v7779_v0  ;;  %33913 = vmatmul.mubr.f32.vlgmr.msra.gmra.mrb[16].mxu0 %v8242_v16 }
 0x3ab   :  { %35799 = vmatpush3.bf16.msra.mxu1 %v37118_v10  ;;  %35817 = vmatpush3.bf16.msra.mxu0 %v37118_v10 }
 0x3ac   :  { %33877 = vmatprep.mubr.msk.f32.mxu1 %vm36609_vm1, %v36610_v34  ;;  %33919 = vmatprep.mubr.msk.f32.mxu0 %vm36609_vm1, %v36610_v34 }
 0x3ad   :  { %35818 = vmatprep.subr.bf16.mxu1 %v36608_v30 }
 0x3b2   :  { %33878 = vmatmul.mubr.f32.vlgmr.msra.gmra.mrb[16].mxu1 %v7779_v0  ;;  %33920 = vmatmul.mubr.f32.vlgmr.msra.gmra.mrb[16].mxu0 %v8242_v16 }
 0x3b3   :  { %35820 = vmatpush3.bf16.msra.mxu1 %v37118_v10  ;;  %33926 = vmatprep.mubr.msk.f32.mxu1 %vm36609_vm1, %v36610_v34 }
 0x3b4   :  { %35821 = vmatprep.subr.bf16.mxu1 %v36608_v30 }
 0x3b6   :  { %33927 = vmatmul.mubr.f32.vlgmr.msra.gmra.mrb[18].mxu1 %v8709_v39 }
 0x3b7   :  { %35823 = vmatpush3.bf16.msra.mxu1 %v37124_v17  ;;  %33933 = vmatprep.mubr.msk.f32.mxu1 %vm36609_vm1, %v36610_v34 }
 0x3b8   :  { %35824 = vmatprep.subr.bf16.mxu1 %v36608_v30 }
 0x3be   :  { %33934 = vmatmul.mubr.f32.vlgmr.msra.gmra.mrb[18].mxu1 %v8705_v31 }
 0x3bf   :  { %35826 = vmatpush3.bf16.msra.mxu1 %v37130_v33  ;;  %33940 = vmatprep.mubr.msk.f32.mxu1 %vm36609_vm1, %v36610_v34 }
 0x3c0   :  { %35827 = vmatprep.subr.bf16.mxu1 %v36608_v30 }
 0x3c6   :  { %33941 = vmatmul.mubr.f32.vlgmr.msra.gmra.mrb[18].mxu1 %v8706_v32 }
 0x3c7   :  { %35829 = vmatpush3.bf16.msra.mxu1 %v37118_v10  ;;  %33947 = vmatprep.mubr.msk.f32.mxu1 %vm36609_vm1, %v36610_v34 }
 0x3c8   :  { %35830 = vmatprep.subr.bf16.mxu1 %v36608_v30 }
 0x3ce   :  { %33948 = vmatmul.mubr.f32.vlgmr.msra.gmra.mrb[18].mxu1 %v8707_v36 }
 0x3cf   :  { %35832 = vmatpush3.bf16.msra.mxu1 %v37132_v35  ;;  %33954 = vmatprep.mubr.msk.f32.mxu1 %vm36609_vm1, %v36610_v34 }
 0x3d0   :  { %35833 = vmatprep.subr.bf16.mxu1 %v36608_v30  ;;  %v18_v30 = vld [vmem:[%s38904_s1 + $0x38] sm:$0xff] }
 0x3d6   :  { %33955 = vmatmul.mubr.f32.vlgmr.msra.gmra.mrb[18].mxu1 %v8705_v31 }
 0x3d7   :  { %35835 = vmatpush3.bf16.msra.mxu1 %v37118_v10  ;;  %33961 = vmatprep.mubr.msk.f32.mxu1 %vm36609_vm1, %v36610_v34  ;;  %v9115_v10 = vsel %vm9109_vm2, %v18_v30, 0 }
 0x3d8   :  { %v37254_v29 = vand.u32 4294901760, %v9115_v10 }
 0x3da   :  { %v37257_v41 = vsub.f32 %v9115_v10, %v37254_v29 }
 0x3dc   :  { %v37260_v42 = vand.u32 4294901760, %v37257_v41 }
 0x3de   :  { %33962 = vmatmul.mubr.f32.vlgmr.msra.gmra.mrb[18].mxu1 %v8705_v31  ;;  %v9189_v43 = vsub.f32 %v37257_v41, %v37260_v42 }
 0x3e0   :  { %v37264_v46 = vand.u32 4294901760, %v9189_v43 }
 0x3e2   :  { %33966 = vmatprep.mubr.f32.mxu0 %v37264_v46  ;;  %33996 = vmatprep.mubr.f32.mxu1 %v37264_v46 }
 0x412   :  { %v7704_v17 = vpop.f32.mrb[14].mxu0 }
 0x413   :  { %v33837_v33 = vpop.f32.mrb[15].mxu0 }
 0x485   :  { %v8167_v40 = vpop.f32.mrb[16].mxu1  ;;  %v8630_v44 = vpop.f32.mrb[16].mxu0 }
 0x486   :  { %9102 = vrot.lane.b32.xlu0 %v8630_v44, %s36611_s29  ;;  %v33921_v28 = vpop.f32.mrb[17].mxu0  ;;  %9098 = vrot.lane.b32.xlu1 %v8167_v40, %s36612_s30  ;;  %v33879_v35 = vpop.f32.mrb[17].mxu1 }
 0x4b1   :  { %v9093_v45 = vpop.f32.mrb[18].mxu1 }
 0x4b2   :  { %9106 = vrot.lane.b32.xlu1 %v9093_v45, %s36613_s5  ;;  %v33963_v47 = vpop.f32.mrb[19].mxu1  ;;  %s36623_s5 = smov 122  }
 0x4f8   :  { %v9099_v57 = vpop.permute.xlu1 %9098  ;;  %v9103_v51 = vpop.permute.xlu0 %9102 }
 0x4f9   :  { %v9110_v38 = vsel %vm9109_vm2, %v7704_v17, %v9099_v57 }
 0x4fa   :  { %v9111_v50 = vsel %vm31_vm0, %v9110_v38, %v9103_v51 }
 0x524   :  { %v9107_v52 = vpop.permute.xlu1 %9106 }
 0x525   :  { %v37284_v53 = vsel %vm9112_vm3, %v9111_v50, %v9107_v52 }
 0x526   :  { %v37287_v59 = vand.u32 4294901760, %v37284_v53  ;;  %v9609_v60 = vmul.f32 %v37284_v53, %v37284_v53  ;;  %10100 = vrot.lane.b32.xlu0 %v37284_v53, %s36607_s22 }
 0x528   :  { %v37297_v63 = vsub.f32 %v37284_v53, %v37287_v59  ;;  %v9611_v2 = vand.u32 4294901760, %v9609_v60  ;;  %33964 = vmatprep.subr.mxu0 %v37287_v59 }
 0x529   :  { %33965 = vmatpush3.msra.mxu0 %v37287_v59 }
 0x52a   :  { %v9698_v3 = vsub.f32 %v9609_v60, %v9611_v2  ;;  %33967 = vmatmul.mubr.f32.vlgmr.msra.gmra.mrb[18].mxu0 %v37293_v62  ;;  %33994 = vmatprep.subr.mxu1 %v9611_v2  ;;  %v37303_v4 = vand.u32 4294901760, %v37297_v63 }
 0x52b   :  { %33995 = vmatpush3.msra.mxu1 %v9611_v2  ;;  %33971 = vmatprep.mubr.f32.mxu0 %v37254_v29 }
 0x52c   :  { %33997 = vmatmul.mubr.f32.vlgmr.msra.gmra.mrb[20].mxu1 %v37293_v62  ;;  %v9210_v6 = vsub.f32 %v37297_v63, %v37303_v4  ;;  %v9699_v22 = vand.u32 4294901760, %v9698_v3 }
 0x52d   :  { %34001 = vmatprep.mubr.f32.mxu1 %v37254_v29 }
 0x52e   :  { %v37310_v61 = vand.u32 4294901760, %v9210_v6  ;;  %v9700_v7 = vsub.f32 %v9698_v3, %v9699_v22 }
 0x530   :  { %33969 = vmatprep.subr.mxu0 %v37310_v61  ;;  %v9701_v9 = vand.u32 4294901760, %v9700_v7 }
 0x531   :  { %33970 = vmatpush3.msra.mxu0 %v37310_v61 }
 0x532   :  { %33972 = vmatmul.mubr.f32.vlgmr.msra.gmra.mrb[18].mxu0 %v37272_v11  ;;  %33974 = vmatprep.subr.mxu0 %v37297_v63 }
 0x533   :  { %33999 = vmatprep.subr.mxu1 %v9701_v9  ;;  %33975 = vmatpush3.msra.mxu0 %v37297_v63 }
 0x534   :  { %34000 = vmatpush3.msra.mxu1 %v9701_v9  ;;  %33979 = vmatprep.subr.mxu0 %v37287_v59 }
 0x535   :  { %34002 = vmatmul.mubr.f32.vlgmr.msra.gmra.mrb[20].mxu1 %v37272_v11  ;;  %34004 = vmatprep.subr.mxu1 %v9698_v3 }
 0x536   :  { %34005 = vmatpush3.msra.mxu1 %v9698_v3  ;;  %33976 = vmatprep.mubr.f32.mxu0 %v37257_v41 }
 0x537   :  { %34009 = vmatprep.subr.mxu1 %v9611_v2  ;;  %34006 = vmatprep.mubr.f32.mxu1 %v37257_v41 }
 0x53a   :  { %33977 = vmatmul.mubr.f32.vlgmr.msra.gmra.mrb[18].mxu0 %v37275_v55 }
 0x53b   :  { %33980 = vmatpush3.msra.mxu0 %v37287_v59  ;;  %33981 = vmatprep.mubr.f32.mxu0 %v37260_v42 }
 0x53c   :  { %33984 = vmatprep.subr.mxu0 %v37303_v4 }
 0x53d   :  { %34007 = vmatmul.mubr.f32.vlgmr.msra.gmra.mrb[20].mxu1 %v37275_v55 }
 0x53e   :  { %34010 = vmatpush3.msra.mxu1 %v9611_v2  ;;  %34011 = vmatprep.mubr.f32.mxu1 %v37260_v42 }
 0x53f   :  { %34014 = vmatprep.subr.mxu1 %v9699_v22 }
 0x542   :  { %33982 = vmatmul.mubr.f32.vlgmr.msra.gmra.mrb[18].mxu0 %v37278_v49 }
 0x543   :  { %33985 = vmatpush3.msra.mxu0 %v37303_v4  ;;  %33986 = vmatprep.mubr.f32.mxu0 %v37254_v29 }
 0x544   :  { %33989 = vmatprep.subr.mxu0 %v37287_v59 }
 0x545   :  { %34012 = vmatmul.mubr.f32.vlgmr.msra.gmra.mrb[20].mxu1 %v37278_v49 }
 0x546   :  { %34015 = vmatpush3.msra.mxu1 %v9699_v22  ;;  %34016 = vmatprep.mubr.f32.mxu1 %v37254_v29 }
 0x547   :  { %34019 = vmatprep.subr.mxu1 %v9611_v2 }
 0x54a   :  { %33987 = vmatmul.mubr.f32.vlgmr.msra.gmra.mrb[18].mxu0 %v37272_v11 }
 0x54b   :  { %33990 = vmatpush3.msra.mxu0 %v37287_v59  ;;  %33991 = vmatprep.mubr.f32.mxu0 %v37254_v29 }
 0x54d   :  { %34017 = vmatmul.mubr.f32.vlgmr.msra.gmra.mrb[20].mxu1 %v37272_v11 }
 0x54e   :  { %34020 = vmatpush3.msra.mxu1 %v9611_v2  ;;  %34021 = vmatprep.mubr.f32.mxu1 %v37254_v29 }
 0x54f   :  { %34054 = vmatprep.subr.mxu1 %v37337_v14 }
 0x552   :  { %33992 = vmatmul.mubr.f32.vlgmr.msra.gmra.mrb[18].mxu0 %v37272_v11 }
 0x553   :  { %34026 = vmatprep.mubr.f32.mxu0 %v37264_v46 }
 0x555   :  { %34022 = vmatmul.mubr.f32.vlgmr.msra.gmra.mrb[20].mxu1 %v37272_v11 }
 0x556   :  { %34055 = vmatpush3.msra.mxu1 %v37337_v14 }
 0x557   :  { %34059 = vmatprep.subr.mxu1 %v37365_v26 }
 0x598   :  { %v10101_v15 = vpop.permute.xlu0 %10100 }
 0x599   :  { %v10103_v16 = vmul.f32 %v10101_v15, %v37284_v53 }
 0x59b   :  { %v10105_v0 = vand.u32 4294901760, %v10103_v16 }
 0x59d   :  { %v10192_v18 = vsub.f32 %v10103_v16, %v10105_v0  ;;  %34024 = vmatprep.subr.mxu0 %v10105_v0 }
 0x59e   :  { %34025 = vmatpush3.msra.mxu0 %v10105_v0 }
 0x59f   :  { %34027 = vmatmul.mubr.f32.vlgmr.msra.gmra.mrb[20].mxu0 %v37293_v62  ;;  %v10193_v1 = vand.u32 4294901760, %v10192_v18 }
 0x5a0   :  { %34031 = vmatprep.mubr.f32.mxu0 %v37254_v29 }
 0x5a1   :  { %v10194_v19 = vsub.f32 %v10192_v18, %v10193_v1 }
 0x5a3   :  { %v10195_v20 = vand.u32 4294901760, %v10194_v19 }
 0x5a5   :  { %34029 = vmatprep.subr.mxu0 %v10195_v20 }
 0x5a6   :  { %34030 = vmatpush3.msra.mxu0 %v10195_v20 }
 0x5a7   :  { %34032 = vmatmul.mubr.f32.vlgmr.msra.gmra.mrb[20].mxu0 %v37272_v11  ;;  %34034 = vmatprep.subr.mxu0 %v10192_v18 }
 0x5a8   :  { %34035 = vmatpush3.msra.mxu0 %v10192_v18  ;;  %34036 = vmatprep.mubr.f32.mxu0 %v37257_v41 }
 0x5a9   :  { %34039 = vmatprep.subr.mxu0 %v10105_v0 }
 0x5af   :  { %34037 = vmatmul.mubr.f32.vlgmr.msra.gmra.mrb[20].mxu0 %v37275_v55 }
 0x5b0   :  { %34040 = vmatpush3.msra.mxu0 %v10105_v0  ;;  %34041 = vmatprep.mubr.f32.mxu0 %v37260_v42 }
 0x5b1   :  { %34044 = vmatprep.subr.mxu0 %v10193_v1 }
 0x5b7   :  { %34042 = vmatmul.mubr.f32.vlgmr.msra.gmra.mrb[20].mxu0 %v37278_v49 }
 0x5b8   :  { %34045 = vmatpush3.msra.mxu0 %v10193_v1  ;;  %34046 = vmatprep.mubr.f32.mxu0 %v37254_v29 }
 0x5b9   :  { %34049 = vmatprep.subr.mxu0 %v10105_v0 }
 0x5bf   :  { %34047 = vmatmul.mubr.f32.vlgmr.msra.gmra.mrb[20].mxu0 %v37272_v11 }
 0x5c0   :  { %34050 = vmatpush3.msra.mxu0 %v10105_v0  ;;  %34051 = vmatprep.mubr.f32.mxu0 %v37254_v29 }
 0x5c1   :  { %34084 = vmatprep.subr.mxu0 %v37337_v14 }
 0x5c7   :  { %34052 = vmatmul.mubr.f32.vlgmr.msra.gmra.mrb[20].mxu0 %v37272_v11 }
 0x5c8   :  { %34085 = vmatpush3.msra.mxu0 %v37337_v14 }
 0x5c9   :  { %34089 = vmatprep.subr.mxu0 %v37365_v26 }
 0x625   :  { %v33993_v12 = vpop.f32.mrb[18].mxu0 }
 0x626   :  { %v10597_v23 = vsel %vm9109_vm2, %v33993_v12, 0  ;;  %13639 = vrot.lane.b32.xlu0 %v33993_v12, %s36614_s10  ;;  %v9599_v31 = vpop.f32.mrb[19].mxu0 }
 0x627   :  { %v10675_v32 = vand.u32 4294901760, %v10597_v23  ;;  %v10594_v36 = vsel %vm9109_vm2, %v9599_v31, 0  ;;  %13637 = vrot.lane.b32.xlu1 %v9599_v31, %s36614_s10 }
 0x628   :  { %v10665_v37 = vand.u32 4294901760, %v10594_v36  ;;  %v34023_v39 = vpop.f32.mrb[20].mxu1 }
 0x629   :  { %v10676_v17 = vsub.f32 %v10597_v23, %v10675_v32  ;;  %v10089_v33 = vpop.f32.mrb[21].mxu1  ;;  %v11589_v42 = vsel %vm9109_vm2, %v34023_v39, 0 }
 0x62a   :  { %v10666_v40 = vsub.f32 %v10594_v36, %v10665_v37  ;;  %14633 = vrot.lane.b32.xlu0 %v34023_v39, %s36614_s10  ;;  %v11586_v41 = vsel %vm9109_vm2, %v10089_v33, 0  ;;  %v11667_v46 = vand.u32 4294901760, %v11589_v42 }
 0x62b   :  { %14631 = vrot.lane.b32.xlu1 %v10089_v33, %s36614_s10  ;;  %v10677_v44 = vand.u32 4294901760, %v10676_v17  ;;  %v11657_v43 = vand.u32 4294901760, %v11586_v41 }
 0x62c   :  { %v10667_v28 = vand.u32 4294901760, %v10666_v40  ;;  %v11668_v47 = vsub.f32 %v11589_v42, %v11667_v46 }
 0x62d   :  { %v10678_v35 = vsub.f32 %v10676_v17, %v10677_v44  ;;  %v11658_v45 = vsub.f32 %v11586_v41, %v11657_v43 }
 0x62e   :  { %11090 = vrot.lane.b32.xlu0 %v33993_v12, %s36607_s22  ;;  %v10668_v30 = vsub.f32 %v10666_v40, %v10667_v28  ;;  %v11669_v54 = vand.u32 4294901760, %v11668_v47 }
 0x62f   :  { %11088 = vrot.lane.b32.xlu1 %v9599_v31, %s36607_s22  ;;  %v10679_v29 = vand.u32 4294901760, %v10678_v35  ;;  %v11659_v48 = vand.u32 4294901760, %v11658_v45 }
 0x630   :  { %v10669_v10 = vand.u32 4294901760, %v10668_v30  ;;  %v11670_v55 = vsub.f32 %v11668_v47, %v11669_v54 }
 0x631   :  { %v11660_v11 = vsub.f32 %v11658_v45, %v11659_v48 }
 0x632   :  { %34056 = vmatprep.mubr.f32.mxu1 %v10669_v10  ;;  %12082 = vrot.lane.b32.xlu0 %v34023_v39, %s36607_s22  ;;  %v11671_v49 = vand.u32 4294901760, %v11670_v55 }
 0x633   :  { %34057 = vmatmul.mubr.f32.vlgmr.msra.gmra.mrb[22].mxu1 %v10679_v29  ;;  %12080 = vrot.lane.b32.xlu1 %v10089_v33, %s36607_s22  ;;  %v11661_v57 = vand.u32 4294901760, %v11660_v11 }
 0x634   :  { %34061 = vmatprep.mubr.f32.mxu1 %v10665_v37  ;;  %34060 = vmatpush3.msra.mxu1 %v37365_v26 }
 0x635   :  { %34064 = vmatprep.subr.mxu1 %v37356_v21 }
 0x636   :  { %13142 = vrot.lane.b32.xlu0 %v33993_v12, %s36615_s11 }
 0x637   :  { %13140 = vrot.lane.b32.xlu1 %v9599_v31, %s36615_s11 }
 0x63a   :  { %14136 = vrot.lane.b32.xlu0 %v34023_v39, %s36615_s11 }
 0x63b   :  { %34062 = vmatmul.mubr.f32.vlgmr.msra.gmra.mrb[22].mxu1 %v10675_v32  ;;  %14134 = vrot.lane.b32.xlu1 %v10089_v33, %s36615_s11 }
 0x63c   :  { %34066 = vmatprep.mubr.f32.mxu1 %v10666_v40  ;;  %34065 = vmatpush3.msra.mxu1 %v37356_v21 }
 0x63d   :  { %34069 = vmatprep.subr.mxu1 %v37337_v14 }
 0x643   :  { %34067 = vmatmul.mubr.f32.vlgmr.msra.gmra.mrb[22].mxu1 %v10676_v17 }
 0x644   :  { %34071 = vmatprep.mubr.f32.mxu1 %v10667_v28  ;;  %34070 = vmatpush3.msra.mxu1 %v37337_v14 }
 0x645   :  { %34074 = vmatprep.subr.mxu1 %v37359_v24 }
 0x64b   :  { %34072 = vmatmul.mubr.f32.vlgmr.msra.gmra.mrb[22].mxu1 %v10677_v44 }
 0x64c   :  { %34076 = vmatprep.mubr.f32.mxu1 %v10665_v37  ;;  %34075 = vmatpush3.msra.mxu1 %v37359_v24 }
 0x64d   :  { %34079 = vmatprep.subr.mxu1 %v37337_v14 }
 0x653   :  { %34077 = vmatmul.mubr.f32.vlgmr.msra.gmra.mrb[22].mxu1 %v10675_v32 }
 0x654   :  { %34081 = vmatprep.mubr.f32.mxu1 %v10665_v37  ;;  %34080 = vmatpush3.msra.mxu1 %v37337_v14 }
 0x655   :  { %34114 = vmatprep.subr.mxu1 %v37337_v14 }
 0x65b   :  { %34082 = vmatmul.mubr.f32.vlgmr.msra.gmra.mrb[22].mxu1 %v10675_v32 }
 0x65c   :  { %34116 = vmatprep.mubr.f32.mxu1 %v11661_v57  ;;  %34115 = vmatpush3.msra.mxu1 %v37337_v14 }
 0x65d   :  { %34119 = vmatprep.subr.mxu1 %v37365_v26 }
 0x65f   :  { %34117 = vmatmul.mubr.f32.vlgmr.msra.gmra.mrb[24].mxu1 %v11671_v49 }
 0x660   :  { %34121 = vmatprep.mubr.f32.mxu1 %v11657_v43  ;;  %34120 = vmatpush3.msra.mxu1 %v37365_v26 }
 0x661   :  { %34124 = vmatprep.subr.mxu1 %v37356_v21 }
 0x667   :  { %34122 = vmatmul.mubr.f32.vlgmr.msra.gmra.mrb[24].mxu1 %v11667_v46 }
 0x668   :  { %34126 = vmatprep.mubr.f32.mxu1 %v11658_v45  ;;  %34125 = vmatpush3.msra.mxu1 %v37356_v21 }
 0x669   :  { %34129 = vmatprep.subr.mxu1 %v37337_v14 }
 0x66f   :  { %34127 = vmatmul.mubr.f32.vlgmr.msra.gmra.mrb[24].mxu1 %v11668_v47 }
 0x670   :  { %34131 = vmatprep.mubr.f32.mxu1 %v11659_v48  ;;  %34130 = vmatpush3.msra.mxu1 %v37337_v14 }
 0x671   :  { %34134 = vmatprep.subr.mxu1 %v37359_v24 }
 0x677   :  { %34132 = vmatmul.mubr.f32.vlgmr.msra.gmra.mrb[24].mxu1 %v11669_v54 }
 0x678   :  { %34136 = vmatprep.mubr.f32.mxu1 %v11657_v43  ;;  %34135 = vmatpush3.msra.mxu1 %v37359_v24 }
 0x679   :  { %34139 = vmatprep.subr.mxu1 %v37337_v14 }
 0x67f   :  { %34137 = vmatmul.mubr.f32.vlgmr.msra.gmra.mrb[24].mxu1 %v11667_v46 }
 0x680   :  { %34141 = vmatprep.mubr.f32.mxu1 %v11657_v43  ;;  %34140 = vmatpush3.msra.mxu1 %v37337_v14 }
 0x681   :  { %34174 = vmatprep.subr.mxu1 %v37337_v14 }
 0x687   :  { %34142 = vmatmul.mubr.f32.vlgmr.msra.gmra.mrb[24].mxu1 %v11667_v46 }
 0x688   :  { %34175 = vmatpush3.msra.mxu1 %v37337_v14 }
 0x689   :  { %34179 = vmatprep.subr.mxu1 %v37365_v26 }
 0x698   :  { %v13640_v51 = vpop.permute.xlu0 %13639 }
 0x699   :  { %v13638_v38 = vpop.permute.xlu1 %13637  ;;  %v13643_v44 = vsel %vm9109_vm2, %v13640_v51, 0 }
 0x69a   :  { %v34053_v58 = vpop.f32.mrb[20].mxu0  ;;  %v13641_v40 = vsel %vm9109_vm2, %v13638_v38, 0  ;;  %v37455_v35 = vand.u32 4294901760, %v13643_v44 }
 0x69b   :  { %v12581_v50 = vsel %vm9109_vm2, %v34053_v58, 0  ;;  %v10583_v52 = vpop.f32.mrb[21].mxu0  ;;  %15130 = vrot.lane.b32.xlu0 %v34053_v58, %s36615_s11  ;;  %v37452_v28 = vand.u32 4294901760, %v13641_v40 }
 0x69c   :  { %v37416_v53 = vand.u32 4294901760, %v12581_v50  ;;  %v12578_v60 = vsel %vm9109_vm2, %v10583_v52, 0  ;;  %v37419_v62 = vpop.permute.xlu0 %14633  ;;  %15128 = vrot.lane.b32.xlu1 %v10583_v52, %s36615_s11  ;;  %v37464_v41 = vsub.f32 %v13643_v44, %v37455_v35  ;;  %v21_v44 = vld [vmem:[%s38904_s1 + $0x50] sm:$0xff] }
 0x69d   :  { %v37422_v2 = vand.u32 4294901760, %v12578_v60  ;;  %v37424_v3 = vpop.permute.xlu1 %14631  ;;  %v13712_v30 = vsub.f32 %v13641_v40, %v37452_v28 }
 0x69e   :  { %v12660_v6 = vsub.f32 %v12581_v50, %v37416_v53  ;;  %v13723_v47 = vand.u32 4294901760, %v37464_v41 }
 0x69f   :  { %v12650_v22 = vsub.f32 %v12578_v60, %v37422_v2  ;;  %v13713_v43 = vand.u32 4294901760, %v13712_v30 }
 0x6a0   :  { %v12661_v7 = vand.u32 4294901760, %v12660_v6  ;;  %v11091_v9 = vpop.permute.xlu0 %11090  ;;  %v13724_v55 = vsub.f32 %v37464_v41, %v13723_v47 }
 0x6a1   :  { %v11094_v56 = vsel %vm9109_vm2, %v11091_v9, 0  ;;  %v11089_v15 = vpop.permute.xlu1 %11088  ;;  %v12651_v16 = vand.u32 4294901760, %v12650_v22  ;;  %v13714_v11 = vsub.f32 %v13712_v30, %v13713_v43 }
 0x6a2   :  { %v12662_v0 = vsub.f32 %v12660_v6, %v12661_v7  ;;  %v37429_v18 = vand.u32 4294901760, %v11094_v56  ;;  %v11092_v1 = vsel %vm9109_vm2, %v11089_v15, 0  ;;  %v13725_v38 = vand.u32 4294901760, %v13724_v55 }
 0x6a3   :  { %v12652_v19 = vsub.f32 %v12650_v22, %v12651_v16  ;;  %v37433_v25 = vand.u32 4294901760, %v11092_v1  ;;  %v13715_v51 = vand.u32 4294901760, %v13714_v11 }
 0x6a4   :  { %v11173_v20 = vsub.f32 %v11094_v56, %v37429_v18  ;;  %v12663_v32 = vand.u32 4294901760, %v12662_v0  ;;  %v12083_v42 = vpop.permute.xlu0 %12082 }
 0x6a5   :  { %v12653_v12 = vand.u32 4294901760, %v12652_v19  ;;  %v11163_v31 = vsub.f32 %v11092_v1, %v37433_v25  ;;  %v12081_v10 = vpop.permute.xlu1 %12080  ;;  %v12086_v46 = vsel %vm9109_vm2, %v12083_v42, 0 }
 0x6a6   :  { %v11174_v23 = vand.u32 4294901760, %v11173_v20  ;;  %v12084_v29 = vsel %vm9109_vm2, %v12081_v10, 0  ;;  %v37473_v48 = vand.u32 4294901760, %v12086_v46 }
 0x6a7   :  { %34176 = vmatprep.mubr.f32.mxu1 %v12653_v12  ;;  %v11164_v36 = vand.u32 4294901760, %v11163_v31  ;;  %v37467_v45 = vand.u32 4294901760, %v12084_v29 }
 0x6a8   :  { %34177 = vmatmul.mubr.f32.vlgmr.msra.gmra.mrb[26].mxu1 %v12663_v32  ;;  %v11175_v37 = vsub.f32 %v11173_v20, %v11174_v23  ;;  %v12165_v57 = vsub.f32 %v12086_v46, %v37473_v48 }
 0x6a9   :  { %34181 = vmatprep.mubr.f32.mxu1 %v37422_v2  ;;  %34180 = vmatpush3.msra.mxu1 %v37365_v26  ;;  %v11165_v39 = vsub.f32 %v11163_v31, %v11164_v36  ;;  %v12155_v54 = vsub.f32 %v12084_v29, %v37467_v45 }
 0x6aa   :  { %34184 = vmatprep.subr.mxu1 %v37356_v21  ;;  %v11176_v33 = vand.u32 4294901760, %v11175_v37  ;;  %v12166_v58 = vand.u32 4294901760, %v12165_v57 }
 0x6ab   :  { %v11166_v17 = vand.u32 4294901760, %v11165_v39  ;;  %v12156_v49 = vand.u32 4294901760, %v12155_v54 }
 0x6ac   :  { %v12167_v52 = vsub.f32 %v12165_v57, %v12166_v58 }
 0x6ad   :  { %34086 = vmatprep.mubr.f32.mxu0 %v11166_v17  ;;  %v12157_v50 = vsub.f32 %v12155_v54, %v12156_v49 }
 0x6ae   :  { %34087 = vmatmul.mubr.f32.vlgmr.msra.gmra.mrb[22].mxu0 %v11176_v33  ;;  %v12168_v60 = vand.u32 4294901760, %v12167_v52 }
 0x6af   :  { %34091 = vmatprep.mubr.f32.mxu0 %v37433_v25  ;;  %34090 = vmatpush3.msra.mxu0 %v37365_v26 }
 0x6b0   :  { %34182 = vmatmul.mubr.f32.vlgmr.msra.gmra.mrb[26].mxu1 %v37416_v53  ;;  %34094 = vmatprep.subr.mxu0 %v37356_v21 }
 0x6b1   :  { %34186 = vmatprep.mubr.f32.mxu1 %v12650_v22  ;;  %34185 = vmatpush3.msra.mxu1 %v37356_v21 }
 0x6b2   :  { %34189 = vmatprep.subr.mxu1 %v37337_v14 }
 0x6b6   :  { %34092 = vmatmul.mubr.f32.vlgmr.msra.gmra.mrb[22].mxu0 %v37429_v18 }
 0x6b7   :  { %34096 = vmatprep.mubr.f32.mxu0 %v11163_v31  ;;  %34095 = vmatpush3.msra.mxu0 %v37356_v21 }
 0x6b8   :  { %34187 = vmatmul.mubr.f32.vlgmr.msra.gmra.mrb[26].mxu1 %v12660_v6  ;;  %34099 = vmatprep.subr.mxu0 %v37337_v14  ;;  %v14637_v6 = vsel %vm9109_vm2, %v37419_v62, 0  ;;  %v13143_v62 = vpop.permute.xlu0 %13142 }
 0x6b9   :  { %34191 = vmatprep.mubr.f32.mxu1 %v12651_v16  ;;  %34190 = vmatpush3.msra.mxu1 %v37337_v14  ;;  %v37514_v9 = vand.u32 4294901760, %v14637_v6  ;;  %v13146_v0 = vsel %vm9109_vm2, %v13143_v62, 0 }
 0x6ba   :  { %34194 = vmatprep.subr.mxu1 %v37359_v24  ;;  %v37529_v19 = vand.u32 4294901760, %v13146_v0 }
 0x6bb   :  { %v14716_v15 = vsub.f32 %v14637_v6, %v37514_v9 }
 0x6bc   :  { %v14137_v10 = vpop.permute.xlu0 %14136 }
 0x6bd   :  { %v14717_v1 = vand.u32 4294901760, %v14716_v15  ;;  %v14140_v42 = vsel %vm9109_vm2, %v14137_v10, 0 }
 0x6be   :  { %34097 = vmatmul.mubr.f32.vlgmr.msra.gmra.mrb[22].mxu0 %v11173_v20 }
 0x6bf   :  { %34101 = vmatprep.mubr.f32.mxu0 %v11164_v36  ;;  %34100 = vmatpush3.msra.mxu0 %v37337_v14  ;;  %v14718_v12 = vsub.f32 %v14716_v15, %v14717_v1 }
 0x6c0   :  { %34192 = vmatmul.mubr.f32.vlgmr.msra.gmra.mrb[26].mxu1 %v12661_v7  ;;  %34104 = vmatprep.subr.mxu0 %v37359_v24  ;;  %v13141_v7 = vpop.permute.xlu1 %13140 }
 0x6c1   :  { %34196 = vmatprep.mubr.f32.mxu1 %v37422_v2  ;;  %34195 = vmatpush3.msra.mxu1 %v37359_v24  ;;  %v14719_v36 = vand.u32 4294901760, %v14718_v12 }
 0x6c2   :  { %34199 = vmatprep.subr.mxu1 %v37337_v14 }
 0x6c6   :  { %34102 = vmatmul.mubr.f32.vlgmr.msra.gmra.mrb[22].mxu0 %v11174_v23  ;;  %v13225_v23 = vsub.f32 %v13146_v0, %v37529_v19 }
 0x6c7   :  { %34106 = vmatprep.mubr.f32.mxu0 %v37433_v25  ;;  %34105 = vmatpush3.msra.mxu0 %v37359_v24 }
 0x6c8   :  { %34197 = vmatmul.mubr.f32.vlgmr.msra.gmra.mrb[26].mxu1 %v37416_v53  ;;  %34109 = vmatprep.subr.mxu0 %v37337_v14  ;;  %v13226_v37 = vand.u32 4294901760, %v13225_v23 }
 0x6c9   :  { %34201 = vmatprep.mubr.f32.mxu1 %v37422_v2  ;;  %34200 = vmatpush3.msra.mxu1 %v37337_v14  ;;  %v14635_v2 = vsel %vm9109_vm2, %v37424_v3, 0  ;;  %v13144_v3 = vsel %vm9109_vm2, %v13141_v7, 0 }
 0x6ca   :  { %34234 = vmatprep.subr.mxu1 %v37337_v14  ;;  %v37511_v22 = vand.u32 4294901760, %v14635_v2  ;;  %v13227_v17 = vsub.f32 %v13225_v23, %v13226_v37 }
 0x6cc   :  { %v14706_v56 = vsub.f32 %v14635_v2, %v37511_v22  ;;  %v13228_v40 = vand.u32 4294901760, %v13227_v17 }
 0x6ce   :  { %34107 = vmatmul.mubr.f32.vlgmr.msra.gmra.mrb[22].mxu0 %v37429_v18  ;;  %v14707_v16 = vand.u32 4294901760, %v14706_v56 }
 0x6cf   :  { %34111 = vmatprep.mubr.f32.mxu0 %v37433_v25  ;;  %34110 = vmatpush3.msra.mxu0 %v37337_v14 }
 0x6d0   :  { %34202 = vmatmul.mubr.f32.vlgmr.msra.gmra.mrb[26].mxu1 %v37416_v53  ;;  %34144 = vmatprep.subr.mxu0 %v37337_v14  ;;  %v12158_v53 = vand.u32 4294901760, %v12157_v50  ;;  %v14708_v25 = vsub.f32 %v14706_v56, %v14707_v16 }
 0x6d1   :  { %34236 = vmatprep.mubr.f32.mxu1 %v13715_v51  ;;  %34235 = vmatpush3.msra.mxu1 %v37337_v14 }
 0x6d2   :  { %34239 = vmatprep.subr.mxu1 %v37365_v26  ;;  %v14709_v32 = vand.u32 4294901760, %v14708_v25 }
 0x6d4   :  { %34237 = vmatmul.mubr.f32.vlgmr.msra.gmra.mrb[28].mxu1 %v13725_v38 }
 0x6d5   :  { %34241 = vmatprep.mubr.f32.mxu1 %v37452_v28  ;;  %34240 = vmatpush3.msra.mxu1 %v37365_v26 }
 0x6d6   :  { %34244 = vmatprep.subr.mxu1 %v37356_v21  ;;  %34112 = vmatmul.mubr.f32.vlgmr.msra.gmra.mrb[22].mxu0 %v37429_v18  ;;  %v37524_v18 = vand.u32 4294901760, %v13144_v3 }
 0x6d7   :  { %34146 = vmatprep.mubr.f32.mxu0 %v12158_v53  ;;  %34145 = vmatpush3.msra.mxu0 %v37337_v14 }
 0x6d8   :  { %34149 = vmatprep.subr.mxu0 %v37365_v26  ;;  %v13215_v20 = vsub.f32 %v13144_v3, %v37524_v18 }
 0x6da   :  { %34147 = vmatmul.mubr.f32.vlgmr.msra.gmra.mrb[24].mxu0 %v12168_v60  ;;  %v13216_v31 = vand.u32 4294901760, %v13215_v20 }
 0x6db   :  { %34151 = vmatprep.mubr.f32.mxu0 %v37467_v45  ;;  %34150 = vmatpush3.msra.mxu0 %v37365_v26 }
 0x6dc   :  { %34242 = vmatmul.mubr.f32.vlgmr.msra.gmra.mrb[28].mxu1 %v37455_v35  ;;  %34154 = vmatprep.subr.mxu0 %v37356_v21  ;;  %v13217_v39 = vsub.f32 %v13215_v20, %v13216_v31 }
 0x6dd   :  { %34246 = vmatprep.mubr.f32.mxu1 %v13712_v30  ;;  %34245 = vmatpush3.msra.mxu1 %v37356_v21  ;;  %v14135_v30 = vpop.permute.xlu1 %14134 }
 0x6de   :  { %34249 = vmatprep.subr.mxu1 %v37337_v14  ;;  %v13218_v33 = vand.u32 4294901760, %v13217_v39  ;;  %v14138_v29 = vsel %vm9109_vm2, %v14135_v30, 0 }
 0x6e2   :  { %34152 = vmatmul.mubr.f32.vlgmr.msra.gmra.mrb[24].mxu0 %v37473_v48 }
 0x6e3   :  { %34156 = vmatprep.mubr.f32.mxu0 %v12155_v54  ;;  %34155 = vmatpush3.msra.mxu0 %v37356_v21 }
 0x6e4   :  { %34247 = vmatmul.mubr.f32.vlgmr.msra.gmra.mrb[28].mxu1 %v37464_v41  ;;  %34159 = vmatprep.subr.mxu0 %v37337_v14 }
 0x6e5   :  { %34251 = vmatprep.mubr.f32.mxu1 %v13713_v43  ;;  %34250 = vmatpush3.msra.mxu1 %v37337_v14  ;;  %v37575_v43 = vand.u32 4294901760, %v14138_v29 }
 0x6e6   :  { %34254 = vmatprep.subr.mxu1 %v37359_v24 }
 0x6ea   :  { %34157 = vmatmul.mubr.f32.vlgmr.msra.gmra.mrb[24].mxu0 %v12165_v57 }
 0x6eb   :  { %34161 = vmatprep.mubr.f32.mxu0 %v12156_v49  ;;  %34160 = vmatpush3.msra.mxu0 %v37337_v14 }
 0x6ec   :  { %34252 = vmatmul.mubr.f32.vlgmr.msra.gmra.mrb[28].mxu1 %v13723_v47  ;;  %34164 = vmatprep.subr.mxu0 %v37359_v24  ;;  %v14209_v47 = vsub.f32 %v14138_v29, %v37575_v43 }
 0x6ed   :  { %34256 = vmatprep.mubr.f32.mxu1 %v37452_v28  ;;  %34255 = vmatpush3.msra.mxu1 %v37359_v24 }
 0x6ee   :  { %34259 = vmatprep.subr.mxu1 %v37337_v14  ;;  %v14210_v11 = vand.u32 4294901760, %v14209_v47 }
 0x6f0   :  { %v14211_v49 = vsub.f32 %v14209_v47, %v14210_v11 }
 0x6f2   :  { %34162 = vmatmul.mubr.f32.vlgmr.msra.gmra.mrb[24].mxu0 %v12166_v58  ;;  %v14212_v50 = vand.u32 4294901760, %v14211_v49 }
 0x6f3   :  { %34166 = vmatprep.mubr.f32.mxu0 %v37467_v45  ;;  %34165 = vmatpush3.msra.mxu0 %v37359_v24 }
 0x6f4   :  { %34257 = vmatmul.mubr.f32.vlgmr.msra.gmra.mrb[28].mxu1 %v37455_v35  ;;  %34169 = vmatprep.subr.mxu0 %v37337_v14 }
 0x6f5   :  { %34261 = vmatprep.mubr.f32.mxu1 %v37452_v28  ;;  %34260 = vmatpush3.msra.mxu1 %v37337_v14  ;;  %v15694_v28 = vsel %vm9109_vm2, %v21_v44, 0 }
 0x6f6   :  { %34294 = vmatprep.subr.mxu1 %v37337_v14 }
 0x6fa   :  { %34167 = vmatmul.mubr.f32.vlgmr.msra.gmra.mrb[24].mxu0 %v37473_v48 }
 0x6fb   :  { %34171 = vmatprep.mubr.f32.mxu0 %v37467_v45  ;;  %34170 = vmatpush3.msra.mxu0 %v37337_v14  ;;  %v37580_v45 = vand.u32 4294901760, %v14140_v42 }
 0x6fc   :  { %34262 = vmatmul.mubr.f32.vlgmr.msra.gmra.mrb[28].mxu1 %v37455_v35  ;;  %34204 = vmatprep.subr.mxu0 %v37337_v14  ;;  %v37565_v35 = vand.u32 4294901760, %v15694_v28 }
 0x6fd   :  { %34296 = vmatprep.mubr.f32.mxu1 %v14709_v32  ;;  %34295 = vmatpush3.msra.mxu1 %v37337_v14  ;;  %v14219_v54 = vsub.f32 %v14140_v42, %v37580_v45 }
 0x6fe   :  { %34299 = vmatprep.subr.mxu1 %v37365_v26  ;;  %v15763_v41 = vsub.f32 %v15694_v28, %v37565_v35 }
 0x6ff   :  { %v14220_v57 = vand.u32 4294901760, %v14219_v54 }
 0x700   :  { %34297 = vmatmul.mubr.f32.vlgmr.msra.gmra.mrb[30].mxu1 %v14719_v36  ;;  %v15764_v46 = vand.u32 4294901760, %v15763_v41 }
 0x701   :  { %34301 = vmatprep.mubr.f32.mxu1 %v37511_v22  ;;  %34300 = vmatpush3.msra.mxu1 %v37365_v26  ;;  %v14221_v51 = vsub.f32 %v14219_v54, %v14220_v57 }
 0x702   :  { %34304 = vmatprep.subr.mxu1 %v37356_v21  ;;  %34172 = vmatmul.mubr.f32.vlgmr.msra.gmra.mrb[24].mxu0 %v37473_v48  ;;  %v15765_v48 = vsub.f32 %v15763_v41, %v15764_v46 }
 0x703   :  { %34206 = vmatprep.mubr.f32.mxu0 %v13218_v33  ;;  %34205 = vmatpush3.msra.mxu0 %v37337_v14  ;;  %v14222_v52 = vand.u32 4294901760, %v14221_v51 }
 0x704   :  { %34209 = vmatprep.subr.mxu0 %v37365_v26  ;;  %v15766_v55 = vand.u32 4294901760, %v15765_v48 }
 0x706   :  { %34207 = vmatmul.mubr.f32.vlgmr.msra.gmra.mrb[26].mxu0 %v13228_v40 }
 0x707   :  { %34211 = vmatprep.mubr.f32.mxu0 %v37524_v18  ;;  %34210 = vmatpush3.msra.mxu0 %v37365_v26 }
 0x708   :  { %34302 = vmatmul.mubr.f32.vlgmr.msra.gmra.mrb[30].mxu1 %v37514_v9  ;;  %34214 = vmatprep.subr.mxu0 %v37356_v21 }
 0x709   :  { %34306 = vmatprep.mubr.f32.mxu1 %v14706_v56  ;;  %34305 = vmatpush3.msra.mxu1 %v37356_v21 }
 0x70a   :  { %34309 = vmatprep.subr.mxu1 %v37337_v14 }
 0x70e   :  { %34212 = vmatmul.mubr.f32.vlgmr.msra.gmra.mrb[26].mxu0 %v37529_v19 }
 0x70f   :  { %34216 = vmatprep.mubr.f32.mxu0 %v13215_v20  ;;  %34215 = vmatpush3.msra.mxu0 %v37356_v21 }
 0x710   :  { %34307 = vmatmul.mubr.f32.vlgmr.msra.gmra.mrb[30].mxu1 %v14716_v15  ;;  %34219 = vmatprep.subr.mxu0 %v37337_v14 }
 0x711   :  { %34311 = vmatprep.mubr.f32.mxu1 %v14707_v16  ;;  %34310 = vmatpush3.msra.mxu1 %v37337_v14 }
 0x712   :  { %34314 = vmatprep.subr.mxu1 %v37359_v24 }
 0x716   :  { %34217 = vmatmul.mubr.f32.vlgmr.msra.gmra.mrb[26].mxu0 %v13225_v23 }
 0x717   :  { %34221 = vmatprep.mubr.f32.mxu0 %v13216_v31  ;;  %34220 = vmatpush3.msra.mxu0 %v37337_v14 }
 0x718   :  { %34312 = vmatmul.mubr.f32.vlgmr.msra.gmra.mrb[30].mxu1 %v14717_v1  ;;  %34224 = vmatprep.subr.mxu0 %v37359_v24 }
 0x719   :  { %34316 = vmatprep.mubr.f32.mxu1 %v37511_v22  ;;  %34315 = vmatpush3.msra.mxu1 %v37359_v24 }
 0x71a   :  { %34319 = vmatprep.subr.mxu1 %v37337_v14 }
 0x71e   :  { %34222 = vmatmul.mubr.f32.vlgmr.msra.gmra.mrb[26].mxu0 %v13226_v37 }
 0x71f   :  { %34226 = vmatprep.mubr.f32.mxu0 %v37524_v18  ;;  %34225 = vmatpush3.msra.mxu0 %v37359_v24 }
 0x720   :  { %34317 = vmatmul.mubr.f32.vlgmr.msra.gmra.mrb[30].mxu1 %v37514_v9  ;;  %34229 = vmatprep.subr.mxu0 %v37337_v14 }
 0x721   :  { %34321 = vmatprep.mubr.f32.mxu1 %v37511_v22  ;;  %34320 = vmatpush3.msra.mxu1 %v37337_v14 }
 0x722   :  { %34354 = vmatprep.subr.mxu1 %v36610_v34 }
 0x726   :  { %34227 = vmatmul.mubr.f32.vlgmr.msra.gmra.mrb[26].mxu0 %v37529_v19 }
 0x727   :  { %34231 = vmatprep.mubr.f32.mxu0 %v37524_v18  ;;  %34230 = vmatpush3.msra.mxu0 %v37337_v14 }
 0x728   :  { %34322 = vmatmul.mubr.f32.vlgmr.msra.gmra.mrb[30].mxu1 %v37514_v9  ;;  %34264 = vmatprep.subr.mxu0 %v37337_v14 }
 0x729   :  { %34355 = vmatpush3.msra.mxu1 %v37287_v59  ;;  %34356 = vmatprep.mubr.msk.f32.mxu1 %vm36609_vm1, %v36610_v34 }
 0x72a   :  { %34359 = vmatprep.subr.mxu1 %v36610_v34 }
 0x72c   :  { %34357 = vmatmul.mubr.f32.vlgmr.msra.gmra.mrb[32].mxu1 %v15766_v55 }
 0x72d   :  { %34360 = vmatpush3.msra.mxu1 %v37310_v61  ;;  %34361 = vmatprep.mubr.msk.f32.mxu1 %vm36609_vm1, %v36610_v34  ;;  %v15131_v61 = vpop.permute.xlu0 %15130 }
 0x72e   :  { %v37600_v38 = vpop.f32.mrb[22].mxu1  ;;  %34364 = vmatprep.subr.mxu1 %v36610_v34  ;;  %34232 = vmatmul.mubr.f32.vlgmr.msra.gmra.mrb[26].mxu0 %v37529_v19  ;;  %v15134_v60 = vsel %vm9109_vm2, %v15131_v61, 0 }
 0x72f   :  { %v37603_v58 = vpop.f32.mrb[23].mxu1  ;;  %34266 = vmatprep.mubr.f32.mxu0 %v14212_v50  ;;  %34265 = vmatpush3.msra.mxu0 %v37337_v14  ;;  %v13073_v31 = vmul.f32 %v37600_v38, %v37600_v38 }
 0x730   :  { %34269 = vmatprep.subr.mxu0 %v37365_v26  ;;  %v13072_v36 = vmul.f32 %v37603_v58, %v37603_v58 }
 0x732   :  { %34267 = vmatmul.mubr.f32.vlgmr.msra.gmra.mrb[28].mxu0 %v14222_v52 }
 0x733   :  { %34271 = vmatprep.mubr.f32.mxu0 %v37575_v43  ;;  %34270 = vmatpush3.msra.mxu0 %v37365_v26 }
 0x734   :  { %34362 = vmatmul.mubr.f32.vlgmr.msra.gmra.mrb[32].mxu1 %v37565_v35  ;;  %34274 = vmatprep.subr.mxu0 %v37356_v21 }
 0x735   :  { %34365 = vmatpush3.msra.mxu1 %v37297_v63  ;;  %34366 = vmatprep.mubr.msk.f32.mxu1 %vm36609_vm1, %v36610_v34  ;;  %v15129_v63 = vpop.permute.xlu1 %15128 }
 0x736   :  { %34369 = vmatprep.subr.mxu1 %v36610_v34  ;;  %v15132_v53 = vsel %vm9109_vm2, %v15129_v63, 0 }
 0x737   :  { %v15202_v2 = vand.u32 4294901760, %v15132_v53 }
 0x739   :  { %v15203_v6 = vsub.f32 %v15132_v53, %v15202_v2 }
 0x73a   :  { %34272 = vmatmul.mubr.f32.vlgmr.msra.gmra.mrb[28].mxu0 %v37580_v45 }
 0x73b   :  { %34276 = vmatprep.mubr.f32.mxu0 %v14209_v47  ;;  %34275 = vmatpush3.msra.mxu0 %v37356_v21  ;;  %v15204_v7 = vand.u32 4294901760, %v15203_v6 }
 0x73c   :  { %34367 = vmatmul.mubr.f32.vlgmr.msra.gmra.mrb[32].mxu1 %v15763_v41  ;;  %34279 = vmatprep.subr.mxu0 %v37337_v14 }
 0x73d   :  { %34370 = vmatpush3.msra.mxu1 %v37287_v59  ;;  %34371 = vmatprep.mubr.msk.f32.mxu1 %vm36609_vm1, %v36610_v34  ;;  %v15205_v9 = vsub.f32 %v15203_v6, %v15204_v7 }
 0x73e   :  { %34374 = vmatprep.subr.mxu1 %v36610_v34 }
 0x73f   :  { %v15206_v15 = vand.u32 4294901760, %v15205_v9 }
 0x742   :  { %34277 = vmatmul.mubr.f32.vlgmr.msra.gmra.mrb[28].mxu0 %v14219_v54 }
 0x743   :  { %34281 = vmatprep.mubr.f32.mxu0 %v14210_v11  ;;  %34280 = vmatpush3.msra.mxu0 %v37337_v14 }
 0x744   :  { %34372 = vmatmul.mubr.f32.vlgmr.msra.gmra.mrb[32].mxu1 %v15764_v46  ;;  %34284 = vmatprep.subr.mxu0 %v37359_v24 }
 0x745   :  { %34375 = vmatpush3.msra.mxu1 %v37303_v4  ;;  %34376 = vmatprep.mubr.msk.f32.mxu1 %vm36609_vm1, %v36610_v34  ;;  %v15212_v4 = vand.u32 4294901760, %v15134_v60 }
 0x746   :  { %34379 = vmatprep.subr.mxu1 %v36610_v34 }
 0x747   :  { %v15213_v22 = vsub.f32 %v15134_v60, %v15212_v4 }
 0x74a   :  { %34282 = vmatmul.mubr.f32.vlgmr.msra.gmra.mrb[28].mxu0 %v14220_v57 }
 0x74b   :  { %34286 = vmatprep.mubr.f32.mxu0 %v37575_v43  ;;  %34285 = vmatpush3.msra.mxu0 %v37359_v24 }
 0x74c   :  { %34377 = vmatmul.mubr.f32.vlgmr.msra.gmra.mrb[32].mxu1 %v37565_v35  ;;  %34289 = vmatprep.subr.mxu0 %v37337_v14 }
 0x74d   :  { %34380 = vmatpush3.msra.mxu1 %v37287_v59  ;;  %34381 = vmatprep.mubr.msk.f32.mxu1 %vm36609_vm1, %v36610_v34  ;;  %v15214_v59 = vand.u32 4294901760, %v15213_v22 }
 0x74e   :  { %34414 = vmatprep.subr.mxu1 %v36610_v34 }
 0x74f   :  { %v15215_v56 = vsub.f32 %v15213_v22, %v15214_v59 }
 0x751   :  { %v15216_v16 = vand.u32 4294901760, %v15215_v56 }
 0x752   :  { %34287 = vmatmul.mubr.f32.vlgmr.msra.gmra.mrb[28].mxu0 %v37580_v45 }
 0x753   :  { %34291 = vmatprep.mubr.f32.mxu0 %v37575_v43  ;;  %34290 = vmatpush3.msra.mxu0 %v37337_v14 }
 0x754   :  { %34382 = vmatmul.mubr.f32.vlgmr.msra.gmra.mrb[32].mxu1 %v37565_v35  ;;  %34324 = vmatprep.subr.mxu0 %v37337_v14 }
 0x755   :  { %34416 = vmatprep.mubr.msk.f32.mxu1 %vm36609_vm1, %v36610_v34 }
 0x75a   :  { %v34143_v62 = vpop.f32.mrb[24].mxu1  ;;  %34292 = vmatmul.mubr.f32.vlgmr.msra.gmra.mrb[28].mxu0 %v37580_v45 }
 0x75b   :  { %v12070_v3 = vpop.f32.mrb[25].mxu1  ;;  %34326 = vmatprep.mubr.f32.mxu0 %v15206_v15  ;;  %34325 = vmatpush3.msra.mxu0 %v37337_v14  ;;  %v13085_v17 = vsub.f32 %v34143_v62, %v13073_v31 }
 0x75c   :  { %34329 = vmatprep.subr.mxu0 %v37365_v26  ;;  %v13084_v44 = vsub.f32 %v12070_v3, %v13072_v36 }
 0x75e   :  { %34327 = vmatmul.mubr.f32.vlgmr.msra.gmra.mrb[30].mxu0 %v15216_v16 }
 0x75f   :  { %34331 = vmatprep.mubr.f32.mxu0 %v15202_v2  ;;  %34330 = vmatpush3.msra.mxu0 %v37365_v26 }
 0x760   :  { %34334 = vmatprep.subr.mxu0 %v37356_v21 }
 0x766   :  { %34332 = vmatmul.mubr.f32.vlgmr.msra.gmra.mrb[30].mxu0 %v15212_v4 }
 0x767   :  { %34336 = vmatprep.mubr.f32.mxu0 %v15203_v6  ;;  %34335 = vmatpush3.msra.mxu0 %v37356_v21 }
 0x768   :  { %34339 = vmatprep.subr.mxu0 %v37337_v14 }
 0x76e   :  { %34337 = vmatmul.mubr.f32.vlgmr.msra.gmra.mrb[30].mxu0 %v15213_v22 }
 0x76f   :  { %34341 = vmatprep.mubr.f32.mxu0 %v15204_v7  ;;  %34340 = vmatpush3.msra.mxu0 %v37337_v14 }
 0x770   :  { %34344 = vmatprep.subr.mxu0 %v37359_v24 }
 0x776   :  { %34342 = vmatmul.mubr.f32.vlgmr.msra.gmra.mrb[30].mxu0 %v15214_v59 }
 0x777   :  { %34346 = vmatprep.mubr.f32.mxu0 %v15202_v2  ;;  %34345 = vmatpush3.msra.mxu0 %v37359_v24 }
 0x778   :  { %34349 = vmatprep.subr.mxu0 %v37337_v14 }
 0x77e   :  { %34347 = vmatmul.mubr.f32.vlgmr.msra.gmra.mrb[30].mxu0 %v15212_v4 }
 0x77f   :  { %34351 = vmatprep.mubr.f32.mxu0 %v15202_v2  ;;  %34350 = vmatpush3.msra.mxu0 %v37337_v14  ;;  %v37666_v14 = vld [vmem:[%s38904_s1 + $0x58] sm:$0xff] }
 0x780   :  { %34384 = vmatprep.subr.mxu0 %v36610_v34  ;;  %v37669_v25 = vand.u32 4294901760, %v37666_v14 }
 0x782   :  { %34415 = vmatpush3.msra.mxu1 %v37669_v25 }
 0x783   :  { %34419 = vmatprep.subr.mxu1 %v36610_v34 }
 0x786   :  { %34352 = vmatmul.mubr.f32.vlgmr.msra.gmra.mrb[30].mxu0 %v15212_v4 }
 0x787   :  { %34386 = vmatprep.mubr.msk.f32.mxu0 %vm36609_vm1, %v36610_v34  ;;  %34385 = vmatpush3.msra.mxu0 %v37669_v25 }
 0x788   :  { %34389 = vmatprep.subr.mxu0 %v36610_v34 }
 0x7a3   :  { %v34203_v21 = vpop.f32.mrb[26].mxu1 }
 0x7a4   :  { %v13062_v26 = vpop.f32.mrb[27].mxu1 }
 0x7a9   :  { %v34113_v0 = vpop.f32.mrb[22].mxu0 }
 0x7aa   :  { %v13077_v18 = vmul.f32 %v34113_v0, %v37600_v38  ;;  %v11575_v1 = vpop.f32.mrb[23].mxu0  ;;  %v13075_v32 = vmul.f32 %v34113_v0, %v34113_v0 }
 0x7ab   :  { %v13076_v24 = vmul.f32 %v11575_v1, %v37603_v58  ;;  %v13074_v37 = vmul.f32 %v11575_v1, %v11575_v1 }
 0x7ac   :  { %v13079_v19 = vsub.f32 %v34203_v21, %v13077_v18  ;;  %v13103_v35 = vadd.f32 %v13075_v32, %v13073_v31  ;;  %v13097_v48 = vmul.f32 2.0, %v13077_v18 }
 0x7ad   :  { %v13078_v20 = vsub.f32 %v13062_v26, %v13076_v24  ;;  %v13102_v10 = vadd.f32 %v13074_v37, %v13072_v36  ;;  %v13096_v54 = vmul.f32 2.0, %v13076_v24 }
 0x7ae   :  { %v13105_v43 = vadd.f32 0.0001, %v13103_v35  ;;  %v13081_v45 = vmul.f32 2.0, %v13079_v19  ;;  %v13099_v51 = vadd.f32 0.0001, %v13097_v48 }
 0x7af   :  { %v13104_v46 = vadd.f32 0.0001, %v13102_v10  ;;  %v13080_v47 = vmul.f32 2.0, %v13078_v20  ;;  %v13098_v58 = vadd.f32 0.0001, %v13096_v54 }
 0x7b0   :  { %v13083_v11 = vadd.f32 0.0009, %v13081_v45 }
 0x7b1   :  { %v13082_v57 = vadd.f32 0.0009, %v13080_v47 }
 0x7cf   :  { %v34263_v12 = vpop.f32.mrb[28].mxu1 }
 0x7d0   :  { %v14124_v23 = vpop.f32.mrb[29].mxu1  ;;  %v15628_v56 = vmul.f32 %v34263_v12, %v34263_v12 }
 0x7d1   :  { %v15627_v62 = vmul.f32 %v14124_v23, %v14124_v23 }
 0x7d5   :  { %v34173_v39 = vpop.f32.mrb[24].mxu0 }
 0x7d6   :  { %v13087_v33 = vsub.f32 %v34173_v39, %v13075_v32  ;;  %v12567_v40 = vpop.f32.mrb[25].mxu0  ;;  %v37693_v32 = vsub.f32 %v37666_v14, %v37669_v25 }
 0x7d7   :  { %v13086_v28 = vsub.f32 %v12567_v40, %v13074_v37 }
 0x7d8   :  { %v13089_v30 = vadd.f32 %v13087_v33, %v13085_v17 }
 0x7d9   :  { %v13088_v29 = vadd.f32 %v13086_v28, %v13084_v44 }
 0x7da   :  { %v13091_v41 = vadd.f32 0.0009, %v13089_v30 }
 0x7db   :  { %v13090_v42 = vadd.f32 0.0009, %v13088_v29 }
 0x7dc   :  { %36573 = vrcp.f32 %v13091_v41 }
 0x7dd   :  { %36575 = vrcp.f32 %v13090_v42 }
 0x7de   :  { %36577 = vrcp.f32 %v13105_v43 }
 0x7df   :  { %36579 = vrcp.f32 %v13104_v46 }
 0x7e6   :  { %v36574_v55 = vpop.eup %36573 }
 0x7e7   :  { %v36576_v49 = vpop.eup %36575  ;;  %v13095_v38 = vmul.f32 %v36574_v55, %v13083_v11 }
 0x7e8   :  { %v13094_v50 = vmul.f32 %v36576_v49, %v13082_v57  ;;  %v36578_v61 = vpop.eup %36577 }
 0x7e9   :  { %v13127_v52 = vsel %vm13112_vm4, %v13095_v38, 0.0  ;;  %v13101_v63 = vmul.f32 %v13099_v51, %v13095_v38  ;;  %v36580_v2 = vpop.eup %36579 }
 0x7ea   :  { %v13126_v53 = vsel %vm13110_vm5, %v13094_v50, 0.0  ;;  %v13100_v60 = vmul.f32 %v13098_v58, %v13094_v50 }
 0x7eb   :  { %v37681_v4 = vadd.f32 %v13127_v52, %v13126_v53  ;;  %v13109_v6 = vmul.f32 %v36578_v61, %v13101_v63 }
 0x7ec   :  { %v13108_v22 = vmul.f32 %v36580_v2, %v13100_v60 }
 0x7ed   :  { %v13113_v7 = vsel %vm13112_vm4, %v13109_v6, 0.0 }
 0x7ee   :  { %v13111_v59 = vsel %vm13110_vm5, %v13108_v22, 0.0 }
 0x7ef   :  { %v37685_v9 = vadd.f32 %v13113_v7, %v13111_v59 }
 0x7fb   :  { %v34323_v3 = vpop.f32.mrb[30].mxu1 }
 0x7fc   :  { %v15640_v15 = vsub.f32 %v34323_v3, %v15628_v56  ;;  %v15118_v16 = vpop.f32.mrb[31].mxu1 }
 0x7fd   :  { %v15639_v21 = vsub.f32 %v15118_v16, %v15627_v62 }
 0x801   :  { %v34233_v26 = vpop.f32.mrb[26].mxu0 }
 0x802   :  { %v15626_v0 = vmul.f32 %v34233_v26, %v34233_v26  ;;  %v37687_v18 = vmul.f32 %v34263_v12, %v34233_v26  ;;  %v13627_v1 = vpop.f32.mrb[27].mxu0  ;;  %v37699_v12 = vand.u32 4294901760, %v37693_v32 }
 0x803   :  { %v15625_v24 = vmul.f32 %v13627_v1, %v13627_v1  ;;  %v37689_v19 = vmul.f32 %v14124_v23, %v13627_v1 }
 0x804   :  { %v15656_v20 = vadd.f32 %v15628_v56, %v15626_v0  ;;  %v16225_v33 = vsub.f32 %v37693_v32, %v37699_v12  ;;  %v15650_v57 = vmul.f32 2.0, %v37687_v18 }
 0x805   :  { %v15655_v31 = vadd.f32 %v15627_v62, %v15625_v24  ;;  %v15649_v51 = vmul.f32 2.0, %v37689_v19 }
 0x806   :  { %v37704_v30 = vand.u32 4294901760, %v16225_v33  ;;  %v15658_v45 = vadd.f32 0.0001, %v15656_v20  ;;  %v15652_v61 = vadd.f32 0.0001, %v15650_v57 }
 0x807   :  { %v15657_v47 = vadd.f32 0.0001, %v15655_v31  ;;  %v15651_v60 = vadd.f32 0.0001, %v15649_v51 }
 0x827   :  { %v16138_v36 = vpop.f32.mrb[32].mxu1 }
 0x828   :  { %v16143_v37 = vsel %vm9109_vm2, %v16138_v36, 0  ;;  %17041 = vrot.lane.b32.xlu0 %v16138_v36, %s36607_s22  ;;  %16591 = vrot.lane.b32.xlu1 %v16138_v36, %s36615_s11  ;;  %v34383_v39 = vpop.f32.mrb[33].mxu1  ;;  %s36619_s22 = smov 124  }
 0x829   :  { %v16211_v17 = vand.u32 4294901760, %v16143_v37 }
 0x82b   :  { %v16212_v23 = vsub.f32 %v16143_v37, %v16211_v17 }
 0x82c   :  { %17491 = vrot.lane.b32.xlu1 %v16138_v36, %s36614_s10 }
 0x82d   :  { %v16213_v14 = vand.u32 4294901760, %v16212_v23  ;;  %v34293_v40 = vpop.f32.mrb[28].mxu0 }
 0x82e   :  { %v15638_v28 = vsub.f32 %v34293_v40, %v15626_v0  ;;  %v14621_v35 = vpop.f32.mrb[29].mxu0 }
 0x82f   :  { %v16214_v44 = vsub.f32 %v16212_v23, %v16213_v14  ;;  %v15637_v10 = vsub.f32 %v14621_v35, %v15625_v24 }
 0x830   :  { %v15642_v41 = vadd.f32 %v15640_v15, %v15638_v28 }
 0x831   :  { %v16215_v29 = vand.u32 4294901760, %v16214_v44  ;;  %v15641_v42 = vadd.f32 %v15639_v21, %v15637_v10 }
 0x832   :  { %v15644_v43 = vadd.f32 0.0009, %v15642_v41 }
 0x833   :  { %34387 = vmatmul.mubr.f32.vlgmr.msra.gmra.mrb[32].mxu0 %v16215_v29  ;;  %v15643_v46 = vadd.f32 0.0009, %v15641_v42 }
 0x834   :  { %34390 = vmatpush3.msra.mxu0 %v37704_v30  ;;  %34391 = vmatprep.mubr.msk.f32.mxu0 %vm36609_vm1, %v36610_v34  ;;  %36581 = vrcp.f32 %v15644_v43 }
 0x835   :  { %34394 = vmatprep.subr.mxu0 %v36610_v34  ;;  %36583 = vrcp.f32 %v15643_v46 }
 0x836   :  { %36585 = vrcp.f32 %v15658_v45 }
 0x837   :  { %36587 = vrcp.f32 %v15657_v47 }
 0x83b   :  { %34392 = vmatmul.mubr.f32.vlgmr.msra.gmra.mrb[32].mxu0 %v16211_v17 }
 0x83c   :  { %34395 = vmatpush3.msra.mxu0 %v37693_v32  ;;  %34396 = vmatprep.mubr.msk.f32.mxu0 %vm36609_vm1, %v36610_v34 }
 0x83d   :  { %34399 = vmatprep.subr.mxu0 %v36610_v34 }
 0x83e   :  { %v36582_v50 = vpop.eup %36581 }
 0x83f   :  { %v36584_v63 = vpop.eup %36583 }
 0x840   :  { %v36586_v7 = vpop.eup %36585 }
 0x841   :  { %v36588_v62 = vpop.eup %36587 }
 0x843   :  { %34397 = vmatmul.mubr.f32.vlgmr.msra.gmra.mrb[32].mxu0 %v16212_v23 }
 0x844   :  { %34400 = vmatpush3.msra.mxu0 %v37669_v25  ;;  %34401 = vmatprep.mubr.msk.f32.mxu0 %vm36609_vm1, %v36610_v34 }
 0x845   :  { %34404 = vmatprep.subr.mxu0 %v36610_v34 }
 0x84b   :  { %34402 = vmatmul.mubr.f32.vlgmr.msra.gmra.mrb[32].mxu0 %v16213_v14 }
 0x84c   :  { %34405 = vmatpush3.msra.mxu0 %v37699_v12  ;;  %34406 = vmatprep.mubr.msk.f32.mxu0 %vm36609_vm1, %v36610_v34 }
 0x84d   :  { %34409 = vmatprep.subr.mxu0 %v36610_v34 }
 0x853   :  { %34407 = vmatmul.mubr.f32.vlgmr.msra.gmra.mrb[32].mxu0 %v16211_v17 }
 0x854   :  { %34410 = vmatpush3.msra.mxu0 %v37669_v25  ;;  %34411 = vmatprep.mubr.msk.f32.mxu0 %vm36609_vm1, %v36610_v34 }
 0x855   :  { %34444 = vmatprep.subr.mxu0 %v36610_v34 }
 0x859   :  { %v34353_v48 = vpop.f32.mrb[30].mxu0 }
 0x85a   :  { %v15632_v54 = vsub.f32 %v34353_v48, %v37687_v18  ;;  %v15615_v11 = vpop.f32.mrb[31].mxu0  ;;  %v23_v48 = vld [vmem:[%s38904_s1 + $0x60] sm:$0xff] }
 0x85b   :  { %34412 = vmatmul.mubr.f32.vlgmr.msra.gmra.mrb[32].mxu0 %v16211_v17  ;;  %v15631_v55 = vsub.f32 %v15615_v11, %v37689_v19 }
 0x85c   :  { %34445 = vmatpush3.msra.mxu0 %v37669_v25  ;;  %34446 = vmatprep.mubr.msk.f32.mxu0 %vm36609_vm1, %v36610_v34  ;;  %v15634_v49 = vmul.f32 2.0, %v15632_v54  ;;  %v17959_v54 = vsel %vm17953_vm6, %v23_v48, 0 }
 0x85d   :  { %34449 = vmatprep.subr.mxu0 %v36610_v34  ;;  %v15633_v38 = vmul.f32 2.0, %v15631_v55  ;;  %v37819_v11 = vand.u32 4294901760, %v17959_v54 }
 0x85e   :  { %v15636_v58 = vadd.f32 0.0009, %v15634_v49 }
 0x85f   :  { %v15635_v52 = vadd.f32 0.0009, %v15633_v38  ;;  %v37822_v55 = vsub.f32 %v17959_v54, %v37819_v11 }
 0x860   :  { %v15648_v53 = vmul.f32 %v36582_v50, %v15636_v58 }
 0x861   :  { %v15647_v2 = vmul.f32 %v36584_v63, %v15635_v52  ;;  %v37825_v49 = vand.u32 4294901760, %v37822_v55 }
 0x862   :  { %v15654_v6 = vmul.f32 %v15652_v61, %v15648_v53  ;;  %v15678_v22 = vsel %vm13112_vm4, %v15648_v53, 0.0 }
 0x863   :  { %v15653_v59 = vmul.f32 %v15651_v60, %v15647_v2  ;;  %v15677_v56 = vsel %vm13110_vm5, %v15647_v2, 0.0  ;;  %v18034_v58 = vsub.f32 %v37822_v55, %v37825_v49 }
 0x864   :  { %v37736_v3 = vadd.f32 %v15678_v22, %v15677_v56  ;;  %v15662_v15 = vmul.f32 %v36586_v7, %v15654_v6 }
 0x865   :  { %v15661_v16 = vmul.f32 %v36588_v62, %v15653_v59  ;;  %v37839_v60 = vand.u32 4294901760, %v18034_v58 }
 0x866   :  { %v15664_v21 = vsel %vm13112_vm4, %v15662_v15, 0.0 }
 0x867   :  { %v15663_v26 = vsel %vm13110_vm5, %v15661_v16, 0.0 }
 0x868   :  { %v37740_v0 = vadd.f32 %v15664_v21, %v15663_v26 }
 0x89a   :  { %v17042_v18 = vpop.permute.xlu0 %17041  ;;  %v16592_v1 = vpop.permute.xlu1 %16591 }
 0x89b   :  { %v17043_v24 = vsel %vm9109_vm2, %v17042_v18, 0  ;;  %v16593_v19 = vsel %vm9109_vm2, %v16592_v1, 0  ;;  %v24_v18 = vld [vmem:[%s38904_s1 + $0x68] sm:$0xff] }
 0x89c   :  { %v17111_v20 = vand.u32 4294901760, %v17043_v24  ;;  %v16661_v31 = vand.u32 4294901760, %v16593_v19  ;;  %v19318_v1 = vsel %vm17961_vm8, %v24_v18, 0 }
 0x89e   :  { %v17112_v36 = vsub.f32 %v17043_v24, %v17111_v20  ;;  %v16662_v37 = vsub.f32 %v16593_v19, %v16661_v31  ;;  %v17492_v44 = vpop.permute.xlu1 %17491  ;;  %v37906_v24 = vand.u32 4294901760, %v19318_v1 }
 0x89f   :  { %v17493_v28 = vsel %vm9109_vm2, %v17492_v44, 0 }
 0x8a0   :  { %v17113_v39 = vand.u32 4294901760, %v17112_v36  ;;  %v16663_v17 = vand.u32 4294901760, %v16662_v37  ;;  %v17561_v35 = vand.u32 4294901760, %v17493_v28 }
 0x8a2   :  { %v17114_v23 = vsub.f32 %v17112_v36, %v17113_v39  ;;  %v16664_v33 = vsub.f32 %v16662_v37, %v16663_v17  ;;  %v17562_v10 = vsub.f32 %v17493_v28, %v17561_v35 }
 0x8a4   :  { %v17115_v14 = vand.u32 4294901760, %v17114_v23  ;;  %v16665_v40 = vand.u32 4294901760, %v16664_v33  ;;  %v17563_v29 = vand.u32 4294901760, %v17562_v10  ;;  %v37945_v33 = vsub.f32 %v19318_v1, %v37906_v24 }
 0x8a6   :  { %34417 = vmatmul.mubr.f32.vlgmr.msra.gmra.mrb[34].mxu1 %v16665_v40  ;;  %34447 = vmatmul.mubr.f32.vlgmr.msra.gmra.mrb[34].mxu0 %v17115_v14  ;;  %v17564_v41 = vsub.f32 %v17562_v10, %v17563_v29  ;;  %v37948_v40 = vand.u32 4294901760, %v37945_v33 }
 0x8a7   :  { %34420 = vmatpush3.msra.mxu1 %v37704_v30  ;;  %34421 = vmatprep.mubr.msk.f32.mxu1 %vm36609_vm1, %v36610_v34 }
 0x8a8   :  { %34450 = vmatpush3.msra.mxu0 %v37704_v30  ;;  %34451 = vmatprep.mubr.msk.f32.mxu0 %vm36609_vm1, %v36610_v34  ;;  %v17565_v42 = vand.u32 4294901760, %v17564_v41 }
 0x8a9   :  { %34424 = vmatprep.subr.mxu1 %v36610_v34  ;;  %34454 = vmatprep.subr.mxu0 %v36610_v34 }
 0x8ae   :  { %34422 = vmatmul.mubr.f32.vlgmr.msra.gmra.mrb[34].mxu1 %v16661_v31  ;;  %34452 = vmatmul.mubr.f32.vlgmr.msra.gmra.mrb[34].mxu0 %v17111_v20 }
 0x8af   :  { %34425 = vmatpush3.msra.mxu1 %v37693_v32  ;;  %34426 = vmatprep.mubr.msk.f32.mxu1 %vm36609_vm1, %v36610_v34 }
 0x8b0   :  { %34455 = vmatpush3.msra.mxu0 %v37693_v32  ;;  %34456 = vmatprep.mubr.msk.f32.mxu0 %vm36609_vm1, %v36610_v34 }
 0x8b1   :  { %34429 = vmatprep.subr.mxu1 %v36610_v34  ;;  %34459 = vmatprep.subr.mxu0 %v36610_v34 }
 0x8b6   :  { %34427 = vmatmul.mubr.f32.vlgmr.msra.gmra.mrb[34].mxu1 %v16662_v37  ;;  %34457 = vmatmul.mubr.f32.vlgmr.msra.gmra.mrb[34].mxu0 %v17112_v36 }
 0x8b7   :  { %34430 = vmatpush3.msra.mxu1 %v37669_v25  ;;  %34431 = vmatprep.mubr.msk.f32.mxu1 %vm36609_vm1, %v36610_v34 }
 0x8b8   :  { %34460 = vmatpush3.msra.mxu0 %v37669_v25  ;;  %34461 = vmatprep.mubr.msk.f32.mxu0 %vm36609_vm1, %v36610_v34 }
 0x8b9   :  { %34434 = vmatprep.subr.mxu1 %v36610_v34  ;;  %34464 = vmatprep.subr.mxu0 %v36610_v34 }
 0x8be   :  { %34432 = vmatmul.mubr.f32.vlgmr.msra.gmra.mrb[34].mxu1 %v16663_v17  ;;  %34462 = vmatmul.mubr.f32.vlgmr.msra.gmra.mrb[34].mxu0 %v17113_v39 }
 0x8bf   :  { %34435 = vmatpush3.msra.mxu1 %v37699_v12  ;;  %34436 = vmatprep.mubr.msk.f32.mxu1 %vm36609_vm1, %v36610_v34 }
 0x8c0   :  { %34465 = vmatpush3.msra.mxu0 %v37699_v12  ;;  %34466 = vmatprep.mubr.msk.f32.mxu0 %vm36609_vm1, %v36610_v34 }
 0x8c1   :  { %34439 = vmatprep.subr.mxu1 %v36610_v34  ;;  %34469 = vmatprep.subr.mxu0 %v36610_v34 }
 0x8c6   :  { %34437 = vmatmul.mubr.f32.vlgmr.msra.gmra.mrb[34].mxu1 %v16661_v31  ;;  %34467 = vmatmul.mubr.f32.vlgmr.msra.gmra.mrb[34].mxu0 %v17111_v20 }
 0x8c7   :  { %34440 = vmatpush3.msra.mxu1 %v37669_v25  ;;  %34441 = vmatprep.mubr.msk.f32.mxu1 %vm36609_vm1, %v36610_v34 }
 0x8c8   :  { %34470 = vmatpush3.msra.mxu0 %v37669_v25  ;;  %34471 = vmatprep.mubr.msk.f32.mxu0 %vm36609_vm1, %v36610_v34 }
 0x8c9   :  { %34474 = vmatprep.subr.mxu1 %v36610_v34  ;;  %34504 = vmatprep.subr.mxu0 %v36610_v34 }
 0x8ce   :  { %34442 = vmatmul.mubr.f32.vlgmr.msra.gmra.mrb[34].mxu1 %v16661_v31  ;;  %34472 = vmatmul.mubr.f32.vlgmr.msra.gmra.mrb[34].mxu0 %v17111_v20 }
 0x8cf   :  { %34475 = vmatpush3.msra.mxu1 %v37669_v25  ;;  %34476 = vmatprep.mubr.msk.f32.mxu1 %vm36609_vm1, %v36610_v34 }
 0x8d0   :  { %34479 = vmatprep.subr.mxu1 %v36610_v34  ;;  %34506 = vmatprep.mubr.msk.f32.mxu0 %vm36609_vm1, %v36610_v34 }
 0x8d2   :  { %34477 = vmatmul.mubr.f32.vlgmr.msra.gmra.mrb[36].mxu1 %v17565_v42  ;;  %v19400_v42 = vsub.f32 %v37945_v33, %v37948_v40 }
 0x8d3   :  { %34480 = vmatpush3.msra.mxu1 %v37704_v30  ;;  %34481 = vmatprep.mubr.msk.f32.mxu1 %vm36609_vm1, %v36610_v34 }
 0x8d4   :  { %34484 = vmatprep.subr.mxu1 %v36610_v34 }
 0x8da   :  { %34482 = vmatmul.mubr.f32.vlgmr.msra.gmra.mrb[36].mxu1 %v17561_v35 }
 0x8db   :  { %34485 = vmatpush3.msra.mxu1 %v37693_v32  ;;  %34486 = vmatprep.mubr.msk.f32.mxu1 %vm36609_vm1, %v36610_v34 }
 0x8dc   :  { %34489 = vmatprep.subr.mxu1 %v36610_v34 }
 0x8e2   :  { %34487 = vmatmul.mubr.f32.vlgmr.msra.gmra.mrb[36].mxu1 %v17562_v10 }
 0x8e3   :  { %34490 = vmatpush3.msra.mxu1 %v37669_v25  ;;  %34491 = vmatprep.mubr.msk.f32.mxu1 %vm36609_vm1, %v36610_v34 }
 0x8e4   :  { %34494 = vmatprep.subr.mxu1 %v36610_v34 }
 0x8ea   :  { %34492 = vmatmul.mubr.f32.vlgmr.msra.gmra.mrb[36].mxu1 %v17563_v29 }
 0x8eb   :  { %34495 = vmatpush3.msra.mxu1 %v37699_v12  ;;  %34496 = vmatprep.mubr.msk.f32.mxu1 %vm36609_vm1, %v36610_v34 }
 0x8ec   :  { %34499 = vmatprep.subr.mxu1 %v36610_v34 }
 0x8f2   :  { %34497 = vmatmul.mubr.f32.vlgmr.msra.gmra.mrb[36].mxu1 %v17561_v35 }
 0x8f3   :  { %34500 = vmatpush3.msra.mxu1 %v37669_v25  ;;  %34501 = vmatprep.mubr.msk.f32.mxu1 %vm36609_vm1, %v36610_v34 }
 0x8f4   :  { %34534 = vmatprep.subr.mxu1 %v36610_v34 }
 0x8fa   :  { %34502 = vmatmul.mubr.f32.vlgmr.msra.gmra.mrb[36].mxu1 %v17561_v35 }
 0x8fb   :  { %34536 = vmatprep.mubr.msk.f32.mxu1 %vm36609_vm1, %v36610_v34 }
 0x92e   :  { %v16587_v32 = vpop.f32.mrb[32].mxu0 }
 0x92f   :  { %v34413_v30 = vpop.f32.mrb[33].mxu0 }
 0x9a1   :  { %v17037_v12 = vpop.f32.mrb[34].mxu1  ;;  %v17487_v43 = vpop.f32.mrb[34].mxu0 }
 0x9a2   :  { %17946 = vrot.lane.b32.xlu1 %v17487_v43, %s36612_s30  ;;  %v34473_v46 = vpop.f32.mrb[35].mxu0  ;;  %17942 = vrot.lane.b32.xlu0 %v17037_v12, %s36616_s16  ;;  %v34443_v25 = vpop.f32.mrb[35].mxu1  ;;  %v37958_v12 = vand.u32 4294901760, %v19400_v42 }
 0x9cd   :  { %v17937_v45 = vpop.f32.mrb[36].mxu1 }
 0x9ce   :  { %17950 = vrot.lane.b32.xlu0 %v17937_v45, %s36617_s17  ;;  %v34503_v47 = vpop.f32.mrb[37].mxu1 }
 0xa14   :  { %v17943_v57 = vpop.permute.xlu0 %17942  ;;  %v17947_v51 = vpop.permute.xlu1 %17946 }
 0xa15   :  { %v17954_v38 = vsel %vm17953_vm6, %v16587_v32, %v17943_v57 }
 0xa16   :  { %v17955_v50 = vsel %vm9109_vm2, %v17954_v38, %v17947_v51 }
 0xa40   :  { %v17951_v52 = vpop.permute.xlu0 %17950 }
 0xa41   :  { %v37831_v63 = vsel %vm17956_vm7, %v17955_v50, %v17951_v52 }
 0xa42   :  { %v17963_v61 = vsel %vm17961_vm8, %v37831_v63, 0  ;;  %v18411_v53 = vmul.f32 %v37831_v63, %v37831_v63  ;;  %18861 = vrot.lane.b32.xlu1 %v37831_v63, %s36615_s11 }
 0xa43   :  { %v37841_v2 = vand.u32 4294901760, %v17963_v61 }
 0xa44   :  { %v18413_v6 = vsel %vm17961_vm8, %v18411_v53, 0 }
 0xa45   :  { %v37845_v22 = vsub.f32 %v17963_v61, %v37841_v2  ;;  %34505 = vmatpush3.msra.mxu0 %v37841_v2  ;;  %v18416_v7 = vand.u32 4294901760, %v18413_v6 }
 0xa46   :  { %34507 = vmatmul.mubr.f32.vlgmr.msra.gmra.mrb[36].mxu0 %v37839_v60  ;;  %34509 = vmatprep.subr.mxu0 %v36610_v34 }
 0xa47   :  { %34535 = vmatpush3.msra.mxu1 %v18416_v7  ;;  %v37851_v59 = vand.u32 4294901760, %v37845_v22  ;;  %34511 = vmatprep.mubr.msk.f32.mxu0 %vm36609_vm1, %v36610_v34  ;;  %v18493_v56 = vsub.f32 %v18413_v6, %v18416_v7 }
 0xa48   :  { %34537 = vmatmul.mubr.f32.vlgmr.msra.gmra.mrb[38].mxu1 %v37839_v60  ;;  %34539 = vmatprep.subr.mxu1 %v36610_v34 }
 0xa49   :  { %v18045_v62 = vsub.f32 %v37845_v22, %v37851_v59  ;;  %v18494_v15 = vand.u32 4294901760, %v18493_v56  ;;  %34541 = vmatprep.mubr.msk.f32.mxu1 %vm36609_vm1, %v36610_v34 }
 0xa4b   :  { %v37861_v16 = vand.u32 4294901760, %v18045_v62  ;;  %v18495_v21 = vsub.f32 %v18493_v56, %v18494_v15 }
 0xa4d   :  { %34510 = vmatpush3.msra.mxu0 %v37861_v16  ;;  %v18496_v26 = vand.u32 4294901760, %v18495_v21 }
 0xa4e   :  { %34512 = vmatmul.mubr.f32.vlgmr.msra.gmra.mrb[36].mxu0 %v37819_v11  ;;  %34514 = vmatprep.subr.mxu0 %v36610_v34 }
 0xa4f   :  { %34515 = vmatpush3.msra.mxu0 %v37845_v22  ;;  %34540 = vmatpush3.msra.mxu1 %v18496_v26 }
 0xa50   :  { %34542 = vmatmul.mubr.f32.vlgmr.msra.gmra.mrb[38].mxu1 %v37819_v11  ;;  %34544 = vmatprep.subr.mxu1 %v36610_v34 }
 0xa51   :  { %34545 = vmatpush3.msra.mxu1 %v18493_v56  ;;  %34516 = vmatprep.mubr.msk.f32.mxu0 %vm36609_vm1, %v36610_v34 }
 0xa52   :  { %34519 = vmatprep.subr.mxu0 %v36610_v34  ;;  %34546 = vmatprep.mubr.msk.f32.mxu1 %vm36609_vm1, %v36610_v34 }
 0xa53   :  { %34549 = vmatprep.subr.mxu1 %v36610_v34 }
 0xa56   :  { %34517 = vmatmul.mubr.f32.vlgmr.msra.gmra.mrb[36].mxu0 %v37822_v55 }
 0xa57   :  { %34520 = vmatpush3.msra.mxu0 %v37841_v2  ;;  %34521 = vmatprep.mubr.msk.f32.mxu0 %vm36609_vm1, %v36610_v34 }
 0xa58   :  { %34547 = vmatmul.mubr.f32.vlgmr.msra.gmra.mrb[38].mxu1 %v37822_v55  ;;  %34524 = vmatprep.subr.mxu0 %v36610_v34 }
 0xa59   :  { %34550 = vmatpush3.msra.mxu1 %v18416_v7  ;;  %34551 = vmatprep.mubr.msk.f32.mxu1 %vm36609_vm1, %v36610_v34 }
 0xa5a   :  { %34554 = vmatprep.subr.mxu1 %v36610_v34 }
 0xa5e   :  { %34522 = vmatmul.mubr.f32.vlgmr.msra.gmra.mrb[36].mxu0 %v37825_v49 }
 0xa5f   :  { %34525 = vmatpush3.msra.mxu0 %v37851_v59  ;;  %34526 = vmatprep.mubr.msk.f32.mxu0 %vm36609_vm1, %v36610_v34 }
 0xa60   :  { %34552 = vmatmul.mubr.f32.vlgmr.msra.gmra.mrb[38].mxu1 %v37825_v49  ;;  %34529 = vmatprep.subr.mxu0 %v36610_v34 }
 0xa61   :  { %34555 = vmatpush3.msra.mxu1 %v18494_v15  ;;  %34556 = vmatprep.mubr.msk.f32.mxu1 %vm36609_vm1, %v36610_v34 }
 0xa62   :  { %34559 = vmatprep.subr.mxu1 %v36610_v34 }
 0xa66   :  { %34527 = vmatmul.mubr.f32.vlgmr.msra.gmra.mrb[36].mxu0 %v37819_v11 }
 0xa67   :  { %34530 = vmatpush3.msra.mxu0 %v37841_v2  ;;  %34531 = vmatprep.mubr.msk.f32.mxu0 %vm36609_vm1, %v36610_v34 }
 0xa68   :  { %34557 = vmatmul.mubr.f32.vlgmr.msra.gmra.mrb[38].mxu1 %v37819_v11  ;;  %34564 = vmatprep.subr.mxu0 %v36610_v34 }
 0xa69   :  { %34560 = vmatpush3.msra.mxu1 %v18416_v7  ;;  %34561 = vmatprep.mubr.msk.f32.mxu1 %vm36609_vm1, %v36610_v34 }
 0xa6a   :  { %34594 = vmatprep.subr.mxu1 %v36610_v34 }
 0xa6e   :  { %34532 = vmatmul.mubr.f32.vlgmr.msra.gmra.mrb[36].mxu0 %v37819_v11 }
 0xa6f   :  { %34566 = vmatprep.mubr.msk.f32.mxu0 %vm36609_vm1, %v36610_v34 }
 0xa70   :  { %34562 = vmatmul.mubr.f32.vlgmr.msra.gmra.mrb[38].mxu1 %v37819_v11 }
 0xa71   :  { %34595 = vmatpush3.msra.mxu1 %v37906_v24  ;;  %34596 = vmatprep.mubr.msk.f32.mxu1 %vm36609_vm1, %v36610_v34 }
 0xa72   :  { %34599 = vmatprep.subr.mxu1 %v36610_v34 }
 0xab4   :  { %v18862_v19 = vpop.permute.xlu1 %18861 }
 0xab5   :  { %v18864_v20 = vmul.f32 %v18862_v19, %v37831_v63 }
 0xab7   :  { %v18866_v31 = vsel %vm17961_vm8, %v18864_v20, 0 }
 0xab8   :  { %v18869_v36 = vand.u32 4294901760, %v18866_v31 }
 0xaba   :  { %v18946_v37 = vsub.f32 %v18866_v31, %v18869_v36  ;;  %34565 = vmatpush3.msra.mxu0 %v18869_v36 }
 0xabb   :  { %34567 = vmatmul.mubr.f32.vlgmr.msra.gmra.mrb[38].mxu0 %v37839_v60  ;;  %34569 = vmatprep.subr.mxu0 %v36610_v34 }
 0xabc   :  { %v18947_v39 = vand.u32 4294901760, %v18946_v37  ;;  %34571 = vmatprep.mubr.msk.f32.mxu0 %vm36609_vm1, %v36610_v34 }
 0xabe   :  { %v18948_v17 = vsub.f32 %v18946_v37, %v18947_v39 }
 0xac0   :  { %v18949_v23 = vand.u32 4294901760, %v18948_v17 }
 0xac2   :  { %34570 = vmatpush3.msra.mxu0 %v18949_v23 }
 0xac3   :  { %34572 = vmatmul.mubr.f32.vlgmr.msra.gmra.mrb[38].mxu0 %v37819_v11  ;;  %34574 = vmatprep.subr.mxu0 %v36610_v34 }
 0xac4   :  { %34575 = vmatpush3.msra.mxu0 %v18946_v37  ;;  %34576 = vmatprep.mubr.msk.f32.mxu0 %vm36609_vm1, %v36610_v34 }
 0xac5   :  { %34579 = vmatprep.subr.mxu0 %v36610_v34 }
 0xacb   :  { %34577 = vmatmul.mubr.f32.vlgmr.msra.gmra.mrb[38].mxu0 %v37822_v55 }
 0xacc   :  { %34580 = vmatpush3.msra.mxu0 %v18869_v36  ;;  %34581 = vmatprep.mubr.msk.f32.mxu0 %vm36609_vm1, %v36610_v34 }
 0xacd   :  { %34584 = vmatprep.subr.mxu0 %v36610_v34 }
 0xad3   :  { %34582 = vmatmul.mubr.f32.vlgmr.msra.gmra.mrb[38].mxu0 %v37825_v49 }
 0xad4   :  { %34585 = vmatpush3.msra.mxu0 %v18947_v39  ;;  %34586 = vmatprep.mubr.msk.f32.mxu0 %vm36609_vm1, %v36610_v34 }
 0xad5   :  { %34589 = vmatprep.subr.mxu0 %v36610_v34 }
 0xadb   :  { %34587 = vmatmul.mubr.f32.vlgmr.msra.gmra.mrb[38].mxu0 %v37819_v11 }
 0xadc   :  { %34590 = vmatpush3.msra.mxu0 %v18869_v36  ;;  %34591 = vmatprep.mubr.msk.f32.mxu0 %vm36609_vm1, %v36610_v34 }
 0xadd   :  { %34624 = vmatprep.subr.mxu0 %v36610_v34 }
 0xae3   :  { %34592 = vmatmul.mubr.f32.vlgmr.msra.gmra.mrb[38].mxu0 %v37819_v11 }
 0xae4   :  { %34625 = vmatpush3.msra.mxu0 %v37906_v24  ;;  %34626 = vmatprep.mubr.msk.f32.mxu0 %vm36609_vm1, %v36610_v34 }
 0xae5   :  { %34629 = vmatprep.subr.mxu0 %v36610_v34 }
 0xb41   :  { %v18407_v14 = vpop.f32.mrb[36].mxu0 }
 0xb42   :  { %v19315_v44 = vsel %vm17953_vm6, %v18407_v14, 0  ;;  %22058 = vrot.lane.b32.xlu0 %v18407_v14, %s36618_s21  ;;  %v34533_v28 = vpop.f32.mrb[37].mxu0 }
 0xb43   :  { %v19386_v35 = vand.u32 4294901760, %v19315_v44  ;;  %v18857_v10 = vpop.f32.mrb[38].mxu1 }
 0xb44   :  { %22958 = vrot.lane.b32.xlu1 %v18857_v10, %s36618_s21  ;;  %v34563_v29 = vpop.f32.mrb[39].mxu1  ;;  %v20217_v46 = vsel %vm17953_vm6, %v18857_v10, 0 }
 0xb45   :  { %v19387_v41 = vsub.f32 %v19315_v44, %v19386_v35  ;;  %v20285_v25 = vand.u32 4294901760, %v20217_v46 }
 0xb46   :  { %19766 = vrot.lane.b32.xlu0 %v18407_v14, %s36615_s11 }
 0xb47   :  { %v19388_v32 = vand.u32 4294901760, %v19387_v41  ;;  %v20286_v45 = vsub.f32 %v20217_v46, %v20285_v25 }
 0xb48   :  { %20665 = vrot.lane.b32.xlu1 %v18857_v10, %s36615_s11 }
 0xb49   :  { %v19389_v30 = vsub.f32 %v19387_v41, %v19388_v32  ;;  %v20287_v47 = vand.u32 4294901760, %v20286_v45 }
 0xb4a   :  { %21608 = vrot.lane.b32.xlu0 %v18407_v14, %s36619_s22 }
 0xb4b   :  { %v19390_v43 = vand.u32 4294901760, %v19389_v30  ;;  %v20288_v48 = vsub.f32 %v20286_v45, %v20287_v47 }
 0xb4c   :  { %22508 = vrot.lane.b32.xlu1 %v18857_v10, %s36619_s22 }
 0xb4d   :  { %34597 = vmatmul.mubr.f32.vlgmr.msra.gmra.mrb[40].mxu1 %v19390_v43  ;;  %v20289_v54 = vand.u32 4294901760, %v20288_v48 }
 0xb4e   :  { %34600 = vmatpush3.msra.mxu1 %v37958_v12  ;;  %34601 = vmatprep.mubr.msk.f32.mxu1 %vm36609_vm1, %v36610_v34 }
 0xb4f   :  { %34604 = vmatprep.subr.mxu1 %v36610_v34 }
 0xb55   :  { %34602 = vmatmul.mubr.f32.vlgmr.msra.gmra.mrb[40].mxu1 %v19386_v35 }
 0xb56   :  { %34605 = vmatpush3.msra.mxu1 %v37945_v33  ;;  %34606 = vmatprep.mubr.msk.f32.mxu1 %vm36609_vm1, %v36610_v34 }
 0xb57   :  { %34609 = vmatprep.subr.mxu1 %v36610_v34 }
 0xb5d   :  { %34607 = vmatmul.mubr.f32.vlgmr.msra.gmra.mrb[40].mxu1 %v19387_v41 }
 0xb5e   :  { %34610 = vmatpush3.msra.mxu1 %v37906_v24  ;;  %34611 = vmatprep.mubr.msk.f32.mxu1 %vm36609_vm1, %v36610_v34 }
 0xb5f   :  { %34614 = vmatprep.subr.mxu1 %v36610_v34 }
 0xb65   :  { %34612 = vmatmul.mubr.f32.vlgmr.msra.gmra.mrb[40].mxu1 %v19388_v32 }
 0xb66   :  { %34615 = vmatpush3.msra.mxu1 %v37948_v40  ;;  %34616 = vmatprep.mubr.msk.f32.mxu1 %vm36609_vm1, %v36610_v34 }
 0xb67   :  { %34619 = vmatprep.subr.mxu1 %v36610_v34 }
 0xb6d   :  { %34617 = vmatmul.mubr.f32.vlgmr.msra.gmra.mrb[40].mxu1 %v19386_v35 }
 0xb6e   :  { %34620 = vmatpush3.msra.mxu1 %v37906_v24  ;;  %34621 = vmatprep.mubr.msk.f32.mxu1 %vm36609_vm1, %v36610_v34 }
 0xb6f   :  { %34654 = vmatprep.subr.mxu1 %v36610_v34 }
 0xb75   :  { %34622 = vmatmul.mubr.f32.vlgmr.msra.gmra.mrb[40].mxu1 %v19386_v35 }
 0xb76   :  { %34655 = vmatpush3.msra.mxu1 %v37906_v24  ;;  %34656 = vmatprep.mubr.msk.f32.mxu1 %vm36609_vm1, %v36610_v34 }
 0xb77   :  { %34659 = vmatprep.subr.mxu1 %v36610_v34 }
 0xb79   :  { %34657 = vmatmul.mubr.f32.vlgmr.msra.gmra.mrb[42].mxu1 %v20289_v54 }
 0xb7a   :  { %34660 = vmatpush3.msra.mxu1 %v37958_v12  ;;  %34661 = vmatprep.mubr.msk.f32.mxu1 %vm36609_vm1, %v36610_v34 }
 0xb7b   :  { %34664 = vmatprep.subr.mxu1 %v36610_v34 }
 0xb81   :  { %34662 = vmatmul.mubr.f32.vlgmr.msra.gmra.mrb[42].mxu1 %v20285_v25 }
 0xb82   :  { %34665 = vmatpush3.msra.mxu1 %v37945_v33  ;;  %34666 = vmatprep.mubr.msk.f32.mxu1 %vm36609_vm1, %v36610_v34 }
 0xb83   :  { %34669 = vmatprep.subr.mxu1 %v36610_v34 }
 0xb89   :  { %34667 = vmatmul.mubr.f32.vlgmr.msra.gmra.mrb[42].mxu1 %v20286_v45  ;;  %v25_v45 = vld [vmem:[%s38904_s1 + $0x70] sm:$0xff] }
 0xb8a   :  { %34670 = vmatpush3.msra.mxu1 %v37906_v24  ;;  %34671 = vmatprep.mubr.msk.f32.mxu1 %vm36609_vm1, %v36610_v34 }
 0xb8b   :  { %34674 = vmatprep.subr.mxu1 %v36610_v34 }
 0xb91   :  { %34672 = vmatmul.mubr.f32.vlgmr.msra.gmra.mrb[42].mxu1 %v20287_v47  ;;  %v23904_v47 = vsel %vm17953_vm6, %v25_v45, 0 }
 0xb92   :  { %34675 = vmatpush3.msra.mxu1 %v37948_v40  ;;  %34676 = vmatprep.mubr.msk.f32.mxu1 %vm36609_vm1, %v36610_v34  ;;  %v38176_v54 = vand.u32 4294901760, %v23904_v47 }
 0xb93   :  { %34679 = vmatprep.subr.mxu1 %v36610_v34 }
 0xb99   :  { %34677 = vmatmul.mubr.f32.vlgmr.msra.gmra.mrb[42].mxu1 %v20285_v25 }
 0xb9a   :  { %34680 = vmatpush3.msra.mxu1 %v37906_v24  ;;  %34681 = vmatprep.mubr.msk.f32.mxu1 %vm36609_vm1, %v36610_v34 }
 0xb9b   :  { %34714 = vmatprep.subr.mxu1 %v36610_v34 }
 0xba1   :  { %34682 = vmatmul.mubr.f32.vlgmr.msra.gmra.mrb[42].mxu1 %v20285_v25 }
 0xba2   :  { %34715 = vmatpush3.msra.mxu1 %v37906_v24  ;;  %34716 = vmatprep.mubr.msk.f32.mxu1 %vm36609_vm1, %v36610_v34 }
 0xba3   :  { %34719 = vmatprep.subr.mxu1 %v36610_v34 }
 0xbb4   :  { %v22059_v11 = vpop.permute.xlu0 %22058 }
 0xbb5   :  { %v22060_v15 = vsel %vm17953_vm6, %v22059_v11, 0 }
 0xbb6   :  { %v19310_v55 = vpop.f32.mrb[38].mxu0  ;;  %v38040_v62 = vpop.permute.xlu1 %22958  ;;  %v38052_v18 = vand.u32 4294901760, %v22060_v15 }
 0xbb7   :  { %v21116_v57 = vsel %vm17953_vm6, %v19310_v55, 0  ;;  %23408 = vrot.lane.b32.xlu0 %v19310_v55, %s36619_s22  ;;  %v34593_v49 = vpop.f32.mrb[39].mxu0  ;;  %v22960_v44 = vsel %vm17953_vm6, %v38040_v62, 0 }
 0xbb8   :  { %v38012_v51 = vand.u32 4294901760, %v21116_v57  ;;  %v19767_v38 = vpop.permute.xlu0 %19766  ;;  %v22129_v19 = vsub.f32 %v22060_v15, %v38052_v18  ;;  %v38115_v35 = vand.u32 4294901760, %v22960_v44 }
 0xbb9   :  { %v19768_v58 = vsel %vm17953_vm6, %v19767_v38, 0 }
 0xbba   :  { %v21185_v50 = vsub.f32 %v21116_v57, %v38012_v51  ;;  %v38016_v52 = vand.u32 4294901760, %v19768_v58  ;;  %v20666_v21 = vpop.permute.xlu1 %20665  ;;  %v22130_v31 = vand.u32 4294901760, %v22129_v19  ;;  %v23029_v29 = vsub.f32 %v22960_v44, %v38115_v35 }
 0xbbb   :  { %v20667_v26 = vsel %vm17953_vm6, %v20666_v21, 0  ;;  %v23973_v57 = vsub.f32 %v23904_v47, %v38176_v54 }
 0xbbc   :  { %v21186_v63 = vand.u32 4294901760, %v21185_v50  ;;  %v19837_v61 = vsub.f32 %v19768_v58, %v38016_v52  ;;  %v38058_v1 = vand.u32 4294901760, %v20667_v26  ;;  %v22131_v37 = vsub.f32 %v22129_v19, %v22130_v31  ;;  %v21609_v14 = vpop.permute.xlu0 %21608 }
 0xbbd   :  { %v21610_v28 = vsel %vm17953_vm6, %v21609_v14, 0  ;;  %v23030_v42 = vand.u32 4294901760, %v23029_v29 }
 0xbbe   :  { %v21187_v53 = vsub.f32 %v21185_v50, %v21186_v63  ;;  %v19838_v60 = vand.u32 4294901760, %v19837_v61  ;;  %v20736_v20 = vsub.f32 %v20667_v26, %v38058_v1  ;;  %v22132_v17 = vand.u32 4294901760, %v22131_v37  ;;  %v22509_v48 = vpop.permute.xlu1 %22508 }
 0xbbf   :  { %v38121_v10 = vand.u32 4294901760, %v21610_v28  ;;  %v23031_v30 = vsub.f32 %v23029_v29, %v23030_v42  ;;  %v22510_v11 = vsel %vm17953_vm6, %v22509_v48, 0 }
 0xbc0   :  { %v19839_v6 = vsub.f32 %v19837_v61, %v19838_v60  ;;  %v21188_v7 = vand.u32 4294901760, %v21187_v53  ;;  %v20737_v36 = vand.u32 4294901760, %v20736_v20  ;;  %v38186_v55 = vand.u32 4294901760, %v22510_v11 }
 0xbc1   :  { %v21679_v41 = vsub.f32 %v21610_v28, %v38121_v10  ;;  %v23032_v46 = vand.u32 4294901760, %v23031_v30 }
 0xbc2   :  { %v19840_v56 = vand.u32 4294901760, %v19839_v6  ;;  %34717 = vmatmul.mubr.f32.vlgmr.msra.gmra.mrb[44].mxu1 %v21188_v7  ;;  %v20738_v39 = vsub.f32 %v20736_v20, %v20737_v36  ;;  %v22579_v49 = vsub.f32 %v22510_v11, %v38186_v55 }
 0xbc3   :  { %34720 = vmatpush3.msra.mxu1 %v37958_v12  ;;  %34721 = vmatprep.mubr.msk.f32.mxu1 %vm36609_vm1, %v36610_v34  ;;  %v21680_v32 = vand.u32 4294901760, %v21679_v41 }
 0xbc4   :  { %34627 = vmatmul.mubr.f32.vlgmr.msra.gmra.mrb[40].mxu0 %v19840_v56  ;;  %34724 = vmatprep.subr.mxu1 %v36610_v34  ;;  %v20739_v23 = vand.u32 4294901760, %v20738_v39  ;;  %v22580_v38 = vand.u32 4294901760, %v22579_v49 }
 0xbc5   :  { %34630 = vmatpush3.msra.mxu0 %v37958_v12  ;;  %34631 = vmatprep.mubr.msk.f32.mxu0 %vm36609_vm1, %v36610_v34  ;;  %v21681_v43 = vsub.f32 %v21679_v41, %v21680_v32 }
 0xbc6   :  { %34634 = vmatprep.subr.mxu0 %v36610_v34 }
 0xbc7   :  { %v21682_v25 = vand.u32 4294901760, %v21681_v43 }
 0xbca   :  { %34722 = vmatmul.mubr.f32.vlgmr.msra.gmra.mrb[44].mxu1 %v38012_v51 }
 0xbcb   :  { %34725 = vmatpush3.msra.mxu1 %v37945_v33  ;;  %34726 = vmatprep.mubr.msk.f32.mxu1 %vm36609_vm1, %v36610_v34 }
 0xbcc   :  { %34632 = vmatmul.mubr.f32.vlgmr.msra.gmra.mrb[40].mxu0 %v38016_v52  ;;  %34729 = vmatprep.subr.mxu1 %v36610_v34 }
 0xbcd   :  { %34635 = vmatpush3.msra.mxu0 %v37945_v33  ;;  %34636 = vmatprep.mubr.msk.f32.mxu0 %vm36609_vm1, %v36610_v34 }
 0xbce   :  { %34639 = vmatprep.subr.mxu0 %v36610_v34 }
 0xbd2   :  { %34727 = vmatmul.mubr.f32.vlgmr.msra.gmra.mrb[44].mxu1 %v21185_v50  ;;  %v22581_v50 = vsub.f32 %v22579_v49, %v22580_v38 }
 0xbd3   :  { %34730 = vmatpush3.msra.mxu1 %v37906_v24  ;;  %34731 = vmatprep.mubr.msk.f32.mxu1 %vm36609_vm1, %v36610_v34 }
 0xbd4   :  { %34637 = vmatmul.mubr.f32.vlgmr.msra.gmra.mrb[40].mxu0 %v19837_v61  ;;  %34734 = vmatprep.subr.mxu1 %v36610_v34 }
 0xbd5   :  { %34640 = vmatpush3.msra.mxu0 %v37906_v24  ;;  %34641 = vmatprep.mubr.msk.f32.mxu0 %vm36609_vm1, %v36610_v34 }
 0xbd6   :  { %34644 = vmatprep.subr.mxu0 %v36610_v34 }
 0xbda   :  { %34732 = vmatmul.mubr.f32.vlgmr.msra.gmra.mrb[44].mxu1 %v21186_v63  ;;  %v22582_v63 = vand.u32 4294901760, %v22581_v50 }
 0xbdb   :  { %34735 = vmatpush3.msra.mxu1 %v37948_v40  ;;  %34736 = vmatprep.mubr.msk.f32.mxu1 %vm36609_vm1, %v36610_v34 }
 0xbdc   :  { %34642 = vmatmul.mubr.f32.vlgmr.msra.gmra.mrb[40].mxu0 %v19838_v60  ;;  %34739 = vmatprep.subr.mxu1 %v36610_v34 }
 0xbdd   :  { %34645 = vmatpush3.msra.mxu0 %v37948_v40  ;;  %34646 = vmatprep.mubr.msk.f32.mxu0 %vm36609_vm1, %v36610_v34 }
 0xbde   :  { %34649 = vmatprep.subr.mxu0 %v36610_v34 }
 0xbe2   :  { %34737 = vmatmul.mubr.f32.vlgmr.msra.gmra.mrb[44].mxu1 %v38012_v51 }
 0xbe3   :  { %34740 = vmatpush3.msra.mxu1 %v37906_v24  ;;  %34741 = vmatprep.mubr.msk.f32.mxu1 %vm36609_vm1, %v36610_v34 }
 0xbe4   :  { %34647 = vmatmul.mubr.f32.vlgmr.msra.gmra.mrb[40].mxu0 %v38016_v52  ;;  %34774 = vmatprep.subr.mxu1 %v36610_v34 }
 0xbe5   :  { %34650 = vmatpush3.msra.mxu0 %v37906_v24  ;;  %34651 = vmatprep.mubr.msk.f32.mxu0 %vm36609_vm1, %v36610_v34 }
 0xbe6   :  { %34684 = vmatprep.subr.mxu0 %v36610_v34 }
 0xbea   :  { %34742 = vmatmul.mubr.f32.vlgmr.msra.gmra.mrb[44].mxu1 %v38012_v51  ;;  %v23974_v51 = vand.u32 4294901760, %v23973_v57 }
 0xbeb   :  { %34775 = vmatpush3.msra.mxu1 %v37906_v24  ;;  %34776 = vmatprep.mubr.msk.f32.mxu1 %vm36609_vm1, %v36610_v34 }
 0xbec   :  { %34652 = vmatmul.mubr.f32.vlgmr.msra.gmra.mrb[40].mxu0 %v38016_v52  ;;  %34779 = vmatprep.subr.mxu1 %v36610_v34  ;;  %v23975_v58 = vsub.f32 %v23973_v57, %v23974_v51 }
 0xbed   :  { %34685 = vmatpush3.msra.mxu0 %v37906_v24  ;;  %34686 = vmatprep.mubr.msk.f32.mxu0 %vm36609_vm1, %v36610_v34 }
 0xbee   :  { %34777 = vmatmul.mubr.f32.vlgmr.msra.gmra.mrb[46].mxu1 %v22132_v17  ;;  %34689 = vmatprep.subr.mxu0 %v36610_v34  ;;  %v23976_v52 = vand.u32 4294901760, %v23975_v58 }
 0xbef   :  { %34780 = vmatpush3.msra.mxu1 %v37958_v12  ;;  %34781 = vmatprep.mubr.msk.f32.mxu1 %vm36609_vm1, %v36610_v34 }
 0xbf0   :  { %34687 = vmatmul.mubr.f32.vlgmr.msra.gmra.mrb[42].mxu0 %v20739_v23  ;;  %34784 = vmatprep.subr.mxu1 %v36610_v34 }
 0xbf1   :  { %34690 = vmatpush3.msra.mxu0 %v37958_v12  ;;  %34691 = vmatprep.mubr.msk.f32.mxu0 %vm36609_vm1, %v36610_v34 }
 0xbf2   :  { %34694 = vmatprep.subr.mxu0 %v36610_v34 }
 0xbf6   :  { %34782 = vmatmul.mubr.f32.vlgmr.msra.gmra.mrb[46].mxu1 %v38052_v18 }
 0xbf7   :  { %34785 = vmatpush3.msra.mxu1 %v37945_v33  ;;  %34786 = vmatprep.mubr.msk.f32.mxu1 %vm36609_vm1, %v36610_v34 }
 0xbf8   :  { %34692 = vmatmul.mubr.f32.vlgmr.msra.gmra.mrb[42].mxu0 %v38058_v1  ;;  %34789 = vmatprep.subr.mxu1 %v36610_v34 }
 0xbf9   :  { %34695 = vmatpush3.msra.mxu0 %v37945_v33  ;;  %34696 = vmatprep.mubr.msk.f32.mxu0 %vm36609_vm1, %v36610_v34 }
 0xbfa   :  { %34699 = vmatprep.subr.mxu0 %v36610_v34 }
 0xbfe   :  { %34787 = vmatmul.mubr.f32.vlgmr.msra.gmra.mrb[46].mxu1 %v22129_v19 }
 0xbff   :  { %34790 = vmatpush3.msra.mxu1 %v37906_v24  ;;  %34791 = vmatprep.mubr.msk.f32.mxu1 %vm36609_vm1, %v36610_v34 }
 0xc00   :  { %34697 = vmatmul.mubr.f32.vlgmr.msra.gmra.mrb[42].mxu0 %v20736_v20  ;;  %34794 = vmatprep.subr.mxu1 %v36610_v34 }
 0xc01   :  { %34700 = vmatpush3.msra.mxu0 %v37906_v24  ;;  %34701 = vmatprep.mubr.msk.f32.mxu0 %vm36609_vm1, %v36610_v34 }
 0xc02   :  { %34704 = vmatprep.subr.mxu0 %v36610_v34 }
 0xc06   :  { %34792 = vmatmul.mubr.f32.vlgmr.msra.gmra.mrb[46].mxu1 %v22130_v31 }
 0xc07   :  { %34795 = vmatpush3.msra.mxu1 %v37948_v40  ;;  %34796 = vmatprep.mubr.msk.f32.mxu1 %vm36609_vm1, %v36610_v34 }
 0xc08   :  { %34702 = vmatmul.mubr.f32.vlgmr.msra.gmra.mrb[42].mxu0 %v20737_v36  ;;  %34799 = vmatprep.subr.mxu1 %v36610_v34 }
 0xc09   :  { %34705 = vmatpush3.msra.mxu0 %v37948_v40  ;;  %34706 = vmatprep.mubr.msk.f32.mxu0 %vm36609_vm1, %v36610_v34 }
 0xc0a   :  { %34709 = vmatprep.subr.mxu0 %v36610_v34 }
 0xc0e   :  { %34797 = vmatmul.mubr.f32.vlgmr.msra.gmra.mrb[46].mxu1 %v38052_v18 }
 0xc0f   :  { %34800 = vmatpush3.msra.mxu1 %v37906_v24  ;;  %34801 = vmatprep.mubr.msk.f32.mxu1 %vm36609_vm1, %v36610_v34 }
 0xc10   :  { %34707 = vmatmul.mubr.f32.vlgmr.msra.gmra.mrb[42].mxu0 %v38058_v1  ;;  %34834 = vmatprep.subr.mxu1 %v36610_v34 }
 0xc11   :  { %34710 = vmatpush3.msra.mxu0 %v37906_v24  ;;  %34711 = vmatprep.mubr.msk.f32.mxu0 %vm36609_vm1, %v36610_v34 }
 0xc12   :  { %34744 = vmatprep.subr.mxu0 %v36610_v34 }
 0xc16   :  { %34802 = vmatmul.mubr.f32.vlgmr.msra.gmra.mrb[46].mxu1 %v38052_v18 }
 0xc17   :  { %34835 = vmatpush3.msra.mxu1 %v37906_v24  ;;  %34836 = vmatprep.mubr.msk.f32.mxu1 %vm36609_vm1, %v36610_v34 }
 0xc18   :  { %34712 = vmatmul.mubr.f32.vlgmr.msra.gmra.mrb[42].mxu0 %v38058_v1  ;;  %34839 = vmatprep.subr.mxu1 %v36610_v34 }
 0xc19   :  { %34745 = vmatpush3.msra.mxu0 %v37906_v24  ;;  %34746 = vmatprep.mubr.msk.f32.mxu0 %vm36609_vm1, %v36610_v34 }
 0xc1a   :  { %34837 = vmatmul.mubr.f32.vlgmr.msra.gmra.mrb[48].mxu1 %v23032_v46  ;;  %34749 = vmatprep.subr.mxu0 %v36610_v34 }
 0xc1b   :  { %34840 = vmatpush3.msra.mxu1 %v37958_v12  ;;  %34841 = vmatprep.mubr.msk.f32.mxu1 %vm36609_vm1, %v36610_v34 }
 0xc1c   :  { %34747 = vmatmul.mubr.f32.vlgmr.msra.gmra.mrb[44].mxu0 %v21682_v25  ;;  %34844 = vmatprep.subr.mxu1 %v36610_v34 }
 0xc1d   :  { %34750 = vmatpush3.msra.mxu0 %v37958_v12  ;;  %34751 = vmatprep.mubr.msk.f32.mxu0 %vm36609_vm1, %v36610_v34 }
 0xc1e   :  { %34754 = vmatprep.subr.mxu0 %v36610_v34 }
 0xc22   :  { %34842 = vmatmul.mubr.f32.vlgmr.msra.gmra.mrb[48].mxu1 %v38115_v35 }
 0xc23   :  { %34845 = vmatpush3.msra.mxu1 %v37945_v33  ;;  %34846 = vmatprep.mubr.msk.f32.mxu1 %vm36609_vm1, %v36610_v34 }
 0xc24   :  { %34752 = vmatmul.mubr.f32.vlgmr.msra.gmra.mrb[44].mxu0 %v38121_v10  ;;  %34849 = vmatprep.subr.mxu1 %v36610_v34 }
 0xc25   :  { %34755 = vmatpush3.msra.mxu0 %v37945_v33  ;;  %34756 = vmatprep.mubr.msk.f32.mxu0 %vm36609_vm1, %v36610_v34 }
 0xc26   :  { %34759 = vmatprep.subr.mxu0 %v36610_v34 }
 0xc2a   :  { %34847 = vmatmul.mubr.f32.vlgmr.msra.gmra.mrb[48].mxu1 %v23029_v29 }
 0xc2b   :  { %34850 = vmatpush3.msra.mxu1 %v37906_v24  ;;  %34851 = vmatprep.mubr.msk.f32.mxu1 %vm36609_vm1, %v36610_v34 }
 0xc2c   :  { %34757 = vmatmul.mubr.f32.vlgmr.msra.gmra.mrb[44].mxu0 %v21679_v41  ;;  %34854 = vmatprep.subr.mxu1 %v36610_v34 }
 0xc2d   :  { %34760 = vmatpush3.msra.mxu0 %v37906_v24  ;;  %34761 = vmatprep.mubr.msk.f32.mxu0 %vm36609_vm1, %v36610_v34 }
 0xc2e   :  { %34764 = vmatprep.subr.mxu0 %v36610_v34 }
 0xc32   :  { %34852 = vmatmul.mubr.f32.vlgmr.msra.gmra.mrb[48].mxu1 %v23030_v42 }
 0xc33   :  { %34855 = vmatpush3.msra.mxu1 %v37948_v40  ;;  %34856 = vmatprep.mubr.msk.f32.mxu1 %vm36609_vm1, %v36610_v34 }
 0xc34   :  { %34762 = vmatmul.mubr.f32.vlgmr.msra.gmra.mrb[44].mxu0 %v21680_v32  ;;  %34859 = vmatprep.subr.mxu1 %v36610_v34 }
 0xc35   :  { %34765 = vmatpush3.msra.mxu0 %v37948_v40  ;;  %34766 = vmatprep.mubr.msk.f32.mxu0 %vm36609_vm1, %v36610_v34 }
 0xc36   :  { %34769 = vmatprep.subr.mxu0 %v36610_v34 }
 0xc3a   :  { %34857 = vmatmul.mubr.f32.vlgmr.msra.gmra.mrb[48].mxu1 %v38115_v35 }
 0xc3b   :  { %34860 = vmatpush3.msra.mxu1 %v37906_v24  ;;  %34861 = vmatprep.mubr.msk.f32.mxu1 %vm36609_vm1, %v36610_v34 }
 0xc3c   :  { %34767 = vmatmul.mubr.f32.vlgmr.msra.gmra.mrb[44].mxu0 %v38121_v10  ;;  %34894 = vmatprep.subr.mxu1 %v36610_v34 }
 0xc3d   :  { %34770 = vmatpush3.msra.mxu0 %v37906_v24  ;;  %34771 = vmatprep.mubr.msk.f32.mxu0 %vm36609_vm1, %v36610_v34 }
 0xc3e   :  { %34804 = vmatprep.subr.mxu0 %v36610_v34 }
 0xc42   :  { %34862 = vmatmul.mubr.f32.vlgmr.msra.gmra.mrb[48].mxu1 %v38115_v35 }
 0xc43   :  { %34895 = vmatpush3.msra.mxu1 %v37841_v2  ;;  %34896 = vmatprep.mubr.msk.f32.mxu1 %vm36609_vm1, %v36610_v34 }
 0xc44   :  { %34772 = vmatmul.mubr.f32.vlgmr.msra.gmra.mrb[44].mxu0 %v38121_v10  ;;  %34899 = vmatprep.subr.mxu1 %v36610_v34 }
 0xc45   :  { %34805 = vmatpush3.msra.mxu0 %v37906_v24  ;;  %34806 = vmatprep.mubr.msk.f32.mxu0 %vm36609_vm1, %v36610_v34 }
 0xc46   :  { %34897 = vmatmul.mubr.f32.vlgmr.msra.gmra.mrb[50].mxu1 %v23976_v52  ;;  %34809 = vmatprep.subr.mxu0 %v36610_v34 }
 0xc47   :  { %34900 = vmatpush3.msra.mxu1 %v37861_v16  ;;  %34901 = vmatprep.mubr.msk.f32.mxu1 %vm36609_vm1, %v36610_v34 }
 0xc48   :  { %v38214_v61 = vpop.f32.mrb[40].mxu1  ;;  %34807 = vmatmul.mubr.f32.vlgmr.msra.gmra.mrb[46].mxu0 %v22582_v63  ;;  %34904 = vmatprep.subr.mxu1 %v36610_v34 }
 0xc49   :  { %v34623_v53 = vpop.f32.mrb[41].mxu1  ;;  %34810 = vmatpush3.msra.mxu0 %v37958_v12  ;;  %34811 = vmatprep.mubr.msk.f32.mxu0 %vm36609_vm1, %v36610_v34  ;;  %v21564_v20 = vmul.f32 %v38214_v61, %v38214_v61 }
 0xc4a   :  { %34814 = vmatprep.subr.mxu0 %v36610_v34 }
 0xc4e   :  { %34902 = vmatmul.mubr.f32.vlgmr.msra.gmra.mrb[50].mxu1 %v38176_v54 }
 0xc4f   :  { %34905 = vmatpush3.msra.mxu1 %v37845_v22  ;;  %34906 = vmatprep.mubr.msk.f32.mxu1 %vm36609_vm1, %v36610_v34  ;;  %v23409_v22 = vpop.permute.xlu0 %23408 }
 0xc50   :  { %34812 = vmatmul.mubr.f32.vlgmr.msra.gmra.mrb[46].mxu0 %v38186_v55  ;;  %34909 = vmatprep.subr.mxu1 %v36610_v34  ;;  %v23410_v16 = vsel %vm17953_vm6, %v23409_v22, 0 }
 0xc51   :  { %34815 = vmatpush3.msra.mxu0 %v37945_v33  ;;  %34816 = vmatprep.mubr.msk.f32.mxu0 %vm36609_vm1, %v36610_v34  ;;  %v23478_v60 = vand.u32 4294901760, %v23410_v16 }
 0xc52   :  { %34819 = vmatprep.subr.mxu0 %v36610_v34 }
 0xc53   :  { %v23479_v6 = vsub.f32 %v23410_v16, %v23478_v60 }
 0xc55   :  { %v23480_v56 = vand.u32 4294901760, %v23479_v6 }
 0xc56   :  { %34907 = vmatmul.mubr.f32.vlgmr.msra.gmra.mrb[50].mxu1 %v23973_v57 }
 0xc57   :  { %34910 = vmatpush3.msra.mxu1 %v37841_v2  ;;  %34911 = vmatprep.mubr.msk.f32.mxu1 %vm36609_vm1, %v36610_v34  ;;  %v23481_v62 = vsub.f32 %v23479_v6, %v23480_v56 }
 0xc58   :  { %34817 = vmatmul.mubr.f32.vlgmr.msra.gmra.mrb[46].mxu0 %v22579_v49  ;;  %34914 = vmatprep.subr.mxu1 %v36610_v34 }
 0xc59   :  { %34820 = vmatpush3.msra.mxu0 %v37906_v24  ;;  %34821 = vmatprep.mubr.msk.f32.mxu0 %vm36609_vm1, %v36610_v34  ;;  %v23482_v15 = vand.u32 4294901760, %v23481_v62 }
 0xc5a   :  { %34824 = vmatprep.subr.mxu0 %v36610_v34 }
 0xc5e   :  { %34912 = vmatmul.mubr.f32.vlgmr.msra.gmra.mrb[50].mxu1 %v23974_v51 }
 0xc5f   :  { %34915 = vmatpush3.msra.mxu1 %v37851_v59  ;;  %34916 = vmatprep.mubr.msk.f32.mxu1 %vm36609_vm1, %v36610_v34  ;;  %v26_v59 = vld [vmem:[%s38904_s1 + $0x78] sm:$0xff] }
 0xc60   :  { %34822 = vmatmul.mubr.f32.vlgmr.msra.gmra.mrb[46].mxu0 %v22580_v38  ;;  %34919 = vmatprep.subr.mxu1 %v36610_v34  ;;  %v38261_v7 = vsel %vm17961_vm8, %v26_v59, 0 }
 0xc61   :  { %34825 = vmatpush3.msra.mxu0 %v37948_v40  ;;  %34826 = vmatprep.mubr.msk.f32.mxu0 %vm36609_vm1, %v36610_v34 }
 0xc62   :  { %34829 = vmatprep.subr.mxu0 %v36610_v34 }
 0xc66   :  { %34917 = vmatmul.mubr.f32.vlgmr.msra.gmra.mrb[50].mxu1 %v38176_v54 }
 0xc67   :  { %34920 = vmatpush3.msra.mxu1 %v37841_v2  ;;  %34921 = vmatprep.mubr.msk.f32.mxu1 %vm36609_vm1, %v36610_v34  ;;  %v38265_v2 = vand.u32 4294901760, %v38261_v7 }
 0xc68   :  { %34827 = vmatmul.mubr.f32.vlgmr.msra.gmra.mrb[46].mxu0 %v38186_v55  ;;  %34954 = vmatprep.subr.mxu1 %v36610_v34 }
 0xc69   :  { %34830 = vmatpush3.msra.mxu0 %v37906_v24  ;;  %34831 = vmatprep.mubr.msk.f32.mxu0 %vm36609_vm1, %v36610_v34  ;;  %v38311_v38 = vsub.f32 %v38261_v7, %v38265_v2 }
 0xc6a   :  { %34864 = vmatprep.subr.mxu0 %v36610_v34 }
 0xc6b   :  { %v38317_v63 = vand.u32 4294901760, %v38311_v38 }
 0xc6d   :  { %v24438_v59 = vsub.f32 %v38311_v38, %v38317_v63 }
 0xc6e   :  { %34922 = vmatmul.mubr.f32.vlgmr.msra.gmra.mrb[50].mxu1 %v38176_v54 }
 0xc6f   :  { %34955 = vmatpush3.msra.mxu1 %v38265_v2  ;;  %34956 = vmatprep.mubr.msk.f32.mxu1 %vm36609_vm1, %v36610_v34  ;;  %v38322_v62 = vand.u32 4294901760, %v24438_v59 }
 0xc70   :  { %34832 = vmatmul.mubr.f32.vlgmr.msra.gmra.mrb[46].mxu0 %v38186_v55  ;;  %34959 = vmatprep.subr.mxu1 %v36610_v34 }
 0xc71   :  { %34865 = vmatpush3.msra.mxu0 %v37906_v24  ;;  %34866 = vmatprep.mubr.msk.f32.mxu0 %vm36609_vm1, %v36610_v34 }
 0xc72   :  { %34869 = vmatprep.subr.mxu0 %v36610_v34 }
 0xc74   :  { %v20661_v21 = vpop.f32.mrb[42].mxu1  ;;  %34867 = vmatmul.mubr.f32.vlgmr.msra.gmra.mrb[48].mxu0 %v23482_v15 }
 0xc75   :  { %v34683_v26 = vpop.f32.mrb[43].mxu1  ;;  %34870 = vmatpush3.msra.mxu0 %v37958_v12  ;;  %34871 = vmatprep.mubr.msk.f32.mxu0 %vm36609_vm1, %v36610_v34  ;;  %v21570_v39 = vsub.f32 %v20661_v21, %v21564_v20 }
 0xc76   :  { %34874 = vmatprep.subr.mxu0 %v36610_v34 }
 0xc7c   :  { %34872 = vmatmul.mubr.f32.vlgmr.msra.gmra.mrb[48].mxu0 %v23478_v60 }
 0xc7d   :  { %34875 = vmatpush3.msra.mxu0 %v37945_v33  ;;  %34876 = vmatprep.mubr.msk.f32.mxu0 %vm36609_vm1, %v36610_v34 }
 0xc7e   :  { %34879 = vmatprep.subr.mxu0 %v36610_v34 }
 0xc84   :  { %34877 = vmatmul.mubr.f32.vlgmr.msra.gmra.mrb[48].mxu0 %v23479_v6 }
 0xc85   :  { %34880 = vmatpush3.msra.mxu0 %v37906_v24  ;;  %34881 = vmatprep.mubr.msk.f32.mxu0 %vm36609_vm1, %v36610_v34 }
 0xc86   :  { %34884 = vmatprep.subr.mxu0 %v36610_v34 }
 0xc8c   :  { %34882 = vmatmul.mubr.f32.vlgmr.msra.gmra.mrb[48].mxu0 %v23480_v56 }
 0xc8d   :  { %34885 = vmatpush3.msra.mxu0 %v37948_v40  ;;  %34886 = vmatprep.mubr.msk.f32.mxu0 %vm36609_vm1, %v36610_v34 }
 0xc8e   :  { %34889 = vmatprep.subr.mxu0 %v36610_v34 }
 0xc94   :  { %34887 = vmatmul.mubr.f32.vlgmr.msra.gmra.mrb[48].mxu0 %v23478_v60 }
 0xc95   :  { %34890 = vmatpush3.msra.mxu0 %v37906_v24  ;;  %34891 = vmatprep.mubr.msk.f32.mxu0 %vm36609_vm1, %v36610_v34 }
 0xc96   :  { %34924 = vmatprep.subr.mxu0 %v36610_v34 }
 0xc9c   :  { %34892 = vmatmul.mubr.f32.vlgmr.msra.gmra.mrb[48].mxu0 %v23478_v60 }
 0xc9d   :  { %34925 = vmatpush3.msra.mxu0 %v38265_v2  ;;  %34926 = vmatprep.mubr.msk.f32.mxu0 %vm36609_vm1, %v36610_v34 }
 0xc9e   :  { %34929 = vmatprep.subr.mxu0 %v36610_v34 }
 0xcbd   :  { %v21560_v33 = vpop.f32.mrb[44].mxu1 }
 0xcbe   :  { %v34743_v40 = vpop.f32.mrb[45].mxu1 }
 0xcbf   :  { %v20212_v12 = vpop.f32.mrb[40].mxu0 }
 0xcc0   :  { %v21566_v18 = vmul.f32 %v20212_v12, %v38214_v61  ;;  %v34653_v1 = vpop.f32.mrb[41].mxu0  ;;  %v21565_v31 = vmul.f32 %v20212_v12, %v20212_v12 }
 0xcc2   :  { %v21567_v24 = vsub.f32 %v21560_v33, %v21566_v18  ;;  %v21579_v14 = vadd.f32 %v21565_v31, %v21564_v20  ;;  %v21576_v29 = vmul.f32 2.0, %v21566_v18 }
 0xcc4   :  { %v21580_v35 = vadd.f32 0.0001, %v21579_v14  ;;  %v21568_v10 = vmul.f32 2.0, %v21567_v24  ;;  %v21577_v32 = vadd.f32 0.0001, %v21576_v29 }
 0xcc6   :  { %v21569_v41 = vadd.f32 0.0009, %v21568_v10 }
 0xce9   :  { %v22504_v19 = vpop.f32.mrb[46].mxu1 }
 0xcea   :  { %v34803_v36 = vpop.f32.mrb[47].mxu1  ;;  %v23859_v45 = vmul.f32 %v22504_v19, %v22504_v19 }
 0xceb   :  { %v21111_v37 = vpop.f32.mrb[42].mxu0 }
 0xcec   :  { %v21571_v17 = vsub.f32 %v21111_v37, %v21565_v31  ;;  %v34713_v23 = vpop.f32.mrb[43].mxu0 }
 0xcee   :  { %v21572_v44 = vadd.f32 %v21571_v17, %v21570_v39 }
 0xcf0   :  { %v21573_v28 = vadd.f32 0.0009, %v21572_v44 }
 0xcf2   :  { %36589 = vrcp.f32 %v21573_v28 }
 0xcf3   :  { %36591 = vrcp.f32 %v21580_v35 }
 0xcfc   :  { %v36590_v42 = vpop.eup %36589 }
 0xcfd   :  { %v38304_v30 = vmul.f32 %v36590_v42, %v21569_v41  ;;  %v36592_v46 = vpop.eup %36591 }
 0xcff   :  { %v21578_v43 = vmul.f32 %v21577_v32, %v38304_v30 }
 0xd01   :  { %v38307_v25 = vmul.f32 %v36592_v46, %v21578_v43 }
 0xd15   :  { %v23404_v47 = vpop.f32.mrb[48].mxu1 }
 0xd16   :  { %v23865_v48 = vsub.f32 %v23404_v47, %v23859_v45  ;;  %v34863_v54 = vpop.f32.mrb[49].mxu1 }
 0xd17   :  { %v22054_v11 = vpop.f32.mrb[44].mxu0 }
 0xd18   :  { %v23858_v55 = vmul.f32 %v22054_v11, %v22054_v11  ;;  %v23860_v57 = vmul.f32 %v22504_v19, %v22054_v11  ;;  %v34773_v49 = vpop.f32.mrb[45].mxu0 }
 0xd1a   :  { %v23873_v51 = vadd.f32 %v23859_v45, %v23858_v55  ;;  %v23870_v18 = vmul.f32 2.0, %v23860_v57 }
 0xd1c   :  { %v23874_v26 = vadd.f32 0.0001, %v23873_v51  ;;  %v23871_v20 = vadd.f32 0.0001, %v23870_v18 }
 0xd41   :  { %v24348_v58 = vpop.f32.mrb[50].mxu1 }
 0xd42   :  { %v24353_v50 = vsel %vm17953_vm6, %v24348_v58, 0  ;;  %25254 = vrot.lane.b32.xlu0 %v24348_v58, %s36615_s11  ;;  %24804 = vrot.lane.b32.xlu1 %v24348_v58, %s36619_s22  ;;  %v34923_v52 = vpop.f32.mrb[51].mxu1 }
 0xd43   :  { %v24424_v61 = vand.u32 4294901760, %v24353_v50  ;;  %v22954_v53 = vpop.f32.mrb[46].mxu0 }
 0xd44   :  { %v23864_v22 = vsub.f32 %v22954_v53, %v23858_v55  ;;  %v34833_v16 = vpop.f32.mrb[47].mxu0  ;;  %v27_v53 = vld [vmem:[%s38904_s1 + $0x80] sm:$0xff] }
 0xd45   :  { %v24425_v60 = vsub.f32 %v24353_v50, %v24424_v61 }
 0xd46   :  { %v23866_v6 = vadd.f32 %v23865_v48, %v23864_v22  ;;  %25704 = vrot.lane.b32.xlu1 %v24348_v58, %s36618_s21  ;;  %v26172_v22 = vsel %vm26166_vm9, %v27_v53, 0 }
 0xd47   :  { %v24426_v7 = vand.u32 4294901760, %v24425_v60  ;;  %v38429_v16 = vand.u32 4294901760, %v26172_v22 }
 0xd48   :  { %v23867_v21 = vadd.f32 0.0009, %v23866_v6 }
 0xd49   :  { %v24427_v56 = vsub.f32 %v24425_v60, %v24426_v7 }
 0xd4a   :  { %36593 = vrcp.f32 %v23867_v21 }
 0xd4b   :  { %v24428_v15 = vand.u32 4294901760, %v24427_v56  ;;  %36595 = vrcp.f32 %v23874_v26 }
 0xd4d   :  { %34927 = vmatmul.mubr.f32.vlgmr.msra.gmra.mrb[50].mxu0 %v24428_v15 }
 0xd4e   :  { %34930 = vmatpush3.msra.mxu0 %v38322_v62  ;;  %34931 = vmatprep.mubr.msk.f32.mxu0 %vm36609_vm1, %v36610_v34 }
 0xd4f   :  { %34934 = vmatprep.subr.mxu0 %v36610_v34 }
 0xd54   :  { %v36594_v19 = vpop.eup %36593 }
 0xd55   :  { %34932 = vmatmul.mubr.f32.vlgmr.msra.gmra.mrb[50].mxu0 %v24424_v61  ;;  %v36596_v37 = vpop.eup %36595 }
 0xd56   :  { %34935 = vmatpush3.msra.mxu0 %v38311_v38  ;;  %34936 = vmatprep.mubr.msk.f32.mxu0 %vm36609_vm1, %v36610_v34 }
 0xd57   :  { %34939 = vmatprep.subr.mxu0 %v36610_v34 }
 0xd5d   :  { %34937 = vmatmul.mubr.f32.vlgmr.msra.gmra.mrb[50].mxu0 %v24425_v60  ;;  %v38432_v60 = vsub.f32 %v26172_v22, %v38429_v16 }
 0xd5e   :  { %34940 = vmatpush3.msra.mxu0 %v38265_v2  ;;  %34941 = vmatprep.mubr.msk.f32.mxu0 %vm36609_vm1, %v36610_v34 }
 0xd5f   :  { %34944 = vmatprep.subr.mxu0 %v36610_v34  ;;  %v38435_v59 = vand.u32 4294901760, %v38432_v60 }
 0xd65   :  { %34942 = vmatmul.mubr.f32.vlgmr.msra.gmra.mrb[50].mxu0 %v24426_v7 }
 0xd66   :  { %34945 = vmatpush3.msra.mxu0 %v38317_v63  ;;  %34946 = vmatprep.mubr.msk.f32.mxu0 %vm36609_vm1, %v36610_v34 }
 0xd67   :  { %34949 = vmatprep.subr.mxu0 %v36610_v34 }
 0xd6d   :  { %34947 = vmatmul.mubr.f32.vlgmr.msra.gmra.mrb[50].mxu0 %v24424_v61 }
 0xd6e   :  { %34950 = vmatpush3.msra.mxu0 %v38265_v2  ;;  %34951 = vmatprep.mubr.msk.f32.mxu0 %vm36609_vm1, %v36610_v34 }
 0xd6f   :  { %v23854_v33 = vpop.f32.mrb[48].mxu0  ;;  %34984 = vmatprep.subr.mxu0 %v36610_v34 }
 0xd70   :  { %v23861_v40 = vsub.f32 %v23854_v33, %v23860_v57  ;;  %v34893_v12 = vpop.f32.mrb[49].mxu0 }
 0xd72   :  { %v23862_v1 = vmul.f32 2.0, %v23861_v40 }
 0xd74   :  { %v23863_v24 = vadd.f32 0.0009, %v23862_v1 }
 0xd75   :  { %34952 = vmatmul.mubr.f32.vlgmr.msra.gmra.mrb[50].mxu0 %v24424_v61 }
 0xd76   :  { %34985 = vmatpush3.msra.mxu0 %v38265_v2  ;;  %34986 = vmatprep.mubr.msk.f32.mxu0 %vm36609_vm1, %v36610_v34  ;;  %v38347_v31 = vmul.f32 %v36594_v19, %v23863_v24 }
 0xd77   :  { %34989 = vmatprep.subr.mxu0 %v36610_v34 }
 0xd78   :  { %v23872_v36 = vmul.f32 %v23871_v20, %v38347_v31 }
 0xd7a   :  { %v38351_v39 = vmul.f32 %v36596_v37, %v23872_v36 }
 0xdb4   :  { %v25255_v17 = vpop.permute.xlu0 %25254  ;;  %v24805_v23 = vpop.permute.xlu1 %24804 }
 0xdb5   :  { %v25256_v14 = vsel %vm17953_vm6, %v25255_v17, 0  ;;  %v24806_v44 = vsel %vm17953_vm6, %v24805_v23, 0 }
 0xdb6   :  { %v25324_v28 = vand.u32 4294901760, %v25256_v14  ;;  %v24874_v35 = vand.u32 4294901760, %v24806_v44 }
 0xdb8   :  { %v25325_v10 = vsub.f32 %v25256_v14, %v25324_v28  ;;  %v24875_v29 = vsub.f32 %v24806_v44, %v24874_v35  ;;  %v25705_v47 = vpop.permute.xlu1 %25704 }
 0xdb9   :  { %v25706_v48 = vsel %vm17953_vm6, %v25705_v47, 0 }
 0xdba   :  { %v25326_v41 = vand.u32 4294901760, %v25325_v10  ;;  %v24876_v42 = vand.u32 4294901760, %v24875_v29  ;;  %v25774_v54 = vand.u32 4294901760, %v25706_v48 }
 0xdbc   :  { %v25327_v32 = vsub.f32 %v25325_v10, %v25326_v41  ;;  %v24877_v43 = vsub.f32 %v24875_v29, %v24876_v42  ;;  %v25775_v11 = vsub.f32 %v25706_v48, %v25774_v54 }
 0xdbe   :  { %v25328_v46 = vand.u32 4294901760, %v25327_v32  ;;  %v24878_v45 = vand.u32 4294901760, %v24877_v43  ;;  %v25776_v55 = vand.u32 4294901760, %v25775_v11 }
 0xdc0   :  { %34957 = vmatmul.mubr.f32.vlgmr.msra.gmra.mrb[52].mxu1 %v24878_v45  ;;  %34987 = vmatmul.mubr.f32.vlgmr.msra.gmra.mrb[52].mxu0 %v25328_v46  ;;  %v25777_v57 = vsub.f32 %v25775_v11, %v25776_v55 }
 0xdc1   :  { %34960 = vmatpush3.msra.mxu1 %v38322_v62  ;;  %34961 = vmatprep.mubr.msk.f32.mxu1 %vm36609_vm1, %v36610_v34 }
 0xdc2   :  { %34990 = vmatpush3.msra.mxu0 %v38322_v62  ;;  %34991 = vmatprep.mubr.msk.f32.mxu0 %vm36609_vm1, %v36610_v34  ;;  %v25778_v49 = vand.u32 4294901760, %v25777_v57 }
 0xdc3   :  { %34964 = vmatprep.subr.mxu1 %v36610_v34  ;;  %34994 = vmatprep.subr.mxu0 %v36610_v34 }
 0xdc8   :  { %34962 = vmatmul.mubr.f32.vlgmr.msra.gmra.mrb[52].mxu1 %v24874_v35  ;;  %34992 = vmatmul.mubr.f32.vlgmr.msra.gmra.mrb[52].mxu0 %v25324_v28 }
 0xdc9   :  { %34965 = vmatpush3.msra.mxu1 %v38311_v38  ;;  %34966 = vmatprep.mubr.msk.f32.mxu1 %vm36609_vm1, %v36610_v34 }
 0xdca   :  { %34995 = vmatpush3.msra.mxu0 %v38311_v38  ;;  %34996 = vmatprep.mubr.msk.f32.mxu0 %vm36609_vm1, %v36610_v34 }
 0xdcb   :  { %34969 = vmatprep.subr.mxu1 %v36610_v34  ;;  %34999 = vmatprep.subr.mxu0 %v36610_v34 }
 0xdd0   :  { %34967 = vmatmul.mubr.f32.vlgmr.msra.gmra.mrb[52].mxu1 %v24875_v29  ;;  %34997 = vmatmul.mubr.f32.vlgmr.msra.gmra.mrb[52].mxu0 %v25325_v10 }
 0xdd1   :  { %34970 = vmatpush3.msra.mxu1 %v38265_v2  ;;  %34971 = vmatprep.mubr.msk.f32.mxu1 %vm36609_vm1, %v36610_v34 }
 0xdd2   :  { %35000 = vmatpush3.msra.mxu0 %v38265_v2  ;;  %35001 = vmatprep.mubr.msk.f32.mxu0 %vm36609_vm1, %v36610_v34 }
 0xdd3   :  { %34974 = vmatprep.subr.mxu1 %v36610_v34  ;;  %35004 = vmatprep.subr.mxu0 %v36610_v34 }
 0xdd8   :  { %34972 = vmatmul.mubr.f32.vlgmr.msra.gmra.mrb[52].mxu1 %v24876_v42  ;;  %35002 = vmatmul.mubr.f32.vlgmr.msra.gmra.mrb[52].mxu0 %v25326_v41 }
 0xdd9   :  { %34975 = vmatpush3.msra.mxu1 %v38317_v63  ;;  %34976 = vmatprep.mubr.msk.f32.mxu1 %vm36609_vm1, %v36610_v34 }
 0xdda   :  { %35005 = vmatpush3.msra.mxu0 %v38317_v63  ;;  %35006 = vmatprep.mubr.msk.f32.mxu0 %vm36609_vm1, %v36610_v34 }
 0xddb   :  { %34979 = vmatprep.subr.mxu1 %v36610_v34  ;;  %35009 = vmatprep.subr.mxu0 %v36610_v34 }
 0xde0   :  { %34977 = vmatmul.mubr.f32.vlgmr.msra.gmra.mrb[52].mxu1 %v24874_v35  ;;  %35007 = vmatmul.mubr.f32.vlgmr.msra.gmra.mrb[52].mxu0 %v25324_v28 }
 0xde1   :  { %34980 = vmatpush3.msra.mxu1 %v38265_v2  ;;  %34981 = vmatprep.mubr.msk.f32.mxu1 %vm36609_vm1, %v36610_v34 }
 0xde2   :  { %35010 = vmatpush3.msra.mxu0 %v38265_v2  ;;  %35011 = vmatprep.mubr.msk.f32.mxu0 %vm36609_vm1, %v36610_v34 }
 0xde3   :  { %35014 = vmatprep.subr.mxu1 %v36610_v34  ;;  %35044 = vmatprep.subr.mxu0 %v36610_v34 }
 0xde8   :  { %34982 = vmatmul.mubr.f32.vlgmr.msra.gmra.mrb[52].mxu1 %v24874_v35  ;;  %35012 = vmatmul.mubr.f32.vlgmr.msra.gmra.mrb[52].mxu0 %v25324_v28  ;;  %v28_v28 = vld [vmem:[%s38904_s1 + $0x88] sm:$0xff]  ;;  %s36622_s1 = smov 126  }
 0xde9   :  { %35015 = vmatpush3.msra.mxu1 %v38265_v2  ;;  %35016 = vmatprep.mubr.msk.f32.mxu1 %vm36609_vm1, %v36610_v34  ;;  %v27531_v35 = vsel %vm26174_vm11, %v28_v28, 0 }
 0xdea   :  { %35019 = vmatprep.subr.mxu1 %v36610_v34  ;;  %35046 = vmatprep.mubr.msk.f32.mxu0 %vm36609_vm1, %v36610_v34  ;;  %v38498_v10 = vand.u32 4294901760, %v27531_v35 }
 0xdec   :  { %35017 = vmatmul.mubr.f32.vlgmr.msra.gmra.mrb[54].mxu1 %v25778_v49  ;;  %v38537_v48 = vsub.f32 %v27531_v35, %v38498_v10 }
 0xded   :  { %35020 = vmatpush3.msra.mxu1 %v38322_v62  ;;  %35021 = vmatprep.mubr.msk.f32.mxu1 %vm36609_vm1, %v36610_v34  ;;  %v26247_v62 = vsub.f32 %v38432_v60, %v38435_v59 }
 0xdee   :  { %35024 = vmatprep.subr.mxu1 %v36610_v34 }
 0xdef   :  { %v38449_v12 = vand.u32 4294901760, %v26247_v62 }
 0xdf4   :  { %35022 = vmatmul.mubr.f32.vlgmr.msra.gmra.mrb[54].mxu1 %v25774_v54 }
 0xdf5   :  { %35025 = vmatpush3.msra.mxu1 %v38311_v38  ;;  %35026 = vmatprep.mubr.msk.f32.mxu1 %vm36609_vm1, %v36610_v34 }
 0xdf6   :  { %35029 = vmatprep.subr.mxu1 %v36610_v34 }
 0xdfc   :  { %35027 = vmatmul.mubr.f32.vlgmr.msra.gmra.mrb[54].mxu1 %v25775_v11  ;;  %v38540_v11 = vand.u32 4294901760, %v38537_v48 }
 0xdfd   :  { %35030 = vmatpush3.msra.mxu1 %v38265_v2  ;;  %35031 = vmatprep.mubr.msk.f32.mxu1 %vm36609_vm1, %v36610_v34 }
 0xdfe   :  { %35034 = vmatprep.subr.mxu1 %v36610_v34 }
 0xe04   :  { %35032 = vmatmul.mubr.f32.vlgmr.msra.gmra.mrb[54].mxu1 %v25776_v55 }
 0xe05   :  { %35035 = vmatpush3.msra.mxu1 %v38317_v63  ;;  %35036 = vmatprep.mubr.msk.f32.mxu1 %vm36609_vm1, %v36610_v34 }
 0xe06   :  { %35039 = vmatprep.subr.mxu1 %v36610_v34 }
 0xe0c   :  { %35037 = vmatmul.mubr.f32.vlgmr.msra.gmra.mrb[54].mxu1 %v25774_v54 }
 0xe0d   :  { %35040 = vmatpush3.msra.mxu1 %v38265_v2  ;;  %35041 = vmatprep.mubr.msk.f32.mxu1 %vm36609_vm1, %v36610_v34 }
 0xe0e   :  { %35074 = vmatprep.subr.mxu1 %v36610_v34 }
 0xe14   :  { %35042 = vmatmul.mubr.f32.vlgmr.msra.gmra.mrb[54].mxu1 %v25774_v54 }
 0xe15   :  { %35076 = vmatprep.mubr.msk.f32.mxu1 %vm36609_vm1, %v36610_v34 }
 0xe48   :  { %v24800_v51 = vpop.f32.mrb[50].mxu0 }
 0xe49   :  { %v34953_v38 = vpop.f32.mrb[51].mxu0 }
 0xebb   :  { %v25250_v58 = vpop.f32.mrb[52].mxu1  ;;  %v25700_v50 = vpop.f32.mrb[52].mxu0 }
 0xebc   :  { %26159 = vrot.lane.b32.xlu1 %v25700_v50, %s36616_s16  ;;  %v35013_v52 = vpop.f32.mrb[53].mxu0  ;;  %26155 = vrot.lane.b32.xlu0 %v25250_v58, %s36620_s27  ;;  %v34983_v63 = vpop.f32.mrb[53].mxu1  ;;  %v27613_v50 = vsub.f32 %v38537_v48, %v38540_v11 }
 0xee7   :  { %v26150_v2 = vpop.f32.mrb[54].mxu1 }
 0xee8   :  { %26163 = vrot.lane.b32.xlu0 %v26150_v2, %s36621_s28  ;;  %v35043_v61 = vpop.f32.mrb[55].mxu1  ;;  %v38549_v2 = vand.u32 4294901760, %v27613_v50 }
 0xf2e   :  { %v26156_v6 = vpop.permute.xlu0 %26155  ;;  %v26160_v7 = vpop.permute.xlu1 %26159 }
 0xf2f   :  { %v26167_v56 = vsel %vm26166_vm9, %v24800_v51, %v26156_v6 }
 0xf30   :  { %v26168_v15 = vsel %vm17953_vm6, %v26167_v56, %v26160_v7  ;;  %vm32134_vm6 = vcmask 57344  }
 0xf5a   :  { %v26164_v21 = vpop.permute.xlu0 %26163 }
 0xf5b   :  { %v38441_v26 = vsel %vm26169_vm10, %v26168_v15, %v26164_v21 }
 0xf5c   :  { %v26176_v33 = vsel %vm26174_vm11, %v38441_v26, 0  ;;  %v26624_v40 = vmul.f32 %v38441_v26, %v38441_v26  ;;  %27074 = vrot.lane.b32.xlu1 %v38441_v26, %s36619_s22 }
 0xf5d   :  { %v26179_v18 = vand.u32 4294901760, %v26176_v33 }
 0xf5e   :  { %v26626_v1 = vsel %vm26174_vm11, %v26624_v40, 0 }
 0xf5f   :  { %v26256_v24 = vsub.f32 %v26176_v33, %v26179_v18  ;;  %35045 = vmatpush3.msra.mxu0 %v26179_v18  ;;  %v26629_v19 = vand.u32 4294901760, %v26626_v1 }
 0xf60   :  { %35047 = vmatmul.mubr.f32.vlgmr.msra.gmra.mrb[54].mxu0 %v38449_v12  ;;  %35049 = vmatprep.subr.mxu0 %v36610_v34 }
 0xf61   :  { %35075 = vmatpush3.msra.mxu1 %v26629_v19  ;;  %v26257_v20 = vand.u32 4294901760, %v26256_v24  ;;  %35051 = vmatprep.mubr.msk.f32.mxu0 %vm36609_vm1, %v36610_v34  ;;  %v26706_v36 = vsub.f32 %v26626_v1, %v26629_v19 }
 0xf62   :  { %35077 = vmatmul.mubr.f32.vlgmr.msra.gmra.mrb[56].mxu1 %v38449_v12  ;;  %35079 = vmatprep.subr.mxu1 %v36610_v34 }
 0xf63   :  { %v26258_v37 = vsub.f32 %v26256_v24, %v26257_v20  ;;  %v26707_v17 = vand.u32 4294901760, %v26706_v36  ;;  %35081 = vmatprep.mubr.msk.f32.mxu1 %vm36609_vm1, %v36610_v34 }
 0xf65   :  { %v26259_v23 = vand.u32 4294901760, %v26258_v37  ;;  %v26708_v14 = vsub.f32 %v26706_v36, %v26707_v17 }
 0xf67   :  { %35050 = vmatpush3.msra.mxu0 %v26259_v23  ;;  %v26709_v44 = vand.u32 4294901760, %v26708_v14  ;;  %v21584_v14 = vsel %vm21583_vm12, %v38307_v25, 0.0 }
 0xf68   :  { %35052 = vmatmul.mubr.f32.vlgmr.msra.gmra.mrb[54].mxu0 %v38429_v16  ;;  %35054 = vmatprep.subr.mxu0 %v36610_v34 }
 0xf69   :  { %35055 = vmatpush3.msra.mxu0 %v26256_v24  ;;  %35080 = vmatpush3.msra.mxu1 %v26709_v44 }
 0xf6a   :  { %35082 = vmatmul.mubr.f32.vlgmr.msra.gmra.mrb[56].mxu1 %v38429_v16  ;;  %35084 = vmatprep.subr.mxu1 %v36610_v34 }
 0xf6b   :  { %35085 = vmatpush3.msra.mxu1 %v26706_v36  ;;  %35056 = vmatprep.mubr.msk.f32.mxu0 %vm36609_vm1, %v36610_v34 }
 0xf6c   :  { %35059 = vmatprep.subr.mxu0 %v36610_v34  ;;  %35086 = vmatprep.mubr.msk.f32.mxu1 %vm36609_vm1, %v36610_v34 }
 0xf6d   :  { %35089 = vmatprep.subr.mxu1 %v36610_v34 }
 0xf70   :  { %35057 = vmatmul.mubr.f32.vlgmr.msra.gmra.mrb[54].mxu0 %v38432_v60 }
 0xf71   :  { %35060 = vmatpush3.msra.mxu0 %v26179_v18  ;;  %35061 = vmatprep.mubr.msk.f32.mxu0 %vm36609_vm1, %v36610_v34 }
 0xf72   :  { %35087 = vmatmul.mubr.f32.vlgmr.msra.gmra.mrb[56].mxu1 %v38432_v60  ;;  %35064 = vmatprep.subr.mxu0 %v36610_v34 }
 0xf73   :  { %35090 = vmatpush3.msra.mxu1 %v26629_v19  ;;  %35091 = vmatprep.mubr.msk.f32.mxu1 %vm36609_vm1, %v36610_v34 }
 0xf74   :  { %35094 = vmatprep.subr.mxu1 %v36610_v34 }
 0xf78   :  { %35062 = vmatmul.mubr.f32.vlgmr.msra.gmra.mrb[54].mxu0 %v38435_v59 }
 0xf79   :  { %35065 = vmatpush3.msra.mxu0 %v26257_v20  ;;  %35066 = vmatprep.mubr.msk.f32.mxu0 %vm36609_vm1, %v36610_v34 }
 0xf7a   :  { %35092 = vmatmul.mubr.f32.vlgmr.msra.gmra.mrb[56].mxu1 %v38435_v59  ;;  %35069 = vmatprep.subr.mxu0 %v36610_v34 }
 0xf7b   :  { %35095 = vmatpush3.msra.mxu1 %v26707_v17  ;;  %35096 = vmatprep.mubr.msk.f32.mxu1 %vm36609_vm1, %v36610_v34 }
 0xf7c   :  { %35099 = vmatprep.subr.mxu1 %v36610_v34 }
 0xf80   :  { %35067 = vmatmul.mubr.f32.vlgmr.msra.gmra.mrb[54].mxu0 %v38429_v16 }
 0xf81   :  { %35070 = vmatpush3.msra.mxu0 %v26179_v18  ;;  %35071 = vmatprep.mubr.msk.f32.mxu0 %vm36609_vm1, %v36610_v34 }
 0xf82   :  { %35097 = vmatmul.mubr.f32.vlgmr.msra.gmra.mrb[56].mxu1 %v38429_v16  ;;  %35104 = vmatprep.subr.mxu0 %v36610_v34 }
 0xf83   :  { %35100 = vmatpush3.msra.mxu1 %v26629_v19  ;;  %35101 = vmatprep.mubr.msk.f32.mxu1 %vm36609_vm1, %v36610_v34 }
 0xf84   :  { %35134 = vmatprep.subr.mxu1 %v36610_v34 }
 0xf88   :  { %35072 = vmatmul.mubr.f32.vlgmr.msra.gmra.mrb[54].mxu0 %v38429_v16 }
 0xf89   :  { %35106 = vmatprep.mubr.msk.f32.mxu0 %vm36609_vm1, %v36610_v34 }
 0xf8a   :  { %35102 = vmatmul.mubr.f32.vlgmr.msra.gmra.mrb[56].mxu1 %v38429_v16 }
 0xf8b   :  { %35135 = vmatpush3.msra.mxu1 %v38498_v10  ;;  %35136 = vmatprep.mubr.msk.f32.mxu1 %vm36609_vm1, %v36610_v34 }
 0xf8c   :  { %35139 = vmatprep.subr.mxu1 %v36610_v34 }
 0xfce   :  { %v27075_v29 = vpop.permute.xlu1 %27074 }
 0xfcf   :  { %v27077_v41 = vmul.f32 %v27075_v29, %v38441_v26 }
 0xfd1   :  { %v27079_v42 = vsel %vm26174_vm11, %v27077_v41, 0 }
 0xfd2   :  { %v27082_v32 = vand.u32 4294901760, %v27079_v42 }
 0xfd4   :  { %v27159_v43 = vsub.f32 %v27079_v42, %v27082_v32  ;;  %35105 = vmatpush3.msra.mxu0 %v27082_v32 }
 0xfd5   :  { %35107 = vmatmul.mubr.f32.vlgmr.msra.gmra.mrb[56].mxu0 %v38449_v12  ;;  %35109 = vmatprep.subr.mxu0 %v36610_v34 }
 0xfd6   :  { %v27160_v46 = vand.u32 4294901760, %v27159_v43  ;;  %35111 = vmatprep.mubr.msk.f32.mxu0 %vm36609_vm1, %v36610_v34 }
 0xfd8   :  { %v27161_v45 = vsub.f32 %v27159_v43, %v27160_v46 }
 0xfda   :  { %v27162_v47 = vand.u32 4294901760, %v27161_v45 }
 0xfdc   :  { %35110 = vmatpush3.msra.mxu0 %v27162_v47 }
 0xfdd   :  { %35112 = vmatmul.mubr.f32.vlgmr.msra.gmra.mrb[56].mxu0 %v38429_v16  ;;  %35114 = vmatprep.subr.mxu0 %v36610_v34 }
 0xfde   :  { %35115 = vmatpush3.msra.mxu0 %v27159_v43  ;;  %35116 = vmatprep.mubr.msk.f32.mxu0 %vm36609_vm1, %v36610_v34 }
 0xfdf   :  { %35119 = vmatprep.subr.mxu0 %v36610_v34 }
 0xfe5   :  { %35117 = vmatmul.mubr.f32.vlgmr.msra.gmra.mrb[56].mxu0 %v38432_v60 }
 0xfe6   :  { %35120 = vmatpush3.msra.mxu0 %v27082_v32  ;;  %35121 = vmatprep.mubr.msk.f32.mxu0 %vm36609_vm1, %v36610_v34 }
 0xfe7   :  { %35124 = vmatprep.subr.mxu0 %v36610_v34 }
 0xfed   :  { %35122 = vmatmul.mubr.f32.vlgmr.msra.gmra.mrb[56].mxu0 %v38435_v59 }
 0xfee   :  { %35125 = vmatpush3.msra.mxu0 %v27160_v46  ;;  %35126 = vmatprep.mubr.msk.f32.mxu0 %vm36609_vm1, %v36610_v34 }
 0xfef   :  { %35129 = vmatprep.subr.mxu0 %v36610_v34 }
 0xff5   :  { %35127 = vmatmul.mubr.f32.vlgmr.msra.gmra.mrb[56].mxu0 %v38429_v16 }
 0xff6   :  { %35130 = vmatpush3.msra.mxu0 %v27082_v32  ;;  %35131 = vmatprep.mubr.msk.f32.mxu0 %vm36609_vm1, %v36610_v34 }
 0xff7   :  { %35164 = vmatprep.subr.mxu0 %v36610_v34 }
 0xffd   :  { %35132 = vmatmul.mubr.f32.vlgmr.msra.gmra.mrb[56].mxu0 %v38429_v16 }
 0xffe   :  { %35165 = vmatpush3.msra.mxu0 %v38498_v10  ;;  %35166 = vmatprep.mubr.msk.f32.mxu0 %vm36609_vm1, %v36610_v34 }
 0xfff   :  { %35169 = vmatprep.subr.mxu0 %v36610_v34 }
0x105b   :  { %v26620_v54 = vpop.f32.mrb[54].mxu0 }
0x105c   :  { %v27528_v55 = vsel %vm26166_vm9, %v26620_v54, 0  ;;  %27979 = vrot.lane.b32.xlu0 %v26620_v54, %s36619_s22  ;;  %v35073_v57 = vpop.f32.mrb[55].mxu0 }
0x105d   :  { %v27599_v49 = vand.u32 4294901760, %v27528_v55  ;;  %v27070_v51 = vpop.f32.mrb[56].mxu1 }
0x105e   :  { %28878 = vrot.lane.b32.xlu1 %v27070_v51, %s36619_s22  ;;  %v35103_v38 = vpop.f32.mrb[57].mxu1  ;;  %v28430_v53 = vsel %vm26166_vm9, %v27070_v51, 0 }
0x105f   :  { %v27600_v58 = vsub.f32 %v27528_v55, %v27599_v49  ;;  %v28498_v22 = vand.u32 4294901760, %v28430_v53 }
0x1060   :  { %29821 = vrot.lane.b32.xlu0 %v26620_v54, %s36622_s1 }
0x1061   :  { %v27601_v52 = vand.u32 4294901760, %v27600_v58  ;;  %v28499_v16 = vsub.f32 %v28430_v53, %v28498_v22 }
0x1062   :  { %30271 = vrot.lane.b32.xlu1 %v26620_v54, %s36623_s5 }
0x1063   :  { %v27602_v63 = vsub.f32 %v27600_v58, %v27601_v52  ;;  %v28500_v60 = vand.u32 4294901760, %v28499_v16 }
0x1064   :  { %30721 = vrot.lane.b32.xlu0 %v27070_v51, %s36622_s1 }
0x1065   :  { %v27603_v61 = vand.u32 4294901760, %v27602_v63  ;;  %v28501_v6 = vsub.f32 %v28499_v16, %v28500_v60 }
0x1066   :  { %31171 = vrot.lane.b32.xlu1 %v27070_v51, %s36623_s5 }
0x1067   :  { %35137 = vmatmul.mubr.f32.vlgmr.msra.gmra.mrb[58].mxu1 %v27603_v61  ;;  %v28502_v59 = vand.u32 4294901760, %v28501_v6 }
0x1068   :  { %35140 = vmatpush3.msra.mxu1 %v38549_v2  ;;  %35141 = vmatprep.mubr.msk.f32.mxu1 %vm36609_vm1, %v36610_v34 }
0x1069   :  { %35144 = vmatprep.subr.mxu1 %v36610_v34 }
0x106f   :  { %35142 = vmatmul.mubr.f32.vlgmr.msra.gmra.mrb[58].mxu1 %v27599_v49 }
0x1070   :  { %35145 = vmatpush3.msra.mxu1 %v38537_v48  ;;  %35146 = vmatprep.mubr.msk.f32.mxu1 %vm36609_vm1, %v36610_v34 }
0x1071   :  { %35149 = vmatprep.subr.mxu1 %v36610_v34 }
0x1077   :  { %35147 = vmatmul.mubr.f32.vlgmr.msra.gmra.mrb[58].mxu1 %v27600_v58 }
0x1078   :  { %35150 = vmatpush3.msra.mxu1 %v38498_v10  ;;  %35151 = vmatprep.mubr.msk.f32.mxu1 %vm36609_vm1, %v36610_v34 }
0x1079   :  { %35154 = vmatprep.subr.mxu1 %v36610_v34 }
0x107f   :  { %35152 = vmatmul.mubr.f32.vlgmr.msra.gmra.mrb[58].mxu1 %v27601_v52 }
0x1080   :  { %35155 = vmatpush3.msra.mxu1 %v38540_v11  ;;  %35156 = vmatprep.mubr.msk.f32.mxu1 %vm36609_vm1, %v36610_v34 }
0x1081   :  { %35159 = vmatprep.subr.mxu1 %v36610_v34 }
0x1087   :  { %35157 = vmatmul.mubr.f32.vlgmr.msra.gmra.mrb[58].mxu1 %v27599_v49 }
0x1088   :  { %35160 = vmatpush3.msra.mxu1 %v38498_v10  ;;  %35161 = vmatprep.mubr.msk.f32.mxu1 %vm36609_vm1, %v36610_v34 }
0x1089   :  { %35194 = vmatprep.subr.mxu1 %v36610_v34 }
0x108a   :  { %4141 = vadd.xlane.f32.xlu1 %v37146_v13  ;;  %v21596_v13 = vsel %vm21583_vm12, %v38304_v30, 0.0 }
0x108e   :  { %6771 = vadd.xlane.f32.xlu1 %v37178_v5  ;;  %v23889_v5 = vsel %vm21583_vm12, %v38347_v31, 0.0 }
0x108f   :  { %35162 = vmatmul.mubr.f32.vlgmr.msra.gmra.mrb[58].mxu1 %v27599_v49 }
0x1090   :  { %35195 = vmatpush3.msra.mxu1 %v38498_v10  ;;  %35196 = vmatprep.mubr.msk.f32.mxu1 %vm36609_vm1, %v36610_v34 }
0x1091   :  { %35199 = vmatprep.subr.mxu1 %v36610_v34 }
0x1092   :  { %13129 = vadd.xlane.f32.xlu1 %v37681_v4 }
0x1093   :  { %35197 = vmatmul.mubr.f32.vlgmr.msra.gmra.mrb[60].mxu1 %v28502_v59 }
0x1094   :  { %35200 = vmatpush3.msra.mxu1 %v38549_v2  ;;  %35201 = vmatprep.mubr.msk.f32.mxu1 %vm36609_vm1, %v36610_v34 }
0x1095   :  { %35204 = vmatprep.subr.mxu1 %v36610_v34 }
0x1096   :  { %15680 = vadd.xlane.f32.xlu1 %v37736_v3 }
0x109a   :  { %21597 = vadd.xlane.f32.xlu1 %v21596_v13 }
0x109b   :  { %35202 = vmatmul.mubr.f32.vlgmr.msra.gmra.mrb[60].mxu1 %v28498_v22 }
0x109c   :  { %35205 = vmatpush3.msra.mxu1 %v38537_v48  ;;  %35206 = vmatprep.mubr.msk.f32.mxu1 %vm36609_vm1, %v36610_v34 }
0x109d   :  { %35209 = vmatprep.subr.mxu1 %v36610_v34 }
0x109e   :  { %23890 = vadd.xlane.f32.xlu1 %v23889_v5 }
0x10a3   :  { %35207 = vmatmul.mubr.f32.vlgmr.msra.gmra.mrb[60].mxu1 %v28499_v16 }
0x10a4   :  { %35210 = vmatpush3.msra.mxu1 %v38498_v10  ;;  %35211 = vmatprep.mubr.msk.f32.mxu1 %vm36609_vm1, %v36610_v34 }
0x10a5   :  { %35214 = vmatprep.subr.mxu1 %v36610_v34 }
0x10ab   :  { %35212 = vmatmul.mubr.f32.vlgmr.msra.gmra.mrb[60].mxu1 %v28500_v60 }
0x10ac   :  { %35215 = vmatpush3.msra.mxu1 %v38540_v11  ;;  %35216 = vmatprep.mubr.msk.f32.mxu1 %vm36609_vm1, %v36610_v34 }
0x10ad   :  { %35219 = vmatprep.subr.mxu1 %v36610_v34 }
0x10b3   :  { %35217 = vmatmul.mubr.f32.vlgmr.msra.gmra.mrb[60].mxu1 %v28498_v22 }
0x10b4   :  { %35220 = vmatpush3.msra.mxu1 %v38498_v10  ;;  %35221 = vmatprep.mubr.msk.f32.mxu1 %vm36609_vm1, %v36610_v34 }
0x10b5   :  { %35254 = vmatprep.subr.mxu1 %v36610_v34 }
0x10bb   :  { %35222 = vmatmul.mubr.f32.vlgmr.msra.gmra.mrb[60].mxu1 %v28498_v22 }
0x10bc   :  { %35255 = vmatpush3.msra.mxu1 %v38498_v10  ;;  %35256 = vmatprep.mubr.msk.f32.mxu1 %vm36609_vm1, %v36610_v34 }
0x10bd   :  { %35259 = vmatprep.subr.mxu1 %v36610_v34 }
0x10ce   :  { %v27980_v4 = vpop.permute.xlu0 %27979 }
0x10cf   :  { %v27981_v3 = vsel %vm26166_vm9, %v27980_v4, 0 }
0x10d0   :  { %v38609_v30 = vand.u32 4294901760, %v27981_v3  ;;  %v27523_v31 = vpop.f32.mrb[56].mxu0  ;;  %v28879_v24 = vpop.permute.xlu1 %28878 }
0x10d1   :  { %v29329_v7 = vsel %vm26166_vm9, %v27523_v31, 0  ;;  %31621 = vrot.lane.b32.xlu0 %v27523_v31, %s36622_s1  ;;  %v35133_v56 = vpop.f32.mrb[57].mxu0  ;;  %v28880_v20 = vsel %vm26166_vm9, %v28879_v24, 0 }
0x10d2   :  { %v28050_v62 = vsub.f32 %v27981_v3, %v38609_v30  ;;  %v38614_v15 = vand.u32 4294901760, %v29329_v7  ;;  %v38649_v37 = vand.u32 4294901760, %v28880_v20  ;;  %v29822_v42 = vpop.permute.xlu0 %29821 }
0x10d3   :  { %v29823_v46 = vsel %vm26166_vm9, %v29822_v42, 0 }
0x10d4   :  { %v28051_v21 = vand.u32 4294901760, %v28050_v62  ;;  %v29398_v26 = vsub.f32 %v29329_v7, %v38614_v15  ;;  %v30272_v19 = vpop.permute.xlu1 %30271  ;;  %v28949_v17 = vsub.f32 %v28880_v20, %v38649_v37  ;;  %v38723_v54 = vand.u32 4294901760, %v29823_v46 }
0x10d5   :  { %v30273_v36 = vsel %vm26166_vm9, %v30272_v19, 0 }
0x10d6   :  { %v28052_v33 = vsub.f32 %v28050_v62, %v28051_v21  ;;  %v29399_v40 = vand.u32 4294901760, %v29398_v26  ;;  %v29892_v51 = vsub.f32 %v29823_v46, %v38723_v54  ;;  %v30722_v22 = vpop.permute.xlu0 %30721 }
0x10d7   :  { %v30723_v16 = vsel %vm26166_vm9, %v30722_v22, 0 }
0x10d8   :  { %v28053_v12 = vand.u32 4294901760, %v28052_v33  ;;  %v29400_v18 = vsub.f32 %v29398_v26, %v29399_v40  ;;  %v29893_v58 = vand.u32 4294901760, %v29892_v51  ;;  %v38784_v60 = vand.u32 4294901760, %v30723_v16 }
0x10da   :  { %35167 = vmatmul.mubr.f32.vlgmr.msra.gmra.mrb[58].mxu0 %v28053_v12  ;;  %v29401_v1 = vand.u32 4294901760, %v29400_v18  ;;  %v29894_v52 = vsub.f32 %v29892_v51, %v29893_v58  ;;  %v30792_v6 = vsub.f32 %v30723_v16, %v38784_v60 }
0x10db   :  { %35170 = vmatpush3.msra.mxu0 %v38549_v2  ;;  %35171 = vmatprep.mubr.msk.f32.mxu0 %vm36609_vm1, %v36610_v34 }
0x10dc   :  { %35257 = vmatmul.mubr.f32.vlgmr.msra.gmra.mrb[62].mxu1 %v29401_v1  ;;  %35174 = vmatprep.subr.mxu0 %v36610_v34  ;;  %v29895_v61 = vand.u32 4294901760, %v29894_v52  ;;  %v30793_v59 = vand.u32 4294901760, %v30792_v6 }
0x10dd   :  { %35260 = vmatpush3.msra.mxu1 %v38549_v2  ;;  %35261 = vmatprep.mubr.msk.f32.mxu1 %vm36609_vm1, %v36610_v34 }
0x10de   :  { %35264 = vmatprep.subr.mxu1 %v36610_v34  ;;  %v30794_v13 = vsub.f32 %v30792_v6, %v30793_v59 }
0x10e0   :  { %v30795_v5 = vand.u32 4294901760, %v30794_v13 }
0x10e2   :  { %35172 = vmatmul.mubr.f32.vlgmr.msra.gmra.mrb[58].mxu0 %v38609_v30 }
0x10e3   :  { %35175 = vmatpush3.msra.mxu0 %v38537_v48  ;;  %35176 = vmatprep.mubr.msk.f32.mxu0 %vm36609_vm1, %v36610_v34 }
0x10e4   :  { %35262 = vmatmul.mubr.f32.vlgmr.msra.gmra.mrb[62].mxu1 %v38614_v15  ;;  %35179 = vmatprep.subr.mxu0 %v36610_v34 }
0x10e5   :  { %35265 = vmatpush3.msra.mxu1 %v38537_v48  ;;  %35266 = vmatprep.mubr.msk.f32.mxu1 %vm36609_vm1, %v36610_v34 }
0x10e6   :  { %35269 = vmatprep.subr.mxu1 %v36610_v34 }
0x10ea   :  { %35177 = vmatmul.mubr.f32.vlgmr.msra.gmra.mrb[58].mxu0 %v28050_v62 }
0x10eb   :  { %35180 = vmatpush3.msra.mxu0 %v38498_v10  ;;  %35181 = vmatprep.mubr.msk.f32.mxu0 %vm36609_vm1, %v36610_v34 }
0x10ec   :  { %35267 = vmatmul.mubr.f32.vlgmr.msra.gmra.mrb[62].mxu1 %v29398_v26  ;;  %35184 = vmatprep.subr.mxu0 %v36610_v34 }
0x10ed   :  { %35270 = vmatpush3.msra.mxu1 %v38498_v10  ;;  %35271 = vmatprep.mubr.msk.f32.mxu1 %vm36609_vm1, %v36610_v34 }
0x10ee   :  { %35274 = vmatprep.subr.mxu1 %v36610_v34 }
0x10f0   :  { %4155 = vadd.xlane.f32.xlu0 %v37142_v27  ;;  %v38655_v27 = vand.u32 4294901760, %v30273_v36 }
0x10f2   :  { %35182 = vmatmul.mubr.f32.vlgmr.msra.gmra.mrb[58].mxu0 %v28051_v21  ;;  %v38662_v23 = vsub.f32 %v30273_v36, %v38655_v27 }
0x10f3   :  { %35185 = vmatpush3.msra.mxu0 %v38540_v11  ;;  %35186 = vmatprep.mubr.msk.f32.mxu0 %vm36609_vm1, %v36610_v34 }
0x10f4   :  { %35272 = vmatmul.mubr.f32.vlgmr.msra.gmra.mrb[62].mxu1 %v29399_v40  ;;  %6757 = vadd.xlane.f32.xlu0 %v37182_v8  ;;  %v28950_v8 = vand.u32 4294901760, %v28949_v17 }
0x10f5   :  { %35275 = vmatpush3.msra.mxu1 %v38540_v11  ;;  %35276 = vmatprep.mubr.msk.f32.mxu1 %vm36609_vm1, %v36610_v34 }
0x10f6   :  { %35189 = vmatprep.subr.mxu0 %v36610_v34  ;;  %35279 = vmatprep.subr.mxu1 %v36610_v34  ;;  %v28951_v44 = vsub.f32 %v28949_v17, %v28950_v8 }
0x10f8   :  { %13115 = vadd.xlane.f32.xlu0 %v37685_v9  ;;  %v30343_v9 = vand.u32 4294901760, %v38662_v23  ;;  %v28952_v35 = vand.u32 4294901760, %v28951_v44 }
0x10fa   :  { %35187 = vmatmul.mubr.f32.vlgmr.msra.gmra.mrb[58].mxu0 %v38609_v30  ;;  %v30344_v28 = vsub.f32 %v38662_v23, %v30343_v9 }
0x10fb   :  { %35190 = vmatpush3.msra.mxu0 %v38498_v10  ;;  %35191 = vmatprep.mubr.msk.f32.mxu0 %vm36609_vm1, %v36610_v34 }
0x10fc   :  { %35277 = vmatmul.mubr.f32.vlgmr.msra.gmra.mrb[62].mxu1 %v38614_v15  ;;  %15666 = vadd.xlane.f32.xlu0 %v37740_v0  ;;  %v23877_v0 = vsel %vm21583_vm12, %v38351_v39, 0.0  ;;  %v30345_v25 = vand.u32 4294901760, %v30344_v28  ;;  %v31172_v39 = vpop.permute.xlu1 %31171 }
0x10fd   :  { %35280 = vmatpush3.msra.mxu1 %v38498_v10  ;;  %35281 = vmatprep.mubr.msk.f32.mxu1 %vm36609_vm1, %v36610_v34  ;;  %v31173_v47 = vsel %vm26166_vm9, %v31172_v39, 0 }
0x10fe   :  { %35224 = vmatprep.subr.mxu0 %v36610_v34  ;;  %35314 = vmatprep.subr.mxu1 %v36610_v34  ;;  %v38729_v57 = vand.u32 4294901760, %v31173_v47 }
0x1100   :  { %21585 = vadd.xlane.f32.xlu0 %v21584_v14  ;;  %v31242_v38 = vsub.f32 %v31173_v47, %v38729_v57 }
0x1102   :  { %35192 = vmatmul.mubr.f32.vlgmr.msra.gmra.mrb[58].mxu0 %v38609_v30  ;;  %v31243_v50 = vand.u32 4294901760, %v31242_v38 }
0x1103   :  { %35225 = vmatpush3.msra.mxu0 %v38498_v10  ;;  %35226 = vmatprep.mubr.msk.f32.mxu0 %vm36609_vm1, %v36610_v34 }
0x1104   :  { %35282 = vmatmul.mubr.f32.vlgmr.msra.gmra.mrb[62].mxu1 %v38614_v15  ;;  %23878 = vadd.xlane.f32.xlu0 %v23877_v0  ;;  %v31244_v63 = vsub.f32 %v31242_v38, %v31243_v50 }
0x1105   :  { %35315 = vmatpush3.msra.mxu1 %v38498_v10  ;;  %35316 = vmatprep.mubr.msk.f32.mxu1 %vm36609_vm1, %v36610_v34 }
0x1106   :  { %35227 = vmatmul.mubr.f32.vlgmr.msra.gmra.mrb[60].mxu0 %v28952_v35  ;;  %35229 = vmatprep.subr.mxu0 %v36610_v34  ;;  %v31245_v53 = vand.u32 4294901760, %v31244_v63 }
0x1107   :  { %35230 = vmatpush3.msra.mxu0 %v38549_v2  ;;  %35231 = vmatprep.mubr.msk.f32.mxu0 %vm36609_vm1, %v36610_v34 }
0x1108   :  { %35317 = vmatmul.mubr.f32.vlgmr.msra.gmra.mrb[64].mxu1 %v30345_v25  ;;  %35319 = vmatprep.subr.mxu1 %v36610_v34 }
0x1109   :  { %35320 = vmatpush3.msra.mxu1 %v38549_v2  ;;  %35321 = vmatprep.mubr.msk.f32.mxu1 %vm36609_vm1, %v36610_v34 }
0x110a   :  { %35234 = vmatprep.subr.mxu0 %v36610_v34  ;;  %35324 = vmatprep.subr.mxu1 %v36610_v34 }
0x110e   :  { %35232 = vmatmul.mubr.f32.vlgmr.msra.gmra.mrb[60].mxu0 %v38649_v37 }
0x110f   :  { %35235 = vmatpush3.msra.mxu0 %v38537_v48  ;;  %35236 = vmatprep.mubr.msk.f32.mxu0 %vm36609_vm1, %v36610_v34 }
0x1110   :  { %35322 = vmatmul.mubr.f32.vlgmr.msra.gmra.mrb[64].mxu1 %v38655_v27  ;;  %35239 = vmatprep.subr.mxu0 %v36610_v34 }
0x1111   :  { %35325 = vmatpush3.msra.mxu1 %v38537_v48  ;;  %35326 = vmatprep.mubr.msk.f32.mxu1 %vm36609_vm1, %v36610_v34 }
0x1112   :  { %35329 = vmatprep.subr.mxu1 %v36610_v34 }
0x1116   :  { %35237 = vmatmul.mubr.f32.vlgmr.msra.gmra.mrb[60].mxu0 %v28949_v17 }
0x1117   :  { %v4142_v29 = vpop.xlane.xlu1 %4141  ;;  %35240 = vmatpush3.msra.mxu0 %v38498_v10  ;;  %35241 = vmatprep.mubr.msk.f32.mxu0 %vm36609_vm1, %v36610_v34 }
0x1118   :  { %v4143_v41 = vrot.slane %v4142_v29, 4  ;;  %35327 = vmatmul.mubr.f32.vlgmr.msra.gmra.mrb[64].mxu1 %v38662_v23  ;;  %35244 = vmatprep.subr.mxu0 %v36610_v34 }
0x1119   :  { %35330 = vmatpush3.msra.mxu1 %v38498_v10  ;;  %35331 = vmatprep.mubr.msk.f32.mxu1 %vm36609_vm1, %v36610_v34 }
0x111a   :  { %v4144_v32 = vadd.f32 %v4143_v41, %v4142_v29  ;;  %35334 = vmatprep.subr.mxu1 %v36610_v34 }
0x111b   :  { %v6772_v30 = vpop.xlane.xlu1 %6771 }
0x111c   :  { %v4145_v43 = vrot.slane %v4144_v32, 2  ;;  %v6773_v62 = vrot.slane %v6772_v30, 4 }
0x111e   :  { %35242 = vmatmul.mubr.f32.vlgmr.msra.gmra.mrb[60].mxu0 %v28950_v8  ;;  %v4146_v45 = vadd.f32 %v4145_v43, %v4144_v32  ;;  %v6774_v26 = vadd.f32 %v6773_v62, %v6772_v30 }
0x111f   :  { %35245 = vmatpush3.msra.mxu0 %v38540_v11  ;;  %35246 = vmatprep.mubr.msk.f32.mxu0 %vm36609_vm1, %v36610_v34  ;;  %v13130_v7 = vpop.xlane.xlu1 %13129 }
0x1120   :  { %35332 = vmatmul.mubr.f32.vlgmr.msra.gmra.mrb[64].mxu1 %v30343_v9  ;;  %v4147_v55 = vrot.slane %v4146_v45, 1  ;;  %35249 = vmatprep.subr.mxu0 %v36610_v34  ;;  %v13131_v33 = vrot.slane %v13130_v7, 4  ;;  %v6775_v1 = vrot.slane %v6774_v26, 2 }
0x1121   :  { %35335 = vmatpush3.msra.mxu1 %v38540_v11  ;;  %35336 = vmatprep.mubr.msk.f32.mxu1 %vm36609_vm1, %v36610_v34 }
0x1122   :  { %v4148_v49 = vadd.f32 %v4147_v55, %v4146_v45  ;;  %35339 = vmatprep.subr.mxu1 %v36610_v34  ;;  %v13132_v24 = vadd.f32 %v13131_v33, %v13130_v7  ;;  %v6776_v9 = vadd.f32 %v6775_v1, %v6774_v26 }
0x1123   :  { %v15681_v21 = vpop.xlane.xlu1 %15680 }
0x1124   :  { %36506 = vpush %v4148_v49  ;;  %v13133_v8 = vrot.slane %v13132_v24, 2  ;;  %v6777_v32 = vrot.slane %v6776_v9, 1 }
0x1126   :  { %35247 = vmatmul.mubr.f32.vlgmr.msra.gmra.mrb[60].mxu0 %v38649_v37  ;;  %v13134_v43 = vadd.f32 %v13133_v8, %v13132_v24  ;;  %v6778_v52 = vadd.f32 %v6777_v32, %v6776_v9 }
0x1127   :  { %35250 = vmatpush3.msra.mxu0 %v38498_v10  ;;  %35251 = vmatprep.mubr.msk.f32.mxu0 %vm36609_vm1, %v36610_v34  ;;  %v21598_v19 = vpop.xlane.xlu1 %21597 }
0x1128   :  { %35337 = vmatmul.mubr.f32.vlgmr.msra.gmra.mrb[64].mxu1 %v38655_v27  ;;  %35284 = vmatprep.subr.mxu0 %v36610_v34  ;;  %v21599_v35 = vrot.slane %v21598_v19, 4  ;;  %v13135_v22 = vrot.slane %v13134_v43, 1 }
0x1129   :  { %35340 = vmatpush3.msra.mxu1 %v38498_v10  ;;  %35341 = vmatprep.mubr.msk.f32.mxu1 %vm36609_vm1, %v36610_v34 }
0x112a   :  { %35374 = vmatprep.subr.mxu1 %v36610_v34 }
0x112b   :  { %v23891_v39 = vpop.xlane.xlu1 %23890 }
0x112c   :  { %v23892_v49 = vrot.slane %v23891_v39, 4 }
0x112e   :  { %35252 = vmatmul.mubr.f32.vlgmr.msra.gmra.mrb[60].mxu0 %v38649_v37  ;;  %v15682_v37 = vrot.slane %v15681_v21, 4 }
0x112f   :  { %35285 = vmatpush3.msra.mxu0 %v38498_v10  ;;  %35286 = vmatprep.mubr.msk.f32.mxu0 %vm36609_vm1, %v36610_v34 }
0x1130   :  { %35342 = vmatmul.mubr.f32.vlgmr.msra.gmra.mrb[64].mxu1 %v38655_v27  ;;  %35289 = vmatprep.subr.mxu0 %v36610_v34  ;;  %v15683_v0 = vadd.f32 %v15682_v37, %v15681_v21 }
0x1131   :  { %35375 = vmatpush3.msra.mxu1 %v38498_v10  ;;  %35376 = vmatprep.mubr.msk.f32.mxu1 %vm36609_vm1, %v36610_v34 }
0x1132   :  { %35287 = vmatmul.mubr.f32.vlgmr.msra.gmra.mrb[62].mxu0 %v29895_v61  ;;  %35379 = vmatprep.subr.mxu1 %v36610_v34  ;;  %v15684_v55 = vrot.slane %v15683_v0, 2 }
0x1133   :  { %35290 = vmatpush3.msra.mxu0 %v38549_v2  ;;  %35291 = vmatprep.mubr.msk.f32.mxu0 %vm36609_vm1, %v36610_v34 }
0x1134   :  { %35377 = vmatmul.mubr.f32.vlgmr.msra.gmra.mrb[66].mxu1 %v31245_v53  ;;  %35294 = vmatprep.subr.mxu0 %v36610_v34  ;;  %v15685_v13 = vadd.f32 %v15684_v55, %v15683_v0 }
0x1135   :  { %35380 = vmatpush3.msra.mxu1 %v38549_v2  ;;  %35381 = vmatprep.mubr.msk.f32.mxu1 %vm36609_vm1, %v36610_v34 }
0x1136   :  { %35384 = vmatprep.subr.mxu1 %v36610_v34 }
0x113a   :  { %35292 = vmatmul.mubr.f32.vlgmr.msra.gmra.mrb[62].mxu0 %v38723_v54 }
0x113b   :  { %35295 = vmatpush3.msra.mxu0 %v38537_v48  ;;  %35296 = vmatprep.mubr.msk.f32.mxu0 %vm36609_vm1, %v36610_v34 }
0x113c   :  { %35382 = vmatmul.mubr.f32.vlgmr.msra.gmra.mrb[66].mxu1 %v38729_v57  ;;  %35299 = vmatprep.subr.mxu0 %v36610_v34 }
0x113d   :  { %35385 = vmatpush3.msra.mxu1 %v38537_v48  ;;  %35386 = vmatprep.mubr.msk.f32.mxu1 %vm36609_vm1, %v36610_v34 }
0x113e   :  { %35389 = vmatprep.subr.mxu1 %v36610_v34 }
0x1142   :  { %35297 = vmatmul.mubr.f32.vlgmr.msra.gmra.mrb[62].mxu0 %v29892_v51 }
0x1143   :  { %35300 = vmatpush3.msra.mxu0 %v38498_v10  ;;  %35301 = vmatprep.mubr.msk.f32.mxu0 %vm36609_vm1, %v36610_v34  ;;  %v31622_v31 = vpop.permute.xlu0 %31621 }
0x1144   :  { %35387 = vmatmul.mubr.f32.vlgmr.msra.gmra.mrb[66].mxu1 %v31242_v38  ;;  %35304 = vmatprep.subr.mxu0 %v36610_v34  ;;  %v31623_v56 = vsel %vm26166_vm9, %v31622_v31, 0 }
0x1145   :  { %35390 = vmatpush3.msra.mxu1 %v38498_v10  ;;  %35391 = vmatprep.mubr.msk.f32.mxu1 %vm36609_vm1, %v36610_v34  ;;  %v38826_v15 = vand.u32 4294901760, %v31623_v56 }
0x1146   :  { %35394 = vmatprep.subr.mxu1 %v36610_v34 }
0x1147   :  { %v38830_v40 = vsub.f32 %v31623_v56, %v38826_v15 }
0x1149   :  { %v31693_v20 = vand.u32 4294901760, %v38830_v40 }
0x114a   :  { %35302 = vmatmul.mubr.f32.vlgmr.msra.gmra.mrb[62].mxu0 %v29893_v58 }
0x114b   :  { %35305 = vmatpush3.msra.mxu0 %v38540_v11  ;;  %35306 = vmatprep.mubr.msk.f32.mxu0 %vm36609_vm1, %v36610_v34  ;;  %v31694_v14 = vsub.f32 %v38830_v40, %v31693_v20 }
0x114c   :  { %35392 = vmatmul.mubr.f32.vlgmr.msra.gmra.mrb[66].mxu1 %v31243_v50  ;;  %35309 = vmatprep.subr.mxu0 %v36610_v34 }
0x114d   :  { %35395 = vmatpush3.msra.mxu1 %v38540_v11  ;;  %35396 = vmatprep.mubr.msk.f32.mxu1 %vm36609_vm1, %v36610_v34  ;;  %v31695_v46 = vand.u32 4294901760, %v31694_v14 }
0x114e   :  { %35399 = vmatprep.subr.mxu1 %v36610_v34 }
0x1152   :  { %35307 = vmatmul.mubr.f32.vlgmr.msra.gmra.mrb[62].mxu0 %v38723_v54 }
0x1153   :  { %35310 = vmatpush3.msra.mxu0 %v38498_v10  ;;  %35311 = vmatprep.mubr.msk.f32.mxu0 %vm36609_vm1, %v36610_v34 }
0x1154   :  { %35397 = vmatmul.mubr.f32.vlgmr.msra.gmra.mrb[66].mxu1 %v38729_v57  ;;  %35344 = vmatprep.subr.mxu0 %v36610_v34 }
0x1155   :  { %35400 = vmatpush3.msra.mxu1 %v38498_v10  ;;  %35401 = vmatprep.mubr.msk.f32.mxu1 %vm36609_vm1, %v36610_v34  ;;  %s36507_s6 = spop %36506 }
0x115a   :  { %35312 = vmatmul.mubr.f32.vlgmr.msra.gmra.mrb[62].mxu0 %v38723_v54 }
0x115b   :  { %35345 = vmatpush3.msra.mxu0 %v38498_v10  ;;  %35346 = vmatprep.mubr.msk.f32.mxu0 %vm36609_vm1, %v36610_v34 }
0x115c   :  { %35402 = vmatmul.mubr.f32.vlgmr.msra.gmra.mrb[66].mxu1 %v38729_v57  ;;  %35349 = vmatprep.subr.mxu0 %v36610_v34  ;;  %v21600_v57 = vadd.f32 %v21599_v35, %v21598_v19 }
0x115e   :  { %35347 = vmatmul.mubr.f32.vlgmr.msra.gmra.mrb[64].mxu0 %v30795_v5  ;;  %v21601_v16 = vrot.slane %v21600_v57, 2 }
0x115f   :  { %35350 = vmatpush3.msra.mxu0 %v38549_v2  ;;  %35351 = vmatprep.mubr.msk.f32.mxu0 %vm36609_vm1, %v36610_v34 }
0x1160   :  { %35354 = vmatprep.subr.mxu0 %v36610_v34  ;;  %v21602_v1 = vadd.f32 %v21601_v16, %v21600_v57 }
0x1162   :  { %v38811_v4 = vpop.f32.mrb[58].mxu1  ;;  %v21603_v8 = vrot.slane %v21602_v1, 1 }
0x1163   :  { %v35163_v3 = vpop.f32.mrb[59].mxu1 }
0x1164   :  { %v21604_v35 = vadd.f32 %v21603_v8, %v21602_v1 }
0x1166   :  { %35352 = vmatmul.mubr.f32.vlgmr.msra.gmra.mrb[64].mxu0 %v38784_v60 }
0x1167   :  { %35355 = vmatpush3.msra.mxu0 %v38537_v48  ;;  %35356 = vmatprep.mubr.msk.f32.mxu0 %vm36609_vm1, %v36610_v34 }
0x1168   :  { %35359 = vmatprep.subr.mxu0 %v36610_v34 }
0x116e   :  { %35357 = vmatmul.mubr.f32.vlgmr.msra.gmra.mrb[64].mxu0 %v30792_v6  ;;  %v38852_v6 = vmul.f32 %v38811_v4, %v38811_v4 }
0x116f   :  { %35360 = vmatpush3.msra.mxu0 %v38498_v10  ;;  %35361 = vmatprep.mubr.msk.f32.mxu0 %vm36609_vm1, %v36610_v34 }
0x1170   :  { %35364 = vmatprep.subr.mxu0 %v36610_v34 }
0x1176   :  { %35362 = vmatmul.mubr.f32.vlgmr.msra.gmra.mrb[64].mxu0 %v30793_v59 }
0x1177   :  { %35365 = vmatpush3.msra.mxu0 %v38540_v11  ;;  %35366 = vmatprep.mubr.msk.f32.mxu0 %vm36609_vm1, %v36610_v34 }
0x1178   :  { %35369 = vmatprep.subr.mxu0 %v36610_v34 }
0x117d   :  { %v4156_v12 = vpop.xlane.xlu0 %4155 }
0x117e   :  { %v4157_v18 = vrot.slane %v4156_v12, 4  ;;  %35367 = vmatmul.mubr.f32.vlgmr.msra.gmra.mrb[64].mxu0 %v38784_v60 }
0x117f   :  { %35370 = vmatpush3.msra.mxu0 %v38498_v10  ;;  %35371 = vmatprep.mubr.msk.f32.mxu0 %vm36609_vm1, %v36610_v34 }
0x1180   :  { %v4158_v36 = vadd.f32 %v4157_v18, %v4156_v12  ;;  %35404 = vmatprep.subr.mxu0 %v36610_v34  ;;  %v13136_v12 = vadd.f32 %v13135_v22, %v13134_v43  ;;  %v15686_v18 = vrot.slane %v15685_v13, 1 }
0x1181   :  { %v6758_v27 = vpop.xlane.xlu0 %6757 }
0x1182   :  { %v4159_v17 = vrot.slane %v4158_v36, 2  ;;  %v6759_v23 = vrot.slane %v6758_v27, 4 }
0x1184   :  { %v6760_v44 = vadd.f32 %v6759_v23, %v6758_v27  ;;  %v4160_v28 = vadd.f32 %v4159_v17, %v4158_v36  ;;  %v15687_v23 = vadd.f32 %v15686_v18, %v15685_v13 }
0x1185   :  { %v13116_v25 = vpop.xlane.xlu0 %13115 }
0x1186   :  { %v6761_v29 = vrot.slane %v6760_v44, 2  ;;  %v13117_v41 = vrot.slane %v13116_v25, 4  ;;  %35372 = vmatmul.mubr.f32.vlgmr.msra.gmra.mrb[64].mxu0 %v38784_v60  ;;  %v4161_v42 = vrot.slane %v4160_v28, 1  ;;  %v23893_v60 = vadd.f32 %v23892_v49, %v23891_v39 }
0x1187   :  { %35405 = vmatpush3.msra.mxu0 %v38498_v10  ;;  %35406 = vmatprep.mubr.msk.f32.mxu0 %vm36609_vm1, %v36610_v34 }
0x1188   :  { %v13118_v45 = vadd.f32 %v13117_v41, %v13116_v25  ;;  %v4162_v47 = vadd.f32 %v4161_v42, %v4160_v28  ;;  %v6762_v54 = vadd.f32 %v6761_v29, %v6760_v44  ;;  %35409 = vmatprep.subr.mxu0 %v36610_v34  ;;  %v23894_v26 = vrot.slane %v23893_v60, 2 }
0x1189   :  { %v15667_v51 = vpop.xlane.xlu0 %15666 }
0x118a   :  { %v13119_v38 = vrot.slane %v13118_v45, 2  ;;  %v15668_v58 = vrot.slane %v15667_v51, 4  ;;  %36508 = vpush %v4162_v47  ;;  %35407 = vmatmul.mubr.f32.vlgmr.msra.gmra.mrb[66].mxu0 %v31695_v46  ;;  %v6763_v50 = vrot.slane %v6762_v54, 1  ;;  %v23895_v9 = vadd.f32 %v23894_v26, %v23893_v60 }
0x118b   :  { %35410 = vmatpush3.msra.mxu0 %v38549_v2  ;;  %35411 = vmatprep.mubr.msk.f32.mxu0 %vm36609_vm1, %v36610_v34 }
0x118c   :  { %v15669_v63 = vadd.f32 %v15668_v58, %v15667_v51  ;;  %v6764_v61 = vadd.f32 %v6763_v50, %v6762_v54  ;;  %v13120_v53 = vadd.f32 %v13119_v38, %v13118_v45  ;;  %35414 = vmatprep.subr.mxu0 %v36610_v34  ;;  %v23896_v25 = vrot.slane %v23895_v9, 1 }
0x118d   :  { %v21586_v59 = vpop.xlane.xlu0 %21585 }
0x118e   :  { %v15670_v5 = vrot.slane %v15669_v63, 2  ;;  %v21587_v3 = vrot.slane %v21586_v59, 4  ;;  %36510 = vpush %v6764_v61  ;;  %v38854_v2 = vpop.f32.mrb[60].mxu1  ;;  %v13121_v30 = vrot.slane %v13120_v53, 1  ;;  %v23897_v29 = vadd.f32 %v23896_v25, %v23895_v9 }
0x118f   :  { %36512 = vpush %v6778_v52  ;;  %v29783_v31 = vsub.f32 %v38854_v2, %v38852_v6  ;;  %v35223_v7 = vpop.f32.mrb[61].mxu1 }
0x1190   :  { %v21588_v56 = vadd.f32 %v21587_v3, %v21586_v59  ;;  %v13122_v62 = vadd.f32 %v13121_v30, %v13120_v53  ;;  %v15671_v21 = vadd.f32 %v15670_v5, %v15669_v63 }
0x1191   :  { %v23879_v33 = vpop.xlane.xlu0 %23878 }
0x1192   :  { %v21589_v24 = vrot.slane %v21588_v56, 2  ;;  %v23880_v19 = vrot.slane %v23879_v33, 4  ;;  %36514 = vpush %v13122_v62  ;;  %35412 = vmatmul.mubr.f32.vlgmr.msra.gmra.mrb[66].mxu0 %v38826_v15  ;;  %v15672_v36 = vrot.slane %v15671_v21, 1 }
0x1193   :  { %36516 = vpush %v13136_v12  ;;  %35415 = vmatpush3.msra.mxu0 %v38537_v48  ;;  %35416 = vmatprep.mubr.msk.f32.mxu0 %vm36609_vm1, %v36610_v34 }
0x1194   :  { %v23881_v37 = vadd.f32 %v23880_v19, %v23879_v33  ;;  %v15673_v27 = vadd.f32 %v15672_v36, %v15671_v21  ;;  %v21590_v17 = vadd.f32 %v21589_v24, %v21588_v56  ;;  %35419 = vmatprep.subr.mxu0 %v36610_v34 }
0x1196   :  { %v23882_v14 = vrot.slane %v23881_v37, 2  ;;  %36518 = vpush %v15673_v27  ;;  %v21591_v44 = vrot.slane %v21590_v17, 1 }
0x1197   :  { %36520 = vpush %v15687_v23 }
0x1198   :  { %v21592_v28 = vadd.f32 %v21591_v44, %v21590_v17  ;;  %v23883_v0 = vadd.f32 %v23882_v14, %v23881_v37 }
0x119a   :  { %36522 = vpush %v21592_v28  ;;  %35417 = vmatmul.mubr.f32.vlgmr.msra.gmra.mrb[66].mxu0 %v38830_v40  ;;  %v23884_v48 = vrot.slane %v23883_v0, 1 }
0x119b   :  { %36524 = vpush %v21604_v35  ;;  %35420 = vmatpush3.msra.mxu0 %v38498_v10  ;;  %35421 = vmatprep.mubr.msk.f32.mxu0 %vm36609_vm1, %v36610_v34 }
0x119c   :  { %v23885_v39 = vadd.f32 %v23884_v48, %v23883_v0  ;;  %35424 = vmatprep.subr.mxu0 %v36610_v34 }
0x119e   :  { %36526 = vpush %v23885_v39 }
0x119f   :  { %36528 = vpush %v23897_v29 }
0x11a2   :  { %35422 = vmatmul.mubr.f32.vlgmr.msra.gmra.mrb[66].mxu0 %v31693_v20 }
0x11a3   :  { %35425 = vmatpush3.msra.mxu0 %v38540_v11  ;;  %35426 = vmatprep.mubr.msk.f32.mxu0 %vm36609_vm1, %v36610_v34 }
0x11a4   :  { %35429 = vmatprep.subr.mxu0 %v36610_v34 }
0x11aa   :  { %35427 = vmatmul.mubr.f32.vlgmr.msra.gmra.mrb[66].mxu0 %v38826_v15 }
0x11ab   :  { %35430 = vmatpush3.msra.mxu0 %v38498_v10  ;;  %35431 = vmatprep.mubr.msk.f32.mxu0 %vm36609_vm1, %v36610_v34 }
0x11b2   :  { %35432 = vmatmul.mubr.f32.vlgmr.msra.gmra.mrb[66].mxu0 %v38826_v15 }
0x11bb   :  { %s36509_s7 = spop %36508 }
0x11bf   :  { %s36511_s8 = spop %36510 }
0x11c0   :  { %s36513_s9 = spop %36512 }
0x11c3   :  { %s36515_s10 = spop %36514 }
0x11c4   :  { %s38888_s11 = spop %36516 }
0x11c7   :  { %s36519_s12 = spop %36518 }
0x11c8   :  { %s38890_s13 = spop %36520 }
0x11cb   :  { %s36523_s14 = spop %36522 }
0x11cc   :  { %s38892_s15 = spop %36524 }
0x11cf   :  { %s36527_s16 = spop %36526 }
0x11d0   :  { %s36529_s17 = spop %36528 }
0x11d5   :  { %v28425_v41 = vpop.f32.mrb[58].mxu0 }
0x11d6   :  { %v29778_v42 = vmul.f32 %v28425_v41, %v28425_v41  ;;  %v29779_v40 = vmul.f32 %v28425_v41, %v38811_v4  ;;  %v35193_v20 = vpop.f32.mrb[59].mxu0 }
0x11d7   :  { %v29773_v11 = vpop.f32.mrb[62].mxu1 }
0x11d8   :  { %v29792_v32 = vadd.f32 %v29778_v42, %v38852_v6  ;;  %v29780_v43 = vsub.f32 %v29773_v11, %v29779_v40  ;;  %v35283_v46 = vpop.f32.mrb[63].mxu1  ;;  %v29789_v49 = vmul.f32 2.0, %v29779_v40 }
0x11da   :  { %v29793_v57 = vadd.f32 0.0001, %v29792_v32  ;;  %v29781_v4 = vmul.f32 2.0, %v29780_v43  ;;  %v29790_v58 = vadd.f32 0.0001, %v29789_v49 }
0x11dc   :  { %v29782_v51 = vadd.f32 0.0009, %v29781_v4 }
0x1201   :  { %v29324_v45 = vpop.f32.mrb[60].mxu0 }
0x1202   :  { %v29784_v47 = vsub.f32 %v29324_v45, %v29778_v42  ;;  %v35253_v54 = vpop.f32.mrb[61].mxu0 }
0x1203   :  { %v30717_v55 = vpop.f32.mrb[64].mxu1 }
0x1204   :  { %v29785_v34 = vadd.f32 %v29784_v47, %v29783_v31  ;;  %v35343_v10 = vpop.f32.mrb[65].mxu1  ;;  %v32072_v60 = vmul.f32 %v30717_v55, %v30717_v55 }
0x1206   :  { %v29786_v15 = vadd.f32 0.0009, %v29785_v34 }
0x1208   :  { %36597 = vrcp.f32 %v29786_v15 }
0x1209   :  { %36599 = vrcp.f32 %v29793_v57 }
0x1212   :  { %v36598_v38 = vpop.eup %36597 }
0x1213   :  { %v29788_v50 = vmul.f32 %v36598_v38, %v29782_v51  ;;  %v36600_v61 = vpop.eup %36599 }
0x1215   :  { %v29809_v52 = vsel %vm29796_vm13, %v29788_v50, 0.0  ;;  %v29791_v63 = vmul.f32 %v29790_v58, %v29788_v50  ;;  %v32116_v58 = vlaneseq  ;;  %v6766_v50 = vstv %s36511_s8 }
0x1216   :  { %29810 = vadd.xlane.f32.xlu1 %v29809_v52  ;;  %v15675_v52 = vstv %s36519_s12 }
0x1217   :  { %v29795_v53 = vmul.f32 %v36600_v61, %v29791_v63  ;;  %v4150_v63 = vstv %s36507_s6  ;;  %v32117_v61 = vand.u32 127, %v32116_v58 }
0x1219   :  { %v29797_v22 = vsel %vm29796_vm13, %v29795_v53, 0.0  ;;  %v23887_v53 = vstv %s36527_s16  ;;  %vm32118_vm14 = vcmp.eq.s32.totalorder %v32117_v61, 0  ;;  %vm32120_vm15 = vcmp.eq.s32.totalorder %v32117_v61, 1 }
0x121a   :  { %29798 = vadd.xlane.f32.xlu0 %v29797_v22  ;;  %v6767_v22 = vadd.f32 %v6766_v50, %v4150_v63  ;;  %vm32122_vm0 = vcmp.eq.s32.totalorder %v32117_v61, 2  ;;  %vm32124_vm1 = vcmp.eq.s32.totalorder %v32117_v61, 3  ;;  %vm32126_vm2 = vcmp.eq.s32.totalorder %v32117_v61, 4 }
0x121b   :  { %vm32128_vm3 = vcmp.eq.s32.totalorder %v32117_v61, 5  ;;  %vm32130_vm4 = vcmp.eq.s32.totalorder %v32117_v61, 6  ;;  %vm32132_vm5 = vcmp.eq.s32.totalorder %v32117_v61, 7 }
0x122d   :  { %v30267_v16 = vpop.f32.mrb[62].mxu0 }
0x122e   :  { %v32071_v6 = vmul.f32 %v30267_v16, %v30267_v16  ;;  %v32073_v59 = vmul.f32 %v30717_v55, %v30267_v16  ;;  %v35313_v13 = vpop.f32.mrb[63].mxu0  ;;  %v13124_v16 = vstv %s36515_s10 }
0x122f   :  { %v31617_v5 = vpop.f32.mrb[66].mxu1 }
0x1230   :  { %v32086_v3 = vadd.f32 %v32072_v60, %v32071_v6  ;;  %v32078_v2 = vsub.f32 %v31617_v5, %v32072_v60  ;;  %v35403_v30 = vpop.f32.mrb[67].mxu1  ;;  %v32083_v1 = vmul.f32 2.0, %v32073_v59  ;;  %v15676_v60 = vadd.f32 %v15675_v52, %v13124_v16 }
0x1231   :  { %v4164_v5 = vstv %s36509_s7 }
0x1232   :  { %v32087_v26 = vadd.f32 0.0001, %v32086_v3  ;;  %v32084_v37 = vadd.f32 0.0001, %v32083_v1  ;;  %v6782_v3 = vmul.f32 0.001953125, %v6767_v22 }
0x1259   :  { %v31167_v31 = vpop.f32.mrb[64].mxu0 }
0x125a   :  { %v32077_v7 = vsub.f32 %v31167_v31, %v32071_v6  ;;  %v35373_v56 = vpop.f32.mrb[65].mxu0  ;;  %v21594_v6 = vstv %s36523_s14  ;;  %v15691_v31 = vmul.f32 0.0061728396, %v15676_v60 }
0x125b   :  { %v23888_v13 = vadd.f32 %v23887_v53, %v21594_v6  ;;  %v13138_v56 = vstv %s38888_s11 }
0x125c   :  { %v32079_v62 = vadd.f32 %v32078_v2, %v32077_v7  ;;  %v15689_v2 = vstv %s38890_s13  ;;  %v23899_v7 = vstv %s36529_s17 }
0x125e   :  { %v32080_v21 = vadd.f32 0.0009, %v32079_v62  ;;  %v23901_v62 = vmul.f32 0.02, %v23888_v13 }
0x1260   :  { %36601 = vrcp.f32 %v32080_v21 }
0x1261   :  { %36603 = vrcp.f32 %v32087_v26 }
0x126a   :  { %v36602_v36 = vpop.eup %36601 }
0x126b   :  { %v36604_v8 = vpop.eup %36603 }
0x1285   :  { %v32067_v33 = vpop.f32.mrb[66].mxu0 }
0x1286   :  { %v32074_v12 = vsub.f32 %v32067_v33, %v32073_v59  ;;  %v35433_v18 = vpop.f32.mrb[67].mxu0  ;;  %v6780_v59 = vstv %s36513_s9  ;;  %v15690_v33 = vadd.f32 %v15689_v2, %v13138_v56 }
0x1287   :  { %v6781_v30 = vadd.f32 %v6780_v59, %v4164_v5 }
0x1288   :  { %v32075_v24 = vmul.f32 2.0, %v32074_v12  ;;  %v21606_v12 = vstv %s38892_s15 }
0x128a   :  { %v32076_v19 = vadd.f32 0.0009, %v32075_v24  ;;  %v32119_v24 = vsel %vm32118_vm14, %v6782_v3, 0.0 }
0x128c   :  { %v32082_v27 = vmul.f32 %v36602_v36, %v32076_v19  ;;  %v23900_v19 = vadd.f32 %v23899_v7, %v21606_v12 }
0x128e   :  { %v32102_v17 = vsel %vm29796_vm13, %v32082_v27, 0.0  ;;  %v32085_v23 = vmul.f32 %v32084_v37, %v32082_v27  ;;  %v32121_v37 = vsel %vm32120_vm15, %v15691_v31, %v32119_v24 }
0x128f   :  { %32103 = vadd.xlane.f32.xlu1 %v32102_v17 }
0x1290   :  { %v32089_v9 = vmul.f32 %v36604_v8, %v32085_v23  ;;  %v6783_v23 = vmul.f32 0.001953125, %v6781_v30  ;;  %v32123_v8 = vsel %vm32122_vm0, %v23901_v62, %v32121_v37 }
0x1292   :  { %v32090_v14 = vsel %vm29796_vm13, %v32089_v9, 0.0  ;;  %v15692_v9 = vmul.f32 0.0061728396, %v15690_v33 }
0x1293   :  { %32091 = vadd.xlane.f32.xlu0 %v32090_v14 }
0x12a3   :  { %v29811_v44 = vpop.xlane.xlu1 %29810 }
0x12a4   :  { %v29812_v28 = vrot.slane %v29811_v44, 4 }
0x12a6   :  { %v29813_v0 = vadd.f32 %v29812_v28, %v29811_v44  ;;  %v23902_v44 = vmul.f32 0.02, %v23900_v19 }
0x12a7   :  { %v29799_v35 = vpop.xlane.xlu0 %29798 }
0x12a8   :  { %v29814_v25 = vrot.slane %v29813_v0, 2  ;;  %v29800_v48 = vrot.slane %v29799_v35, 4 }
0x12aa   :  { %v29801_v39 = vadd.f32 %v29800_v48, %v29799_v35  ;;  %v29815_v29 = vadd.f32 %v29814_v25, %v29813_v0 }
0x12ac   :  { %v29802_v41 = vrot.slane %v29801_v39, 2  ;;  %v29816_v40 = vrot.slane %v29815_v29, 1 }
0x12ae   :  { %v29803_v42 = vadd.f32 %v29802_v41, %v29801_v39  ;;  %v29817_v32 = vadd.f32 %v29816_v40, %v29815_v29 }
0x12b0   :  { %v29804_v20 = vrot.slane %v29803_v42, 1 }
0x12b2   :  { %v29805_v11 = vadd.f32 %v29804_v20, %v29803_v42 }
0x12b4   :  { %36530 = vpush %v29805_v11 }
0x12b5   :  { %36532 = vpush %v29817_v32 }
0x12e5   :  { %s36531_s18 = spop %36530 }
0x12e6   :  { %s36533_s0 = spop %36532  ;;  %v29807_v21 = vstv %s36531_s18 }
0x12e7   :  { %v29819_v36 = vstv %s36533_s0 }
0x131c   :  { %v32104_v43 = vpop.xlane.xlu1 %32103 }
0x131d   :  { %v32105_v46 = vrot.slane %v32104_v43, 4 }
0x131f   :  { %v32106_v45 = vadd.f32 %v32105_v46, %v32104_v43 }
0x1320   :  { %v32092_v47 = vpop.xlane.xlu0 %32091 }
0x1321   :  { %v32107_v54 = vrot.slane %v32106_v45, 2  ;;  %v32093_v55 = vrot.slane %v32092_v47, 4 }
0x1323   :  { %v32094_v34 = vadd.f32 %v32093_v55, %v32092_v47  ;;  %v32108_v10 = vadd.f32 %v32107_v54, %v32106_v45 }
0x1325   :  { %v32095_v15 = vrot.slane %v32094_v34, 2  ;;  %v32109_v4 = vrot.slane %v32108_v10, 1 }
0x1327   :  { %v32096_v57 = vadd.f32 %v32095_v15, %v32094_v34  ;;  %v32110_v38 = vadd.f32 %v32109_v4, %v32108_v10 }
0x1329   :  { %v32097_v49 = vrot.slane %v32096_v57, 1 }
0x132b   :  { %v32098_v51 = vadd.f32 %v32097_v49, %v32096_v57 }
0x132d   :  { %36534 = vpush %v32098_v51 }
0x132e   :  { %36536 = vpush %v32110_v38 }
0x135e   :  { %s36535_s19 = spop %36534 }
0x135f   :  { %v32100_v26 = vstv %s36535_s19  ;;  %s36537_s20 = spop %36536 }
0x1360   :  { %v32101_v18 = vadd.f32 %v32100_v26, %v29807_v21  ;;  %v32112_v1 = vstv %s36537_s20 }
0x1361   :  { %v32113_v17 = vadd.f32 %v32112_v1, %v29819_v36 }
0x1362   :  { %v32114_v27 = vmul.f32 0.055555556, %v32101_v18 }
0x1363   :  { %v32115_v0 = vmul.f32 0.055555556, %v32113_v17 }
0x1364   :  { %v32125_v14 = vsel %vm32124_vm1, %v32114_v27, %v32123_v8 }
0x1365   :  { %v32127_v28 = vsel %vm32126_vm2, %v6783_v23, %v32125_v14 }
0x1366   :  { %v32129_v35 = vsel %vm32128_vm3, %v15692_v9, %v32127_v28 }
0x1367   :  { %v32131_v25 = vsel %vm32130_vm4, %v23902_v44, %v32129_v35 }
0x1368   :  { %v32133_v48 = vsel %vm32132_vm5, %v32115_v0, %v32131_v25 }
0x1369   :  { %32135 = vst.msk [vmem:[%s38905_s2] sm:$0x1] %vm32134_vm6, %v32133_v48 }

</bundles_post_ra>
